<compile_context>
chip_gen: v7x
topology: tpu7x:2x2x1
jax: 0.10.0
libtpu: 0.0.40
codegen_flags: <defaults>
</compile_context>

<pallas_src>
import functools

import jax
import jax.numpy as jnp
from jax.experimental import pallas as pl
from jax.experimental.pallas import tpu as pltpu


# ----------------------------------------------------------------------------
# Pallas kernel: one (batch, pixel-block) step of a conv expressed as
#   W^T @ patches^T  (+ bias, + LeakyReLU).   bf16 operands, f32 accumulate.
# ----------------------------------------------------------------------------
def _conv_mm_kernel(p_ref, w_ref, b_ref, o_ref, *, slope):
    # p_ref: (1, K, tn) bf16 patches^T block (pixels on the lane axis)
    # w_ref: (Cout, K)  bf16 transposed conv weight
    # b_ref: (Cout, 1)  f32 bias column
    # o_ref: (1, Cout, tn) channel-major output block (lane-dense stores)
    y = jnp.dot(w_ref[...], p_ref[0], preferred_element_type=jnp.float32)
    y = y + b_ref[...]                       # broadcast over lanes
    if slope is not None:
        y = jnp.maximum(y, slope * y)        # LeakyReLU(negative_slope=slope)
    o_ref[0] = y.astype(o_ref.dtype)


def conv2d_channel_major(patches_t, w_t, b_col, *, slope, n_split=1,
                         out_dtype=jnp.bfloat16):
    """patches_t: (B, K, Npix) bf16; w_t: (Cout, K) bf16; b_col: (Cout, 1) f32.

    Returns (B, Cout, Npix) channel-major activation.  Grid = (B, n_split),
    both axes "parallel" (n_split pixel blocks must be multiples of 128 unless
    n_split == 1, where the full extent is used).
    """
    B, K, Np = patches_t.shape
    Cout = w_t.shape[0]
    assert Np % n_split == 0, (Np, n_split)
    tn = Np // n_split
    assert n_split == 1 or tn % 128 == 0, (tn,)

    kernel = functools.partial(_conv_mm_kernel, slope=slope)
    return pl.pallas_call(
        kernel,
        out_shape=jax.ShapeDtypeStruct((B, Cout, Np), out_dtype),
        grid=(B, n_split),
        in_specs=[
            pl.BlockSpec((1, K, tn), lambda b, j: (b, 0, j)),
            pl.BlockSpec((Cout, K), lambda b, j: (0, 0)),   # fetched once
            pl.BlockSpec((Cout, 1), lambda b, j: (0, 0)),   # fetched once
        ],
        out_specs=pl.BlockSpec((1, Cout, tn), lambda b, j: (b, 0, j)),
        compiler_params=pltpu.CompilerParams(
            dimension_semantics=("parallel", "parallel")),
    )(patches_t, w_t, b_col)


# ----------------------------------------------------------------------------
# im2col glue (XLA strided slices) for channel-major (NCHW) inputs.
# Row order of the K axis is (kh, kw, ci), matching the weight flattening.
# ----------------------------------------------------------------------------
def _im2col_T(x, ksize, stride, pad):
    """x: (B, C, H, W) -> (B, ksize*ksize*C, Ho*Wo) patches^T."""
    B, C, H, W = x.shape
    Ho = (H + 2 * pad - ksize) // stride + 1
    Wo = (W + 2 * pad - ksize) // stride + 1
    xp = jnp.pad(x, ((0, 0), (0, 0), (pad, pad), (pad, pad)))
    rows = []
    for kh in range(ksize):
        for kw in range(ksize):
            rows.append(
                xp[:, :, kh:kh + stride * Ho:stride,
                   kw:kw + stride * Wo:stride].reshape(B, C, Ho * Wo))
    return jnp.concatenate(rows, axis=1)


def avgpool2d_nchw(x, k):
    """AvgPool2d(kernel_size=k, stride=k) on NCHW (tiny, kept in XLA)."""
    B, C, H, W = x.shape
    xf = x.astype(jnp.float32).reshape(B, C, H // k, k, W // k, k)
    return xf.mean(axis=(3, 5)).astype(x.dtype)


# ----------------------------------------------------------------------------
# Fused tail: conv3 (pixel-major matmul) + LeakyReLU + AvgPool2d(7) + fc1 + fc2
# per batch element (grid=(B,), parallel).  conv3 output never leaves VMEM.
# ----------------------------------------------------------------------------
def _tail_kernel(p_ref, w3_ref, b3_ref, w4_ref, b4_ref, w5_ref, b5_ref,
                 o_ref, *, slope):
    # p_ref: (1, 49, K3) bf16 conv3 patches for this batch element.
    y = jnp.dot(p_ref[0], w3_ref[...], preferred_element_type=jnp.float32)
    y = y + b3_ref[...]
    y = jnp.maximum(y, slope * y)                       # (49, C3) f32
    # AvgPool2d(7) over the full 7x7 map == exact f32 mean over the 49 rows.
    pooled = jnp.mean(y, axis=0, keepdims=True)         # (1, C3) f32
    h = jnp.dot(pooled.astype(jnp.bfloat16), w4_ref[...],
                preferred_element_type=jnp.float32) + b4_ref[...]   # fc1
    o = jnp.dot(h.astype(jnp.bfloat16), w5_ref[...],
                preferred_element_type=jnp.float32) + b5_ref[...]   # fc2
    o_ref[0] = o.astype(o_ref.dtype)


def conv3_fc_tail(patches3, params, *, slope=0.2):
    B, n_pix, K3 = patches3.shape
    class_num = params["fc2_w"].shape[1]

    def full_spec(a):
        return pl.BlockSpec(a.shape, lambda b, _n=len(a.shape): (0,) * _n)

    kernel = functools.partial(_tail_kernel, slope=slope)
    out = pl.pallas_call(
        kernel,
        out_shape=jax.ShapeDtypeStruct((B, 1, class_num), jnp.float32),
        grid=(B,),
        in_specs=[
            pl.BlockSpec((1, n_pix, K3), lambda b: (b, 0, 0)),
            full_spec(params["conv3_w"]), full_spec(params["conv3_b"]),
            full_spec(params["fc1_w"]), full_spec(params["fc1_b"]),
            full_spec(params["fc2_w"]), full_spec(params["fc2_b"]),
        ],
        out_specs=pl.BlockSpec((1, 1, class_num), lambda b: (b, 0, 0)),
        compiler_params=pltpu.CompilerParams(
            dimension_semantics=("parallel",)),
    )(patches3, params["conv3_w"], params["conv3_b"],
      params["fc1_w"], params["fc1_b"], params["fc2_w"], params["fc2_b"])
    return out.reshape(B, class_num)


# ----------------------------------------------------------------------------
# Parameter init (deterministic, PyTorch-default-style uniform bounds).
# conv0..conv2 weights stored transposed (Cout, K); conv3 pixel-major (K, Cout);
# all MXU operands pre-cast to bf16, biases f32.
# ----------------------------------------------------------------------------
def _init_conv(key, kh, kw, cin, cout, transposed):
    wkey, bkey = jax.random.split(key)
    bound = 1.0 / float(kh * kw * cin) ** 0.5
    w = jax.random.uniform(wkey, (kh, kw, cin, cout), jnp.float32, -bound, bound)
    b = jax.random.uniform(bkey, (cout,), jnp.float32, -bound, bound)
    w_mat = w.reshape(kh * kw * cin, cout)          # rows ordered (kh, kw, ci)
    if transposed:
        return w_mat.T.astype(jnp.bfloat16), b.reshape(cout, 1)
    return w_mat.astype(jnp.bfloat16), b.reshape(1, cout)


def _init_linear(key, fin, fout):
    wkey, bkey = jax.random.split(key)
    bound = 1.0 / float(fin) ** 0.5
    w = jax.random.uniform(wkey, (fin, fout), jnp.float32, -bound, bound)
    b = jax.random.uniform(bkey, (fout,), jnp.float32, -bound, bound)
    return w.astype(jnp.bfloat16), b.reshape(1, fout)


def init_params(key, class_num, ndf):
    ks = jax.random.split(key, 6)
    p = {}
    p["conv0_w"], p["conv0_b"] = _init_conv(ks[0], 4, 4, 1, ndf, True)
    p["conv1_w"], p["conv1_b"] = _init_conv(ks[1], 4, 4, ndf, ndf * 2, True)
    p["conv2_w"], p["conv2_b"] = _init_conv(ks[2], 4, 4, ndf * 2, ndf * 4, True)
    p["conv3_w"], p["conv3_b"] = _init_conv(ks[3], 4, 4, ndf * 4, ndf * 8, False)
    p["fc1_w"], p["fc1_b"] = _init_linear(ks[4], ndf * 8, 512)
    p["fc2_w"], p["fc2_b"] = _init_linear(ks[5], 512, class_num)
    return p


# ----------------------------------------------------------------------------
# ClassContraNet forward (eval mode).  Input is NCHW like the PyTorch module.
# ----------------------------------------------------------------------------
def class_contra_net_forward(seg_map_nchw, params):
    slope = 0.2
    B = seg_map_nchw.shape[0]
    x = seg_map_nchw.astype(jnp.bfloat16)                # (B, 1, 224, 224)

    # conv0 + LeakyReLU   (Dropout3d(0.5) is identity at inference)
    p0 = _im2col_T(x, 4, 2, 1)                           # (B, 16, 12544)
    x = conv2d_channel_major(p0, params["conv0_w"], params["conv0_b"],
                             slope=slope, n_split=2)     # (B, ndf, 12544)
    x = x.reshape(B, -1, 112, 112)

    # conv1 + LeakyReLU
    p1 = _im2col_T(x, 4, 2, 1)                           # (B, 16*ndf, 3136)
    x = conv2d_channel_major(p1, params["conv1_w"], params["conv1_b"],
                             slope=slope, n_split=1)     # (B, 2ndf, 3136)
    x = x.reshape(B, -1, 56, 56)

    # AvgPool2d(2)  (tiny; fuses into the XLA glue that builds conv2 patches)
    x = avgpool2d_nchw(x, 2)                             # (B, 2ndf, 28, 28)

    # conv2 + LeakyReLU
    p2 = _im2col_T(x, 4, 2, 1)                           # (B, 32*ndf, 196)
    x = conv2d_channel_major(p2, params["conv2_w"], params["conv2_b"],
                             slope=slope, n_split=1)     # (B, 4ndf, 196)
    x = x.reshape(B, -1, 14, 14)

    # conv3 + LeakyReLU + AvgPool2d(7) + fc1 + fc2 fused in one Pallas kernel.
    # TODO(synk): fc1 has no activation in the PyTorch reference; none added.
    p3 = jnp.transpose(_im2col_T(x, 4, 2, 1), (0, 2, 1))  # (B, 49, 64*ndf)
    return conv3_fc_tail(p3, params, slope=slope)


if __name__ == "__main__":
    # The architecture (4 stride-2 convs + AvgPool2d(2) + AvgPool2d(7) feeding
    # Linear(ndf*8, 512)) requires a 224x224 input; keep other dims small.
    class_num = 10
    ndf = 8
    B, H, W = 2, 224, 224

    key = jax.random.PRNGKey(0)
    pkey, xkey = jax.random.split(key)
    params = init_params(pkey, class_num, ndf)
    x = jax.random.normal(xkey, (B, 1, H, W), dtype=jnp.float32)   # NCHW

    fwd = jax.jit(class_contra_net_forward)
    out = fwd(x, params)
    out = jax.block_until_ready(out)
    assert out.shape == (B, class_num), out.shape
    assert bool(jnp.all(jnp.isfinite(out)))
    print("KERNEL_OK")
</pallas_src>

<mosaic_0001>
module attributes {stable_mosaic.version = 11 : i64} {
  func.func @_conv_mm_kernel(%arg0: i32, %arg1: i32, %arg2: memref<1x16x6272xbf16, #tpu.memory_space<vmem>>, %arg3: memref<8x16xbf16, #tpu.memory_space<vmem>>, %arg4: memref<8x1xf32, #tpu.memory_space<vmem>>, %arg5: memref<1x8x6272xbf16, #tpu.memory_space<vmem>>) attributes {dimension_semantics = [#tpu.dimension_semantics<parallel>, #tpu.dimension_semantics<parallel>], iteration_bounds = array<i64: 2, 2>, scalar_prefetch = 0 : i64, scratch_operands = 0 : i64, tpu.core_type = #tpu.core_type<tc>, window_params = [{transform_indices = @transform_0, window_bounds = array<i64: 1, 16, 6272>}, {pipeline_mode = #tpu.pipeline_mode<synchronous>, transform_indices = @transform_1, window_bounds = array<i64: 8, 16>}, {pipeline_mode = #tpu.pipeline_mode<synchronous>, transform_indices = @transform_2, window_bounds = array<i64: 8, 1>}, {transform_indices = @transform_3, window_bounds = array<i64: 1, 8, 6272>}]} {
    %c0 = arith.constant 0 : index
    %c0_0 = arith.constant 0 : index
    %0 = vector.load %arg3[%c0, %c0_0] : memref<8x16xbf16, #tpu.memory_space<vmem>>, vector<8x16xbf16>
    %c0_1 = arith.constant 0 : index
    %c0_2 = arith.constant 0 : index
    %c0_3 = arith.constant 0 : index
    %1 = vector.load %arg2[%c0_1, %c0_2, %c0_3] : memref<1x16x6272xbf16, #tpu.memory_space<vmem>>, vector<1x16x6272xbf16>
    %2 = vector.shape_cast %1 : vector<1x16x6272xbf16> to vector<16x6272xbf16>
    %cst = arith.constant dense<0.000000e+00> : vector<8x6272xf32>
    %3 = tpu.matmul %0, %2, %cst {dimension_numbers = #tpu.dot_dimension_numbers<[1], [0], [0], [1], [0, 0, 1, 1], [], []>} : vector<8x16xbf16>, vector<16x6272xbf16>, vector<8x6272xf32> -> vector<8x6272xf32>
    %c0_4 = arith.constant 0 : index
    %c0_5 = arith.constant 0 : index
    %4 = vector.load %arg4[%c0_4, %c0_5] : memref<8x1xf32, #tpu.memory_space<vmem>>, vector<8x1xf32>
    %5 = vector.broadcast %4 : vector<8x1xf32> to vector<8x6272xf32>
    %6 = arith.addf %3, %5 : vector<8x6272xf32>
    %cst_6 = arith.constant 2.000000e-01 : f32
    %7 = vector.broadcast %cst_6 : f32 to vector<8x6272xf32>
    %8 = arith.mulf %7, %6 : vector<8x6272xf32>
    %9 = arith.maximumf %6, %8 : vector<8x6272xf32>
    %10 = arith.truncf %9 : vector<8x6272xf32> to vector<8x6272xbf16>
    %c0_7 = arith.constant 0 : index
    %c0_8 = arith.constant 0 : index
    %c0_9 = arith.constant 0 : index
    %11 = vector.load %arg5[%c0_7, %c0_8, %c0_9] : memref<1x8x6272xbf16, #tpu.memory_space<vmem>>, vector<1x8x6272xbf16>
    %12 = vector.shape_cast %11 : vector<1x8x6272xbf16> to vector<8x6272xbf16>
    %13 = vector.shape_cast %10 : vector<8x6272xbf16> to vector<1x8x6272xbf16>
    tpu.vector_store %arg5[%c0_7, %c0_8, %c0_9], %13 {strides = array<i32>} : memref<1x8x6272xbf16, #tpu.memory_space<vmem>>, vector<1x8x6272xbf16>,
    return
  }
  func.func @transform_0(%arg0: i32, %arg1: i32) -> (i32, i32, i32) {
    %c0_i32 = arith.constant 0 : i32
    %c0_i32_0 = arith.constant 0 : i32
    return %arg0, %c0_i32, %arg1 : i32, i32, i32
  }
  func.func @transform_1(%arg0: i32, %arg1: i32) -> (i32, i32) {
    %c0_i32 = arith.constant 0 : i32
    %c0_i32_0 = arith.constant 0 : i32
    %c0_i32_1 = arith.constant 0 : i32
    return %c0_i32, %c0_i32_0 : i32, i32
  }
  func.func @transform_2(%arg0: i32, %arg1: i32) -> (i32, i32) {
    %c0_i32 = arith.constant 0 : i32
    %c0_i32_0 = arith.constant 0 : i32
    %c0_i32_1 = arith.constant 0 : i32
    return %c0_i32, %c0_i32_0 : i32, i32
  }
  func.func @transform_3(%arg0: i32, %arg1: i32) -> (i32, i32, i32) {
    %c0_i32 = arith.constant 0 : i32
    %c0_i32_0 = arith.constant 0 : i32
    return %arg0, %c0_i32, %arg1 : i32, i32, i32
  }
}

module attributes {stable_mosaic.version = 11 : i64} {
  func.func @_conv_mm_kernel(%arg0: i32, %arg1: i32, %arg2: memref<1x128x3136xbf16, #tpu.memory_space<vmem>>, %arg3: memref<16x128xbf16, #tpu.memory_space<vmem>>, %arg4: memref<16x1xf32, #tpu.memory_space<vmem>>, %arg5: memref<1x16x3136xbf16, #tpu.memory_space<vmem>>) attributes {dimension_semantics = [#tpu.dimension_semantics<parallel>, #tpu.dimension_semantics<parallel>], iteration_bounds = array<i64: 2, 1>, scalar_prefetch = 0 : i64, scratch_operands = 0 : i64, tpu.core_type = #tpu.core_type<tc>, window_params = [{transform_indices = @transform_0, window_bounds = array<i64: 1, 128, 3136>}, {pipeline_mode = #tpu.pipeline_mode<synchronous>, transform_indices = @transform_1, window_bounds = array<i64: 16, 128>}, {pipeline_mode = #tpu.pipeline_mode<synchronous>, transform_indices = @transform_2, window_bounds = array<i64: 16, 1>}, {transform_indices = @transform_3, window_bounds = array<i64: 1, 16, 3136>}]} {
    %c0 = arith.constant 0 : index
    %c0_0 = arith.constant 0 : index
    %0 = vector.load %arg3[%c0, %c0_0] : memref<16x128xbf16, #tpu.memory_space<vmem>>, vector<16x128xbf16>
    %c0_1 = arith.constant 0 : index
    %c0_2 = arith.constant 0 : index
    %c0_3 = arith.constant 0 : index
    %1 = vector.load %arg2[%c0_1, %c0_2, %c0_3] : memref<1x128x3136xbf16, #tpu.memory_space<vmem>>, vector<1x128x3136xbf16>
    %2 = vector.shape_cast %1 : vector<1x128x3136xbf16> to vector<128x3136xbf16>
    %cst = arith.constant dense<0.000000e+00> : vector<16x3136xf32>
    %3 = tpu.matmul %0, %2, %cst {dimension_numbers = #tpu.dot_dimension_numbers<[1], [0], [0], [1], [0, 0, 1, 1], [], []>} : vector<16x128xbf16>, vector<128x3136xbf16>, vector<16x3136xf32> -> vector<16x3136xf32>
    %c0_4 = arith.constant 0 : index
    %c0_5 = arith.constant 0 : index
    %4 = vector.load %arg4[%c0_4, %c0_5] : memref<16x1xf32, #tpu.memory_space<vmem>>, vector<16x1xf32>
    %5 = vector.broadcast %4 : vector<16x1xf32> to vector<16x3136xf32>
    %6 = arith.addf %3, %5 : vector<16x3136xf32>
    %cst_6 = arith.constant 2.000000e-01 : f32
    %7 = vector.broadcast %cst_6 : f32 to vector<16x3136xf32>
    %8 = arith.mulf %7, %6 : vector<16x3136xf32>
    %9 = arith.maximumf %6, %8 : vector<16x3136xf32>
    %10 = arith.truncf %9 : vector<16x3136xf32> to vector<16x3136xbf16>
    %c0_7 = arith.constant 0 : index
    %c0_8 = arith.constant 0 : index
    %c0_9 = arith.constant 0 : index
    %11 = vector.load %arg5[%c0_7, %c0_8, %c0_9] : memref<1x16x3136xbf16, #tpu.memory_space<vmem>>, vector<1x16x3136xbf16>
    %12 = vector.shape_cast %11 : vector<1x16x3136xbf16> to vector<16x3136xbf16>
    %13 = vector.shape_cast %10 : vector<16x3136xbf16> to vector<1x16x3136xbf16>
    tpu.vector_store %arg5[%c0_7, %c0_8, %c0_9], %13 {strides = array<i32>} : memref<1x16x3136xbf16, #tpu.memory_space<vmem>>, vector<1x16x3136xbf16>,
    return
  }
  func.func @transform_0(%arg0: i32, %arg1: i32) -> (i32, i32, i32) {
    %c0_i32 = arith.constant 0 : i32
    %c0_i32_0 = arith.constant 0 : i32
    return %arg0, %c0_i32, %arg1 : i32, i32, i32
  }
  func.func @transform_1(%arg0: i32, %arg1: i32) -> (i32, i32) {
    %c0_i32 = arith.constant 0 : i32
    %c0_i32_0 = arith.constant 0 : i32
    %c0_i32_1 = arith.constant 0 : i32
    return %c0_i32, %c0_i32_0 : i32, i32
  }
  func.func @transform_2(%arg0: i32, %arg1: i32) -> (i32, i32) {
    %c0_i32 = arith.constant 0 : i32
    %c0_i32_0 = arith.constant 0 : i32
    %c0_i32_1 = arith.constant 0 : i32
    return %c0_i32, %c0_i32_0 : i32, i32
  }
  func.func @transform_3(%arg0: i32, %arg1: i32) -> (i32, i32, i32) {
    %c0_i32 = arith.constant 0 : i32
    %c0_i32_0 = arith.constant 0 : i32
    return %arg0, %c0_i32, %arg1 : i32, i32, i32
  }
}

module attributes {stable_mosaic.version = 11 : i64} {
  func.func @_conv_mm_kernel(%arg0: i32, %arg1: i32, %arg2: memref<1x256x196xbf16, #tpu.memory_space<vmem>>, %arg3: memref<32x256xbf16, #tpu.memory_space<vmem>>, %arg4: memref<32x1xf32, #tpu.memory_space<vmem>>, %arg5: memref<1x32x196xbf16, #tpu.memory_space<vmem>>) attributes {dimension_semantics = [#tpu.dimension_semantics<parallel>, #tpu.dimension_semantics<parallel>], iteration_bounds = array<i64: 2, 1>, scalar_prefetch = 0 : i64, scratch_operands = 0 : i64, tpu.core_type = #tpu.core_type<tc>, window_params = [{transform_indices = @transform_0, window_bounds = array<i64: 1, 256, 196>}, {pipeline_mode = #tpu.pipeline_mode<synchronous>, transform_indices = @transform_1, window_bounds = array<i64: 32, 256>}, {pipeline_mode = #tpu.pipeline_mode<synchronous>, transform_indices = @transform_2, window_bounds = array<i64: 32, 1>}, {transform_indices = @transform_3, window_bounds = array<i64: 1, 32, 196>}]} {
    %c0 = arith.constant 0 : index
    %c0_0 = arith.constant 0 : index
    %0 = vector.load %arg3[%c0, %c0_0] : memref<32x256xbf16, #tpu.memory_space<vmem>>, vector<32x256xbf16>
    %c0_1 = arith.constant 0 : index
    %c0_2 = arith.constant 0 : index
    %c0_3 = arith.constant 0 : index
    %1 = vector.load %arg2[%c0_1, %c0_2, %c0_3] : memref<1x256x196xbf16, #tpu.memory_space<vmem>>, vector<1x256x196xbf16>
    %2 = vector.shape_cast %1 : vector<1x256x196xbf16> to vector<256x196xbf16>
    %cst = arith.constant dense<0.000000e+00> : vector<32x196xf32>
    %3 = tpu.matmul %0, %2, %cst {dimension_numbers = #tpu.dot_dimension_numbers<[1], [0], [0], [1], [0, 0, 1, 1], [], []>} : vector<32x256xbf16>, vector<256x196xbf16>, vector<32x196xf32> -> vector<32x196xf32>
    %c0_4 = arith.constant 0 : index
    %c0_5 = arith.constant 0 : index
    %4 = vector.load %arg4[%c0_4, %c0_5] : memref<32x1xf32, #tpu.memory_space<vmem>>, vector<32x1xf32>
    %5 = vector.broadcast %4 : vector<32x1xf32> to vector<32x196xf32>
    %6 = arith.addf %3, %5 : vector<32x196xf32>
    %cst_6 = arith.constant 2.000000e-01 : f32
    %7 = vector.broadcast %cst_6 : f32 to vector<32x196xf32>
    %8 = arith.mulf %7, %6 : vector<32x196xf32>
    %9 = arith.maximumf %6, %8 : vector<32x196xf32>
    %10 = arith.truncf %9 : vector<32x196xf32> to vector<32x196xbf16>
    %c0_7 = arith.constant 0 : index
    %c0_8 = arith.constant 0 : index
    %c0_9 = arith.constant 0 : index
    %11 = vector.load %arg5[%c0_7, %c0_8, %c0_9] : memref<1x32x196xbf16, #tpu.memory_space<vmem>>, vector<1x32x196xbf16>
    %12 = vector.shape_cast %11 : vector<1x32x196xbf16> to vector<32x196xbf16>
    %13 = vector.shape_cast %10 : vector<32x196xbf16> to vector<1x32x196xbf16>
    tpu.vector_store %arg5[%c0_7, %c0_8, %c0_9], %13 {strides = array<i32>} : memref<1x32x196xbf16, #tpu.memory_space<vmem>>, vector<1x32x196xbf16>,
    return
  }
  func.func @transform_0(%arg0: i32, %arg1: i32) -> (i32, i32, i32) {
    %c0_i32 = arith.constant 0 : i32
    %c0_i32_0 = arith.constant 0 : i32
    return %arg0, %c0_i32, %arg1 : i32, i32, i32
  }
  func.func @transform_1(%arg0: i32, %arg1: i32) -> (i32, i32) {
    %c0_i32 = arith.constant 0 : i32
    %c0_i32_0 = arith.constant 0 : i32
    %c0_i32_1 = arith.constant 0 : i32
    return %c0_i32, %c0_i32_0 : i32, i32
  }
  func.func @transform_2(%arg0: i32, %arg1: i32) -> (i32, i32) {
    %c0_i32 = arith.constant 0 : i32
    %c0_i32_0 = arith.constant 0 : i32
    %c0_i32_1 = arith.constant 0 : i32
    return %c0_i32, %c0_i32_0 : i32, i32
  }
  func.func @transform_3(%arg0: i32, %arg1: i32) -> (i32, i32, i32) {
    %c0_i32 = arith.constant 0 : i32
    %c0_i32_0 = arith.constant 0 : i32
    return %arg0, %c0_i32, %arg1 : i32, i32, i32
  }
}

module attributes {stable_mosaic.version = 11 : i64} {
  func.func @_tail_kernel(%arg0: i32, %arg1: memref<1x49x512xbf16, #tpu.memory_space<vmem>>, %arg2: memref<512x64xbf16, #tpu.memory_space<vmem>>, %arg3: memref<1x64xf32, #tpu.memory_space<vmem>>, %arg4: memref<64x512xbf16, #tpu.memory_space<vmem>>, %arg5: memref<1x512xf32, #tpu.memory_space<vmem>>, %arg6: memref<512x10xbf16, #tpu.memory_space<vmem>>, %arg7: memref<1x10xf32, #tpu.memory_space<vmem>>, %arg8: memref<1x1x10xf32, #tpu.memory_space<vmem>>) attributes {dimension_semantics = [#tpu.dimension_semantics<parallel>], iteration_bounds = array<i64: 2>, scalar_prefetch = 0 : i64, scratch_operands = 0 : i64, tpu.core_type = #tpu.core_type<tc>, window_params = [{transform_indices = @transform_0, window_bounds = array<i64: 1, 49, 512>}, {pipeline_mode = #tpu.pipeline_mode<synchronous>, transform_indices = @transform_1, window_bounds = array<i64: 512, 64>}, {pipeline_mode = #tpu.pipeline_mode<synchronous>, transform_indices = @transform_2, window_bounds = array<i64: 1, 64>}, {pipeline_mode = #tpu.pipeline_mode<synchronous>, transform_indices = @transform_3, window_bounds = array<i64: 64, 512>}, {pipeline_mode = #tpu.pipeline_mode<synchronous>, transform_indices = @transform_4, window_bounds = array<i64: 1, 512>}, {pipeline_mode = #tpu.pipeline_mode<synchronous>, transform_indices = @transform_5, window_bounds = array<i64: 512, 10>}, {pipeline_mode = #tpu.pipeline_mode<synchronous>, transform_indices = @transform_6, window_bounds = array<i64: 1, 10>}, {transform_indices = @transform_7, window_bounds = array<i64: 1, 1, 10>}]} {
    %c0 = arith.constant 0 : index
    %c0_0 = arith.constant 0 : index
    %c0_1 = arith.constant 0 : index
    %0 = vector.load %arg1[%c0, %c0_0, %c0_1] : memref<1x49x512xbf16, #tpu.memory_space<vmem>>, vector<1x49x512xbf16>
    %1 = vector.shape_cast %0 : vector<1x49x512xbf16> to vector<49x512xbf16>
    %c0_2 = arith.constant 0 : index
    %c0_3 = arith.constant 0 : index
    %2 = vector.load %arg2[%c0_2, %c0_3] : memref<512x64xbf16, #tpu.memory_space<vmem>>, vector<512x64xbf16>
    %cst = arith.constant dense<0.000000e+00> : vector<49x64xf32>
    %3 = tpu.matmul %1, %2, %cst {dimension_numbers = #tpu.dot_dimension_numbers<[1], [0], [0], [1], [0, 0, 1, 1], [], []>} : vector<49x512xbf16>, vector<512x64xbf16>, vector<49x64xf32> -> vector<49x64xf32>
    %c0_4 = arith.constant 0 : index
    %c0_5 = arith.constant 0 : index
    %4 = vector.load %arg3[%c0_4, %c0_5] : memref<1x64xf32, #tpu.memory_space<vmem>>, vector<1x64xf32>
    %5 = vector.broadcast %4 : vector<1x64xf32> to vector<49x64xf32>
    %6 = arith.addf %3, %5 : vector<49x64xf32>
    %cst_6 = arith.constant 2.000000e-01 : f32
    %7 = vector.broadcast %cst_6 : f32 to vector<49x64xf32>
    %8 = arith.mulf %7, %6 : vector<49x64xf32>
    %9 = arith.maximumf %6, %8 : vector<49x64xf32>
    %cst_7 = arith.constant dense<0.000000e+00> : vector<64xf32>
    %10 = vector.multi_reduction <add>, %9, %cst_7 [0] : vector<49x64xf32> to vector<64xf32>
    %11 = vector.shape_cast %10 : vector<64xf32> to vector<1x64xf32>
    %cst_8 = arith.constant 4.900000e+01 : f32
    %12 = vector.broadcast %cst_8 : f32 to vector<1x64xf32>
    %13 = arith.divf %11, %12 : vector<1x64xf32>
    %14 = arith.truncf %13 : vector<1x64xf32> to vector<1x64xbf16>
    %c0_9 = arith.constant 0 : index
    %c0_10 = arith.constant 0 : index
    %15 = vector.load %arg4[%c0_9, %c0_10] : memref<64x512xbf16, #tpu.memory_space<vmem>>, vector<64x512xbf16>
    %cst_11 = arith.constant dense<0.000000e+00> : vector<1x512xf32>
    %16 = tpu.matmul %14, %15, %cst_11 {dimension_numbers = #tpu.dot_dimension_numbers<[1], [0], [0], [1], [0, 0, 1, 1], [], []>} : vector<1x64xbf16>, vector<64x512xbf16>, vector<1x512xf32> -> vector<1x512xf32>
    %c0_12 = arith.constant 0 : index
    %c0_13 = arith.constant 0 : index
    %17 = vector.load %arg5[%c0_12, %c0_13] : memref<1x512xf32, #tpu.memory_space<vmem>>, vector<1x512xf32>
    %18 = arith.addf %16, %17 : vector<1x512xf32>
    %19 = arith.truncf %18 : vector<1x512xf32> to vector<1x512xbf16>
    %c0_14 = arith.constant 0 : index
    %c0_15 = arith.constant 0 : index
    %20 = vector.load %arg6[%c0_14, %c0_15] : memref<512x10xbf16, #tpu.memory_space<vmem>>, vector<512x10xbf16>
    %cst_16 = arith.constant dense<0.000000e+00> : vector<1x10xf32>
    %21 = tpu.matmul %19, %20, %cst_16 {dimension_numbers = #tpu.dot_dimension_numbers<[1], [0], [0], [1], [0, 0, 1, 1], [], []>} : vector<1x512xbf16>, vector<512x10xbf16>, vector<1x10xf32> -> vector<1x10xf32>
    %c0_17 = arith.constant 0 : index
    %c0_18 = arith.constant 0 : index
    %22 = vector.load %arg7[%c0_17, %c0_18] : memref<1x10xf32, #tpu.memory_space<vmem>>, vector<1x10xf32>
    %23 = arith.addf %21, %22 : vector<1x10xf32>
    %c0_19 = arith.constant 0 : index
    %c0_20 = arith.constant 0 : index
    %c0_21 = arith.constant 0 : index
    %24 = vector.load %arg8[%c0_19, %c0_20, %c0_21] : memref<1x1x10xf32, #tpu.memory_space<vmem>>, vector<1x1x10xf32>
    %25 = vector.shape_cast %24 : vector<1x1x10xf32> to vector<1x10xf32>
    %26 = vector.shape_cast %23 : vector<1x10xf32> to vector<1x1x10xf32>
    tpu.vector_store %arg8[%c0_19, %c0_20, %c0_21], %26 {strides = array<i32>} : memref<1x1x10xf32, #tpu.memory_space<vmem>>, vector<1x1x10xf32>,
    return
  }
  func.func @transform_0(%arg0: i32) -> (i32, i32, i32) {
    %c0_i32 = arith.constant 0 : i32
    %c0_i32_0 = arith.constant 0 : i32
    %c0_i32_1 = arith.constant 0 : i32
    return %arg0, %c0_i32, %c0_i32_0 : i32, i32, i32
  }
  func.func @transform_1(%arg0: i32) -> (i32, i32) {
    %c0_i32 = arith.constant 0 : i32
    %c0_i32_0 = arith.constant 0 : i32
    %c0_i32_1 = arith.constant 0 : i32
    return %c0_i32, %c0_i32_0 : i32, i32
  }
  func.func @transform_2(%arg0: i32) -> (i32, i32) {
    %c0_i32 = arith.constant 0 : i32
    %c0_i32_0 = arith.constant 0 : i32
    %c0_i32_1 = arith.constant 0 : i32
    return %c0_i32, %c0_i32_0 : i32, i32
  }
  func.func @transform_3(%arg0: i32) -> (i32, i32) {
    %c0_i32 = arith.constant 0 : i32
    %c0_i32_0 = arith.constant 0 : i32
    %c0_i32_1 = arith.constant 0 : i32
    return %c0_i32, %c0_i32_0 : i32, i32
  }
  func.func @transform_4(%arg0: i32) -> (i32, i32) {
    %c0_i32 = arith.constant 0 : i32
    %c0_i32_0 = arith.constant 0 : i32
    %c0_i32_1 = arith.constant 0 : i32
    return %c0_i32, %c0_i32_0 : i32, i32
  }
  func.func @transform_5(%arg0: i32) -> (i32, i32) {
    %c0_i32 = arith.constant 0 : i32
    %c0_i32_0 = arith.constant 0 : i32
    %c0_i32_1 = arith.constant 0 : i32
    return %c0_i32, %c0_i32_0 : i32, i32
  }
  func.func @transform_6(%arg0: i32) -> (i32, i32) {
    %c0_i32 = arith.constant 0 : i32
    %c0_i32_0 = arith.constant 0 : i32
    %c0_i32_1 = arith.constant 0 : i32
    return %c0_i32, %c0_i32_0 : i32, i32
  }
  func.func @transform_7(%arg0: i32) -> (i32, i32, i32) {
    %c0_i32 = arith.constant 0 : i32
    %c0_i32_0 = arith.constant 0 : i32
    %c0_i32_1 = arith.constant 0 : i32
    return %arg0, %c0_i32, %c0_i32_0 : i32, i32, i32
  }
}

</mosaic_0001>

<bundles_post_ra>
// kernel: class_contra_net_forward.4
= control target key start
LH: loop header
LB: loop body
LE: loop exit
PB: predicated region body
PF: predicated region fallthrough
CT: control target
= control target key end

     0   :  { %s2436_s12 = smov 0   ;;  %s2438_s13 = smov 0   ;;  %s2842_s0 = inlined_call_operand.vmem [shape: bf16[2,16,12544], index: 0, kind: input, shape index: {}]   ;;  %s2843_s1 = inlined_call_operand.vmem [shape: bf16[8,16], index: 1, kind: input, shape index: {}]   ;;  %s2844_s2 = inlined_call_operand.vmem [shape: f32[8,1], index: 2, kind: input, shape index: {}]   ;;  %s2845_s3 = inlined_call_operand.vmem [shape: bf16[2,8,12544], index: 3, kind: output, shape index: {}]  }
   0x1   :  { %s2440_s14 = smov 0   ;;  %s2442_s15 = smov 0  }
   0x2   :  { %s2444_s16 = smov 0   ;;  %s2446_s17 = smov 0  }
   0x3   :  { %s2448_s18 = smov 0  }
   0x4 LB: > { %s22_s19 = sadd.s32 1, %s2403_s16  ;;  %s25_s20 = sadd.s32 1, %s2407_s17  ;;  %s2411_s18 = sphi %s2448_s18, %s13_s18   ;;  %s2407_s17 = sphi %s2446_s17, %s2851_s17   ;;  %s2403_s16 = sphi %s2444_s16, %s2850_s16   ;;  %s2399_s15 = sphi %s2442_s15, %s2849_s15   ;;  %s2395_s14 = sphi %s2440_s14, %s2848_s14   ;;  %s2391_s13 = sphi %s2438_s13, %s2847_s13   ;;  %s2387_s12 = sphi %s2436_s12, %s2846_s12  }
   0x5   : > { %p23_p0 = scmp.ge.s32.totalorder %s22_s19, 2  ;;  %p41_p1 = scmp.ne.s32.totalorder %s2391_s13, %s2387_s12 }
   0x6   : > { %p42_p2 = scmp.eq.s32.totalorder %s2411_s18, 0  ;;  %s34_s24 = sadd.s32 1, %s2391_s13 }
   0x7   : > { %s2853_s19 = smov (%p23_p0, %s22_s19), 0  ;;  %s2855_s20 = smov (!%p23_p0, %s25_s20), %s2407_s17 }
   0x8   : > { %p43_p3 = por %p42_p2, %p41_p1  ;;  %p27_p4 = scmp.ge.s32.totalorder %s2855_s20, 2 }
   0x9   : > { %s30_s21 = ssub.s32 %s2403_s16, %s2853_s19  ;;  %p2078_p6 = scmp.ge.s32.totalorder %s2411_s18, 4 }
   0xa   : > { %s2857_s20 = smov (%p27_p4, %s2855_s20), 0 }
   0xb   : > { %s29_s22 = ssub.s32 %s2407_s17, %s2857_s20  ;;  %143 = sbr.rel (%p2078_p6) target bundleno = 52 (0x34), region = 24 }
   0xc   : > { %s31_s23 = sor.u32 %s30_s21, %s29_s22 }
   0xd   : > { %p32_p5 = scmp.eq.s32.totalorder %s31_s23, 0 }
   0xf   : > { %s2487_s25 = scalar_select %p32_p5, %s2391_s13, %s34_s24  }
  0x12   : > { %146 = sbr.rel (!%p43_p3) target bundleno = 52 (0x34), region = 28  ;;  %s148_s26 = sand.u32 (%p43_p3), 1, %s2391_s13  }
  0x13   : > { %s151_s27 = smul.u32 (%p43_p3), 49, %s2403_s16 }
  0x14   : > { %s2220_s28 = smul.u32 (%p43_p3), 392, %s148_s26 }
  0x15   : > { %s2221_s29 = smul.u32 (%p43_p3), 196, %s2407_s17 }
  0x16   : > { %s2501_s8 = scalar_lea.vmem (%p43_p3), [#allocation2], %s2220_s28 }
  0x17   : > { %s153_s30 = sadd.s32 (%p43_p3), %s2221_s29, %s151_s27 }
  0x18   : > { %s2079_s4 = sshll.u32 (%p43_p3), %s153_s30, 2 }
  0x19   : > { %s2496_s7 = scalar_lea.vmem %s2842_s0, %s2079_s4 }
  0x1a   : > { %v170_v0 = vld [vmem:[%s2496_s7] sm:$0xff]  ;;  %v172_v1 = vld [vmem:[%s2496_s7 + $0x8] sm:$0xff]  ;;  %v174_v2 = vld [vmem:[%s2496_s7 + $0x10] sm:$0xff] }
  0x1b   : > { %171 = vst [vmem:[%s2501_s8] sm:$0xff] %v170_v0  ;;  %173 = vst [vmem:[%s2501_s8 + $0x8] sm:$0xff] %v172_v1  ;;  %v176_v3 = vld [vmem:[%s2496_s7 + $0x18] sm:$0xff]  ;;  %v178_v4 = vld [vmem:[%s2496_s7 + $0x20] sm:$0xff] }
  0x1c   : > { %175 = vst [vmem:[%s2501_s8 + $0x10] sm:$0xff] %v174_v2  ;;  %v180_v5 = vld [vmem:[%s2496_s7 + $0x28] sm:$0xff]  ;;  %177 = vst [vmem:[%s2501_s8 + $0x18] sm:$0xff] %v176_v3  ;;  %v182_v6 = vld [vmem:[%s2496_s7 + $0x30] sm:$0xff] }
  0x1d   : > { %179 = vst [vmem:[%s2501_s8 + $0x20] sm:$0xff] %v178_v4  ;;  %181 = vst [vmem:[%s2501_s8 + $0x28] sm:$0xff] %v180_v5  ;;  %v184_v7 = vld [vmem:[%s2496_s7 + $0x38] sm:$0xff]  ;;  %v186_v8 = vld [vmem:[%s2496_s7 + $0x40] sm:$0xff] }
  0x1e   : > { %183 = vst [vmem:[%s2501_s8 + $0x30] sm:$0xff] %v182_v6  ;;  %185 = vst [vmem:[%s2501_s8 + $0x38] sm:$0xff] %v184_v7  ;;  %v188_v9 = vld [vmem:[%s2496_s7 + $0x48] sm:$0xff]  ;;  %v190_v10 = vld [vmem:[%s2496_s7 + $0x50] sm:$0xff] }
  0x1f   : > { %187 = vst [vmem:[%s2501_s8 + $0x40] sm:$0xff] %v186_v8  ;;  %v192_v11 = vld [vmem:[%s2496_s7 + $0x58] sm:$0xff]  ;;  %189 = vst [vmem:[%s2501_s8 + $0x48] sm:$0xff] %v188_v9  ;;  %v194_v12 = vld [vmem:[%s2496_s7 + $0x60] sm:$0xff] }
  0x20   : > { %191 = vst [vmem:[%s2501_s8 + $0x50] sm:$0xff] %v190_v10  ;;  %193 = vst [vmem:[%s2501_s8 + $0x58] sm:$0xff] %v192_v11  ;;  %v196_v13 = vld [vmem:[%s2496_s7 + $0x68] sm:$0xff]  ;;  %v198_v14 = vld [vmem:[%s2496_s7 + $0x70] sm:$0xff] }
  0x21   : > { %195 = vst [vmem:[%s2501_s8 + $0x60] sm:$0xff] %v194_v12  ;;  %197 = vst [vmem:[%s2501_s8 + $0x68] sm:$0xff] %v196_v13  ;;  %v200_v15 = vld [vmem:[%s2496_s7 + $0x78] sm:$0xff]  ;;  %v202_v16 = vld [vmem:[%s2496_s7 + $0x80] sm:$0xff] }
  0x22   : > { %199 = vst [vmem:[%s2501_s8 + $0x70] sm:$0xff] %v198_v14  ;;  %v204_v17 = vld [vmem:[%s2496_s7 + $0x88] sm:$0xff]  ;;  %201 = vst [vmem:[%s2501_s8 + $0x78] sm:$0xff] %v200_v15  ;;  %v206_v18 = vld [vmem:[%s2496_s7 + $0x90] sm:$0xff] }
  0x23   : > { %203 = vst [vmem:[%s2501_s8 + $0x80] sm:$0xff] %v202_v16  ;;  %205 = vst [vmem:[%s2501_s8 + $0x88] sm:$0xff] %v204_v17  ;;  %v208_v19 = vld [vmem:[%s2496_s7 + $0x98] sm:$0xff]  ;;  %v210_v20 = vld [vmem:[%s2496_s7 + $0xa0] sm:$0xff] }
  0x24   : > { %207 = vst [vmem:[%s2501_s8 + $0x90] sm:$0xff] %v206_v18  ;;  %209 = vst [vmem:[%s2501_s8 + $0x98] sm:$0xff] %v208_v19  ;;  %v212_v21 = vld [vmem:[%s2496_s7 + $0xa8] sm:$0xff]  ;;  %v214_v22 = vld [vmem:[%s2496_s7 + $0xb0] sm:$0xff] }
  0x25   : > { %211 = vst [vmem:[%s2501_s8 + $0xa0] sm:$0xff] %v210_v20  ;;  %v216_v23 = vld [vmem:[%s2496_s7 + $0xb8] sm:$0xff]  ;;  %213 = vst [vmem:[%s2501_s8 + $0xa8] sm:$0xff] %v212_v21  ;;  %v218_v24 = vld [vmem:[%s2496_s7 + $0x188] sm:$0xff] }
  0x26   : > { %215 = vst [vmem:[%s2501_s8 + $0xb0] sm:$0xff] %v214_v22  ;;  %217 = vst [vmem:[%s2501_s8 + $0xb8] sm:$0xff] %v216_v23  ;;  %v220_v25 = vld [vmem:[%s2496_s7 + $0x190] sm:$0xff]  ;;  %v222_v26 = vld [vmem:[%s2496_s7 + $0x198] sm:$0xff] }
  0x27   : > { %219 = vst [vmem:[%s2501_s8 + $0xc4] sm:$0xff] %v218_v24  ;;  %221 = vst [vmem:[%s2501_s8 + $0xcc] sm:$0xff] %v220_v25  ;;  %v224_v27 = vld [vmem:[%s2496_s7 + $0x1a0] sm:$0xff]  ;;  %v226_v28 = vld [vmem:[%s2496_s7 + $0x1a8] sm:$0xff] }
  0x28   : > { %223 = vst [vmem:[%s2501_s8 + $0xd4] sm:$0xff] %v222_v26  ;;  %v228_v29 = vld [vmem:[%s2496_s7 + $0x1b0] sm:$0xff]  ;;  %225 = vst [vmem:[%s2501_s8 + $0xdc] sm:$0xff] %v224_v27  ;;  %v230_v30 = vld [vmem:[%s2496_s7 + $0x1b8] sm:$0xff] }
  0x29   : > { %227 = vst [vmem:[%s2501_s8 + $0xe4] sm:$0xff] %v226_v28  ;;  %229 = vst [vmem:[%s2501_s8 + $0xec] sm:$0xff] %v228_v29  ;;  %v232_v31 = vld [vmem:[%s2496_s7 + $0x1c0] sm:$0xff]  ;;  %v234_v32 = vld [vmem:[%s2496_s7 + $0x1c8] sm:$0xff] }
  0x2a   : > { %231 = vst [vmem:[%s2501_s8 + $0xf4] sm:$0xff] %v230_v30  ;;  %233 = vst [vmem:[%s2501_s8 + $0xfc] sm:$0xff] %v232_v31  ;;  %v236_v33 = vld [vmem:[%s2496_s7 + $0x1d0] sm:$0xff]  ;;  %v238_v34 = vld [vmem:[%s2496_s7 + $0x1d8] sm:$0xff] }
  0x2b   : > { %235 = vst [vmem:[%s2501_s8 + $0x104] sm:$0xff] %v234_v32  ;;  %v240_v35 = vld [vmem:[%s2496_s7 + $0x1e0] sm:$0xff]  ;;  %237 = vst [vmem:[%s2501_s8 + $0x10c] sm:$0xff] %v236_v33  ;;  %v242_v36 = vld [vmem:[%s2496_s7 + $0x1e8] sm:$0xff] }
  0x2c   : > { %239 = vst [vmem:[%s2501_s8 + $0x114] sm:$0xff] %v238_v34  ;;  %241 = vst [vmem:[%s2501_s8 + $0x11c] sm:$0xff] %v240_v35  ;;  %v244_v37 = vld [vmem:[%s2496_s7 + $0x1f0] sm:$0xff]  ;;  %v246_v38 = vld [vmem:[%s2496_s7 + $0x1f8] sm:$0xff] }
  0x2d   : > { %243 = vst [vmem:[%s2501_s8 + $0x124] sm:$0xff] %v242_v36  ;;  %245 = vst [vmem:[%s2501_s8 + $0x12c] sm:$0xff] %v244_v37  ;;  %v248_v39 = vld [vmem:[%s2496_s7 + $0x200] sm:$0xff]  ;;  %v250_v40 = vld [vmem:[%s2496_s7 + $0x208] sm:$0xff] }
  0x2e   : > { %247 = vst [vmem:[%s2501_s8 + $0x134] sm:$0xff] %v246_v38  ;;  %v252_v41 = vld [vmem:[%s2496_s7 + $0x210] sm:$0xff]  ;;  %249 = vst [vmem:[%s2501_s8 + $0x13c] sm:$0xff] %v248_v39  ;;  %v254_v42 = vld [vmem:[%s2496_s7 + $0x218] sm:$0xff] }
  0x2f   : > { %251 = vst [vmem:[%s2501_s8 + $0x144] sm:$0xff] %v250_v40  ;;  %253 = vst [vmem:[%s2501_s8 + $0x14c] sm:$0xff] %v252_v41  ;;  %v256_v43 = vld [vmem:[%s2496_s7 + $0x220] sm:$0xff]  ;;  %v258_v44 = vld [vmem:[%s2496_s7 + $0x228] sm:$0xff] }
  0x30   : > { %255 = vst [vmem:[%s2501_s8 + $0x154] sm:$0xff] %v254_v42  ;;  %257 = vst [vmem:[%s2501_s8 + $0x15c] sm:$0xff] %v256_v43  ;;  %v260_v45 = vld [vmem:[%s2496_s7 + $0x230] sm:$0xff]  ;;  %v262_v46 = vld [vmem:[%s2496_s7 + $0x238] sm:$0xff] }
  0x31   : > { %259 = vst [vmem:[%s2501_s8 + $0x164] sm:$0xff] %v258_v44  ;;  %v264_v47 = vld [vmem:[%s2496_s7 + $0x240] sm:$0xff]  ;;  %261 = vst [vmem:[%s2501_s8 + $0x16c] sm:$0xff] %v260_v45  ;;  %v2082_v49 = vld [vmem:[%s2496_s7 + $0x248] sm:$0xf] }
  0x32   : > { %263 = vst [vmem:[%s2501_s8 + $0x174] sm:$0xff] %v262_v46  ;;  %265 = vst [vmem:[%s2501_s8 + $0x17c] sm:$0xff] %v264_v47  ;;  %v2080_v48 = vld [vmem:[%s2496_s7 + $0xc0] sm:$0xf] }
  0x33   : > { %2081 = vst [vmem:[%s2501_s8 + $0xc0] sm:$0xf] %v2080_v48  ;;  %2083 = vst [vmem:[%s2501_s8 + $0x184] sm:$0xf] %v2082_v49 }
  0x34 PF: > { %p2084_p7 = scmp.ge.s32.totalorder %s2411_s18, 1  ;;  %p281_p8 = scmp.lt.s32.totalorder %s2411_s18, 5 }
  0x36   : > { %p282_p9 = pnand %p2084_p7, %p281_p8 }
  0x37   : > { %s288_s9 = sand.u32 (!%p282_p9), 1, %s2387_s12   ;;  %v378_v50 = vld [vmem:[%s2844_s2] sm:$0xff] (!%p282_p9)  ;;  %v2413_v51 = vmov (!%p282_p9), 0   ;;  %vm630_vm0 = vcmask (!%p282_p9), 130048   ;;  %v2414_v37 = vmov (!%p282_p9), 0.0   ;;  %vm2415_vm1 = vmmov (!%p282_p9), 0  }
  0x38   : > { %285 = sbr.rel (%p282_p9) target bundleno = 382 (0x17e), region = 54  ;;  %666 = vmatprep.mubr.bf16.mxu0 (!%p282_p9), %v2413_v51  ;;  %707 = vmatprep.mubr.bf16.mxu1 (!%p282_p9), %v2413_v51  ;;  %v2616_v54 = vld [vmem:[%s2843_s1] sm:$0xf] (!%p282_p9)  ;;  %p317_p10 = scmp.lt.s32.totalorder (!%p282_p9), %s2399_s15, 1 }
  0x39   : > { %s2222_s21 = smul.u32 (!%p282_p9), 392, %s288_s9  ;;  %2283 = vset.pattern.permute.xlu0 (!%p282_p9), %v2413_v51 }
  0x3a   : > { %381 = vperm.xlu0 (!%p282_p9), %2283, %v378_v50   ;;  %s316_s24 = smul.u32 (!%p282_p9), 49, %s2395_s14 }
  0x3b   : > { %s2609_s22 = scalar_lea.vmem (!%p282_p9), [#allocation2], %s2222_s21 }
  0x3c   : > { %v2284_v52 = vld [vmem:[%s2609_s22 + $0x4] ss:$196 sps:$4 sm:$0xff] (!%p282_p9)   ;;  %v2287_v55 = vld [vmem:[%s2609_s22 + $0x10] ss:$196 sps:$4 sm:$0xff] (!%p282_p9)   ;;  %v2295_v59 = vld [vmem:[%s2609_s22 + $0x1c] ss:$196 sps:$4 sm:$0xff] (!%p282_p9)  }
  0x3d   : > { %v2286_v53 = vld [vmem:[%s2609_s22] ss:$196 sps:$4 sm:$0xff] (!%p282_p9)   ;;  %634 = vmatprep.subr.bf16.mxu0 (!%p282_p9), %v2284_v52  ;;  %v2289_v56 = vld [vmem:[%s2609_s22 + $0x14] ss:$196 sps:$4 sm:$0xff] (!%p282_p9)   ;;  %v2290_v57 = vld [vmem:[%s2609_s22 + $0xc] ss:$196 sps:$4 sm:$0xff] (!%p282_p9)  }
  0x3e   : > { %635 = vmatpush1.bf16.msra.mxu0 (!%p282_p9), %v2286_v53  ;;  %v2292_v58 = vld [vmem:[%s2609_s22 + $0x8] ss:$196 sps:$4 sm:$0xff] (!%p282_p9)   ;;  %675 = vmatprep.subr.bf16.mxu1 (!%p282_p9), %v2290_v57  ;;  %v2293_v60 = vld [vmem:[%s2609_s22 + $0x18] ss:$196 sps:$4 sm:$0xff] (!%p282_p9)   ;;  %v2296_v63 = vld [vmem:[%s2609_s22 + $0x20] ss:$196 sps:$4 sm:$0xff] (!%p282_p9)  }
  0x3f   : > { %716 = vmatprep.subr.bf16.mxu0 %v2289_v56  ;;  %676 = vmatpush1.bf16.msra.mxu1 %v2292_v58  ;;  %v2298_v61 = vld [vmem:[%s2609_s22 + $0x24] ss:$196 sps:$4 sm:$0xff]   ;;  %v2301_v62 = vld [vmem:[%s2609_s22 + $0x2c] ss:$196 sps:$4 sm:$0xff]   ;;  %v2304_v0 = vld [vmem:[%s2609_s22 + $0x34] ss:$196 sps:$4 sm:$0xff]  }
  0x40   : > { %757 = vmatprep.subr.bf16.mxu1 %v2295_v59  ;;  %v2299_v1 = vld [vmem:[%s2609_s22 + $0x28] ss:$196 sps:$4 sm:$0xff]   ;;  %v2307_v2 = vld [vmem:[%s2609_s22 + $0x3c] ss:$196 sps:$4 sm:$0xff]   ;;  %v2302_v3 = vld [vmem:[%s2609_s22 + $0x30] ss:$196 sps:$4 sm:$0xff]  }
  0x41   : > { %2135 = vmatmul.mubr.msk.bf16.vlgmr.msra.gmra.mrb[0].mxu0 %vm630_vm0, %v2616_v54  ;;  %v2310_v4 = vld [vmem:[%s2609_s22 + $0x44] ss:$196 sps:$4 sm:$0xff]   ;;  %v2305_v5 = vld [vmem:[%s2609_s22 + $0x38] ss:$196 sps:$4 sm:$0xff]   ;;  %v2313_v6 = vld [vmem:[%s2609_s22 + $0x4c] ss:$196 sps:$4 sm:$0xff]  }
  0x42   : > { %717 = vmatpush1.bf16.msra.mxu0 %v2287_v55  ;;  %748 = vmatprep.mubr.bf16.mxu0 %v2413_v51  ;;  %v2308_v7 = vld [vmem:[%s2609_s22 + $0x40] ss:$196 sps:$4 sm:$0xff]   ;;  %v2316_v8 = vld [vmem:[%s2609_s22 + $0x54] ss:$196 sps:$4 sm:$0xff]   ;;  %v2311_v9 = vld [vmem:[%s2609_s22 + $0x48] ss:$196 sps:$4 sm:$0xff]  }
  0x43   : > { %798 = vmatprep.subr.bf16.mxu0 %v2298_v61  ;;  %2136 = vmatmul.mubr.msk.bf16.vlgmr.msra.gmra.mrb[0].mxu1 %vm630_vm0, %v2616_v54  ;;  %v2319_v10 = vld [vmem:[%s2609_s22 + $0x5c] ss:$196 sps:$4 sm:$0xff]   ;;  %v2314_v11 = vld [vmem:[%s2609_s22 + $0x50] ss:$196 sps:$4 sm:$0xff]   ;;  %v2322_v12 = vld [vmem:[%s2609_s22 + $0x64] ss:$196 sps:$4 sm:$0xff]  }
  0x44   : > { %758 = vmatpush1.bf16.msra.mxu1 %v2293_v60  ;;  %789 = vmatprep.mubr.bf16.mxu1 %v2413_v51  ;;  %v2317_v13 = vld [vmem:[%s2609_s22 + $0x58] ss:$196 sps:$4 sm:$0xff]   ;;  %v2325_v14 = vld [vmem:[%s2609_s22 + $0x6c] ss:$196 sps:$4 sm:$0xff]   ;;  %v2320_v15 = vld [vmem:[%s2609_s22 + $0x60] ss:$196 sps:$4 sm:$0xff]  }
  0x45   : > { %839 = vmatprep.subr.bf16.mxu1 %v2301_v62  ;;  %v2328_v16 = vld [vmem:[%s2609_s22 + $0x74] ss:$196 sps:$4 sm:$0xff]   ;;  %v2323_v17 = vld [vmem:[%s2609_s22 + $0x68] ss:$196 sps:$4 sm:$0xff]   ;;  %v2331_v18 = vld [vmem:[%s2609_s22 + $0x7c] ss:$196 sps:$4 sm:$0xff]  }
  0x46   : > { %v2326_v19 = vld [vmem:[%s2609_s22 + $0x70] ss:$196 sps:$4 sm:$0xff]   ;;  %v2334_v20 = vld [vmem:[%s2609_s22 + $0x84] ss:$196 sps:$4 sm:$0xff]   ;;  %v2329_v21 = vld [vmem:[%s2609_s22 + $0x78] ss:$196 sps:$4 sm:$0xff]  }
  0x47   : > { %v2337_v22 = vld [vmem:[%s2609_s22 + $0x8c] ss:$196 sps:$4 sm:$0xff]   ;;  %v2332_v23 = vld [vmem:[%s2609_s22 + $0x80] ss:$196 sps:$4 sm:$0xff]   ;;  %v2340_v24 = vld [vmem:[%s2609_s22 + $0x94] ss:$196 sps:$4 sm:$0xff]  }
  0x48   : > { %v2335_v25 = vld [vmem:[%s2609_s22 + $0x88] ss:$196 sps:$4 sm:$0xff]   ;;  %v2343_v26 = vld [vmem:[%s2609_s22 + $0x9c] ss:$196 sps:$4 sm:$0xff]   ;;  %v2338_v27 = vld [vmem:[%s2609_s22 + $0x90] ss:$196 sps:$4 sm:$0xff]  }
  0x49   : > { %2137 = vmatmul.mubr.msk.bf16.vlgmr.msra.gmra.mrb[4].mxu0 %vm630_vm0, %v2616_v54  ;;  %v2346_v28 = vld [vmem:[%s2609_s22 + $0xa4] ss:$196 sps:$4 sm:$0xff]   ;;  %v2341_v29 = vld [vmem:[%s2609_s22 + $0x98] ss:$196 sps:$4 sm:$0xff]   ;;  %v2349_v30 = vld [vmem:[%s2609_s22 + $0xac] ss:$196 sps:$4 sm:$0xff]  }
  0x4a   : > { %799 = vmatpush1.bf16.msra.mxu0 %v2296_v63  ;;  %830 = vmatprep.mubr.bf16.mxu0 %v2413_v51  ;;  %v2344_v31 = vld [vmem:[%s2609_s22 + $0xa0] ss:$196 sps:$4 sm:$0xff]   ;;  %v2352_v32 = vld [vmem:[%s2609_s22 + $0xb4] ss:$196 sps:$4 sm:$0xff]   ;;  %v2347_v33 = vld [vmem:[%s2609_s22 + $0xa8] ss:$196 sps:$4 sm:$0xff]  }
  0x4b   : > { %880 = vmatprep.subr.bf16.mxu0 %v2304_v0  ;;  %2138 = vmatmul.mubr.msk.bf16.vlgmr.msra.gmra.mrb[4].mxu1 %vm630_vm0, %v2616_v54  ;;  %v2355_v34 = vld [vmem:[%s2609_s22 + $0xbc] ss:$196 sps:$4 sm:$0xff]   ;;  %v2350_v35 = vld [vmem:[%s2609_s22 + $0xb0] ss:$196 sps:$4 sm:$0xff]   ;;  %s2859_s15 = smov (!%p317_p10, %s2399_s15), 1  ;;  %p319_p11 = scmp.lt.s32.totalorder %s316_s24, 97 }
  0x4c   : > { %840 = vmatpush1.bf16.msra.mxu1 %v2299_v1  ;;  %871 = vmatprep.mubr.bf16.mxu1 %v2413_v51  ;;  %v2353_v36 = vld [vmem:[%s2609_s22 + $0xb8] ss:$196 sps:$4 sm:$0xff]   ;;  %v2356_v38 = vld [vmem:[%s2609_s22 + $0xc0] ss:$196 sps:$4 sm:$0xff]   ;;  %s2223_s26 = smul.u32 98, %s2859_s15 }
  0x4d   : > { %921 = vmatprep.subr.bf16.mxu1 %v2307_v2  ;;  %s2861_s24 = smov (!%p319_p11, %s316_s24), 97 }
  0x4e   : > { %s322_s27 = sadd.s32 %s2223_s26, %s2861_s24 }
  0x4f   : > { %s2085_s28 = sshll.u32 %s322_s27, 2 }
  0x50   : > { %s2749_s29 = scalar_lea.vmem %s2845_s3, %s2085_s28 }
  0x51   : > { %2139 = vmatmul.mubr.msk.bf16.vlgmr.msra.gmra.mrb[8].mxu0 %vm630_vm0, %v2616_v54 }
  0x52   : > { %881 = vmatpush1.bf16.msra.mxu0 %v2302_v3  ;;  %912 = vmatprep.mubr.bf16.mxu0 %v2413_v51 }
  0x53   : > { %962 = vmatprep.subr.bf16.mxu0 %v2310_v4  ;;  %2140 = vmatmul.mubr.msk.bf16.vlgmr.msra.gmra.mrb[8].mxu1 %vm630_vm0, %v2616_v54 }
  0x54   : > { %922 = vmatpush1.bf16.msra.mxu1 %v2305_v5  ;;  %953 = vmatprep.mubr.bf16.mxu1 %v2413_v51 }
  0x55   : > { %1003 = vmatprep.subr.bf16.mxu1 %v2313_v6 }
  0x59   : > { %2141 = vmatmul.mubr.msk.bf16.vlgmr.msra.gmra.mrb[12].mxu0 %vm630_vm0, %v2616_v54 }
  0x5a   : > { %963 = vmatpush1.bf16.msra.mxu0 %v2308_v7  ;;  %994 = vmatprep.mubr.bf16.mxu0 %v2413_v51 }
  0x5b   : > { %1044 = vmatprep.subr.bf16.mxu0 %v2316_v8  ;;  %2142 = vmatmul.mubr.msk.bf16.vlgmr.msra.gmra.mrb[12].mxu1 %vm630_vm0, %v2616_v54 }
  0x5c   : > { %1004 = vmatpush1.bf16.msra.mxu1 %v2311_v9  ;;  %1035 = vmatprep.mubr.bf16.mxu1 %v2413_v51 }
  0x5d   : > { %1085 = vmatprep.subr.bf16.mxu1 %v2319_v10 }
  0x61   : > { %2143 = vmatmul.mubr.msk.bf16.vlgmr.msra.gmra.mrb[16].mxu0 %vm630_vm0, %v2616_v54 }
  0x62   : > { %1045 = vmatpush1.bf16.msra.mxu0 %v2314_v11  ;;  %1076 = vmatprep.mubr.bf16.mxu0 %v2413_v51 }
  0x63   : > { %1126 = vmatprep.subr.bf16.mxu0 %v2322_v12  ;;  %2144 = vmatmul.mubr.msk.bf16.vlgmr.msra.gmra.mrb[16].mxu1 %vm630_vm0, %v2616_v54 }
  0x64   : > { %1086 = vmatpush1.bf16.msra.mxu1 %v2317_v13  ;;  %1117 = vmatprep.mubr.bf16.mxu1 %v2413_v51 }
  0x65   : > { %1167 = vmatprep.subr.bf16.mxu1 %v2325_v14 }
  0x69   : > { %2145 = vmatmul.mubr.msk.bf16.vlgmr.msra.gmra.mrb[20].mxu0 %vm630_vm0, %v2616_v54 }
  0x6a   : > { %1127 = vmatpush1.bf16.msra.mxu0 %v2320_v15  ;;  %1158 = vmatprep.mubr.bf16.mxu0 %v2413_v51 }
  0x6b   : > { %1208 = vmatprep.subr.bf16.mxu0 %v2328_v16  ;;  %2146 = vmatmul.mubr.msk.bf16.vlgmr.msra.gmra.mrb[20].mxu1 %vm630_vm0, %v2616_v54 }
  0x6c   : > { %1168 = vmatpush1.bf16.msra.mxu1 %v2323_v17  ;;  %1199 = vmatprep.mubr.bf16.mxu1 %v2413_v51 }
  0x6d   : > { %1249 = vmatprep.subr.bf16.mxu1 %v2331_v18 }
  0x71   : > { %2147 = vmatmul.mubr.msk.bf16.vlgmr.msra.gmra.mrb[24].mxu0 %vm630_vm0, %v2616_v54 }
  0x72   : > { %1209 = vmatpush1.bf16.msra.mxu0 %v2326_v19  ;;  %1240 = vmatprep.mubr.bf16.mxu0 %v2413_v51 }
  0x73   : > { %1290 = vmatprep.subr.bf16.mxu0 %v2334_v20  ;;  %2148 = vmatmul.mubr.msk.bf16.vlgmr.msra.gmra.mrb[24].mxu1 %vm630_vm0, %v2616_v54 }
  0x74   : > { %1250 = vmatpush1.bf16.msra.mxu1 %v2329_v21  ;;  %1281 = vmatprep.mubr.bf16.mxu1 %v2413_v51 }
  0x75   : > { %1331 = vmatprep.subr.bf16.mxu1 %v2337_v22 }
  0x79   : > { %2149 = vmatmul.mubr.msk.bf16.vlgmr.msra.gmra.mrb[28].mxu0 %vm630_vm0, %v2616_v54 }
  0x7a   : > { %1291 = vmatpush1.bf16.msra.mxu0 %v2332_v23  ;;  %1322 = vmatprep.mubr.bf16.mxu0 %v2413_v51 }
  0x7b   : > { %1372 = vmatprep.subr.bf16.mxu0 %v2340_v24  ;;  %2150 = vmatmul.mubr.msk.bf16.vlgmr.msra.gmra.mrb[28].mxu1 %vm630_vm0, %v2616_v54 }
  0x7c   : > { %1332 = vmatpush1.bf16.msra.mxu1 %v2335_v25  ;;  %1363 = vmatprep.mubr.bf16.mxu1 %v2413_v51 }
  0x7d   : > { %1413 = vmatprep.subr.bf16.mxu1 %v2343_v26 }
  0x81   : > { %2151 = vmatmul.mubr.msk.bf16.vlgmr.msra.gmra.mrb[32].mxu0 %vm630_vm0, %v2616_v54 }
  0x82   : > { %1373 = vmatpush1.bf16.msra.mxu0 %v2338_v27  ;;  %1404 = vmatprep.mubr.bf16.mxu0 %v2413_v51 }
  0x83   : > { %1454 = vmatprep.subr.bf16.mxu0 %v2346_v28  ;;  %2152 = vmatmul.mubr.msk.bf16.vlgmr.msra.gmra.mrb[32].mxu1 %vm630_vm0, %v2616_v54 }
  0x84   : > { %1414 = vmatpush1.bf16.msra.mxu1 %v2341_v29  ;;  %1445 = vmatprep.mubr.bf16.mxu1 %v2413_v51 }
  0x85   : > { %1495 = vmatprep.subr.bf16.mxu1 %v2349_v30 }
  0x89   : > { %2153 = vmatmul.mubr.msk.bf16.vlgmr.msra.gmra.mrb[36].mxu0 %vm630_vm0, %v2616_v54 }
  0x8a   : > { %1455 = vmatpush1.bf16.msra.mxu0 %v2344_v31  ;;  %1486 = vmatprep.mubr.bf16.mxu0 %v2413_v51 }
  0x8b   : > { %1536 = vmatprep.subr.bf16.mxu0 %v2352_v32  ;;  %2154 = vmatmul.mubr.msk.bf16.vlgmr.msra.gmra.mrb[36].mxu1 %vm630_vm0, %v2616_v54 }
  0x8c   : > { %1496 = vmatpush1.bf16.msra.mxu1 %v2347_v33  ;;  %1527 = vmatprep.mubr.bf16.mxu1 %v2413_v51 }
  0x8d   : > { %1577 = vmatprep.subr.bf16.mxu1 %v2355_v34 }
  0x91   : > { %2155 = vmatmul.mubr.msk.bf16.vlgmr.msra.gmra.mrb[40].mxu0 %vm630_vm0, %v2616_v54 }
  0x92   : > { %1537 = vmatpush1.bf16.msra.mxu0 %v2350_v35  ;;  %1568 = vmatprep.mubr.bf16.mxu0 %v2413_v51 }
  0x93   : > { %2214 = vmatprep.subr.bf16.mxu0 %v2414_v37  ;;  %2156 = vmatmul.mubr.msk.bf16.vlgmr.msra.gmra.mrb[40].mxu1 %vm630_vm0, %v2616_v54 }
  0x94   : > { %1578 = vmatpush1.bf16.msra.mxu1 %v2353_v36  ;;  %1609 = vmatprep.mubr.bf16.mxu1 %v2413_v51 }
  0x99   : > { %2157 = vmatmul.mubr.msk.bf16.vlgmr.msra.gmra.mrb[44].mxu0 %vm630_vm0, %v2616_v54 }
  0x9a   : > { %2215 = vmatpush3.bf16.msra.mxu0 %v2356_v38  ;;  %2216 = vmatprep.mubr.msk.bf16.mxu0 %vm2415_vm1, %v2414_v37 }
  0x9b   : > { %2158 = vmatmul.mubr.msk.bf16.vlgmr.msra.gmra.mrb[44].mxu1 %vm630_vm0, %v2616_v54 }
  0xa1   : > { %2217 = vmatmul.mubr.msk.bf16.vlgmr.msra.gmra.mrb[48].mxu0 %vm630_vm0, %v2616_v54 }
  0xb9   : > { %v2740_v39 = vpop.permute.xlu0 %381 }
 0x114   : > { %v668_v40 = vpop.f32.mrb[0].mxu0 }
 0x115   : > { %v669_v41 = vadd.f32 %v668_v40, %v2740_v39  ;;  %v670_v42 = vpop.f32.mrb[1].mxu0 }
 0x116   : > { %v671_v43 = vadd.f32 %v670_v42, %v2740_v39  ;;  %v672_v44 = vpop.f32.mrb[2].mxu0  ;;  %v709_v47 = vpop.f32.mrb[0].mxu1 }
 0x117   : > { %v1658_v45 = vmul.f32 0.2, %v669_v41  ;;  %v673_v46 = vpop.f32.mrb[3].mxu0  ;;  %v710_v49 = vadd.f32 %v709_v47, %v2740_v39  ;;  %v711_v50 = vpop.f32.mrb[1].mxu1 }
 0x118   : > { %v1659_v48 = vmul.f32 0.2, %v671_v43  ;;  %v712_v52 = vadd.f32 %v711_v50, %v2740_v39  ;;  %v713_v53 = vpop.f32.mrb[2].mxu1 }
 0x119   : > { %v1707_v51 = vmax.f32 %v669_v41, %v1658_v45  ;;  %v1660_v55 = vmul.f32 0.2, %v710_v49  ;;  %v714_v56 = vpop.f32.mrb[3].mxu1 }
 0x11a   : > { %v1708_v54 = vmax.f32 %v671_v43, %v1659_v48  ;;  %v1661_v57 = vmul.f32 0.2, %v712_v52 }
 0x11b   : > { %v1709_v59 = vmax.f32 %v710_v49, %v1660_v55 }
 0x11c   : > { %v2187_v58 = vpack.c.bf16 %v1708_v54, %v1707_v51  ;;  %v750_v60 = vpop.f32.mrb[4].mxu0  ;;  %v1710_v61 = vmax.f32 %v712_v52, %v1661_v57 }
 0x11d   : > { %v751_v62 = vadd.f32 %v750_v60, %v2740_v39  ;;  %v752_v63 = vpop.f32.mrb[5].mxu0 }
 0x11e   : > { %1953 = vst [vmem:[%s2749_s29] sm:$0xff] %v2187_v58  ;;  %v753_v0 = vadd.f32 %v752_v63, %v2740_v39  ;;  %v754_v1 = vpop.f32.mrb[6].mxu0  ;;  %v2188_v2 = vpack.c.bf16 %v1710_v61, %v1709_v59  ;;  %v791_v5 = vpop.f32.mrb[4].mxu1 }
 0x11f   : > { %v1662_v3 = vmul.f32 0.2, %v751_v62  ;;  %v755_v4 = vpop.f32.mrb[7].mxu0  ;;  %v792_v7 = vadd.f32 %v791_v5, %v2740_v39  ;;  %v793_v8 = vpop.f32.mrb[5].mxu1 }
 0x120   : > { %v1663_v6 = vmul.f32 0.2, %v753_v0  ;;  %1954 = vst [vmem:[%s2749_s29 + $0x8] sm:$0xff] %v2188_v2  ;;  %v794_v10 = vadd.f32 %v793_v8, %v2740_v39  ;;  %v795_v11 = vpop.f32.mrb[6].mxu1 }
 0x121   : > { %v1711_v9 = vmax.f32 %v751_v62, %v1662_v3  ;;  %v1664_v13 = vmul.f32 0.2, %v792_v7  ;;  %v796_v14 = vpop.f32.mrb[7].mxu1 }
 0x122   : > { %v1712_v12 = vmax.f32 %v753_v0, %v1663_v6  ;;  %v1665_v15 = vmul.f32 0.2, %v794_v10 }
 0x123   : > { %v1713_v17 = vmax.f32 %v792_v7, %v1664_v13 }
 0x124   : > { %v2189_v16 = vpack.c.bf16 %v1712_v12, %v1711_v9  ;;  %v832_v18 = vpop.f32.mrb[8].mxu0  ;;  %v1714_v19 = vmax.f32 %v794_v10, %v1665_v15 }
 0x125   : > { %v833_v20 = vadd.f32 %v832_v18, %v2740_v39  ;;  %v834_v21 = vpop.f32.mrb[9].mxu0 }
 0x126   : > { %1955 = vst [vmem:[%s2749_s29 + $0x10] sm:$0xff] %v2189_v16  ;;  %v835_v22 = vadd.f32 %v834_v21, %v2740_v39  ;;  %v836_v23 = vpop.f32.mrb[10].mxu0  ;;  %v2190_v24 = vpack.c.bf16 %v1714_v19, %v1713_v17  ;;  %v873_v27 = vpop.f32.mrb[8].mxu1 }
 0x127   : > { %v1666_v25 = vmul.f32 0.2, %v833_v20  ;;  %v837_v26 = vpop.f32.mrb[11].mxu0  ;;  %v874_v29 = vadd.f32 %v873_v27, %v2740_v39  ;;  %v875_v30 = vpop.f32.mrb[9].mxu1 }
 0x128   : > { %v1667_v28 = vmul.f32 0.2, %v835_v22  ;;  %1956 = vst [vmem:[%s2749_s29 + $0x18] sm:$0xff] %v2190_v24  ;;  %v876_v32 = vadd.f32 %v875_v30, %v2740_v39  ;;  %v877_v33 = vpop.f32.mrb[10].mxu1 }
 0x129   : > { %v1715_v31 = vmax.f32 %v833_v20, %v1666_v25  ;;  %v1668_v35 = vmul.f32 0.2, %v874_v29  ;;  %v878_v36 = vpop.f32.mrb[11].mxu1 }
 0x12a   : > { %v1716_v34 = vmax.f32 %v835_v22, %v1667_v28  ;;  %v1669_v37 = vmul.f32 0.2, %v876_v32 }
 0x12b   : > { %v1717_v40 = vmax.f32 %v874_v29, %v1668_v35 }
 0x12c   : > { %v2191_v38 = vpack.c.bf16 %v1716_v34, %v1715_v31  ;;  %v914_v41 = vpop.f32.mrb[12].mxu0  ;;  %v1718_v42 = vmax.f32 %v876_v32, %v1669_v37 }
 0x12d   : > { %v915_v43 = vadd.f32 %v914_v41, %v2740_v39  ;;  %v916_v44 = vpop.f32.mrb[13].mxu0 }
 0x12e   : > { %1957 = vst [vmem:[%s2749_s29 + $0x20] sm:$0xff] %v2191_v38  ;;  %v917_v45 = vadd.f32 %v916_v44, %v2740_v39  ;;  %v918_v46 = vpop.f32.mrb[14].mxu0  ;;  %v2192_v47 = vpack.c.bf16 %v1718_v42, %v1717_v40  ;;  %v955_v50 = vpop.f32.mrb[12].mxu1 }
 0x12f   : > { %v1670_v48 = vmul.f32 0.2, %v915_v43  ;;  %v919_v49 = vpop.f32.mrb[15].mxu0  ;;  %v956_v52 = vadd.f32 %v955_v50, %v2740_v39  ;;  %v957_v53 = vpop.f32.mrb[13].mxu1 }
 0x130   : > { %v1671_v51 = vmul.f32 0.2, %v917_v45  ;;  %1958 = vst [vmem:[%s2749_s29 + $0x28] sm:$0xff] %v2192_v47  ;;  %v958_v55 = vadd.f32 %v957_v53, %v2740_v39  ;;  %v959_v56 = vpop.f32.mrb[14].mxu1 }
 0x131   : > { %v1719_v54 = vmax.f32 %v915_v43, %v1670_v48  ;;  %v1672_v58 = vmul.f32 0.2, %v956_v52  ;;  %v960_v59 = vpop.f32.mrb[15].mxu1 }
 0x132   : > { %v1720_v57 = vmax.f32 %v917_v45, %v1671_v51  ;;  %v1673_v60 = vmul.f32 0.2, %v958_v55 }
 0x133   : > { %v1721_v62 = vmax.f32 %v956_v52, %v1672_v58 }
 0x134   : > { %v2193_v61 = vpack.c.bf16 %v1720_v57, %v1719_v54  ;;  %v996_v63 = vpop.f32.mrb[16].mxu0  ;;  %v1722_v0 = vmax.f32 %v958_v55, %v1673_v60 }
 0x135   : > { %v997_v1 = vadd.f32 %v996_v63, %v2740_v39  ;;  %v998_v2 = vpop.f32.mrb[17].mxu0 }
 0x136   : > { %1959 = vst [vmem:[%s2749_s29 + $0x30] sm:$0xff] %v2193_v61  ;;  %v999_v3 = vadd.f32 %v998_v2, %v2740_v39  ;;  %v1000_v4 = vpop.f32.mrb[18].mxu0  ;;  %v2194_v5 = vpack.c.bf16 %v1722_v0, %v1721_v62  ;;  %v1037_v8 = vpop.f32.mrb[16].mxu1 }
 0x137   : > { %v1674_v6 = vmul.f32 0.2, %v997_v1  ;;  %v1001_v7 = vpop.f32.mrb[19].mxu0  ;;  %v1038_v10 = vadd.f32 %v1037_v8, %v2740_v39  ;;  %v1039_v11 = vpop.f32.mrb[17].mxu1 }
 0x138   : > { %v1675_v9 = vmul.f32 0.2, %v999_v3  ;;  %1960 = vst [vmem:[%s2749_s29 + $0x38] sm:$0xff] %v2194_v5  ;;  %v1040_v13 = vadd.f32 %v1039_v11, %v2740_v39  ;;  %v1041_v14 = vpop.f32.mrb[18].mxu1 }
 0x139   : > { %v1723_v12 = vmax.f32 %v997_v1, %v1674_v6  ;;  %v1676_v16 = vmul.f32 0.2, %v1038_v10  ;;  %v1042_v17 = vpop.f32.mrb[19].mxu1 }
 0x13a   : > { %v1724_v15 = vmax.f32 %v999_v3, %v1675_v9  ;;  %v1677_v18 = vmul.f32 0.2, %v1040_v13 }
 0x13b   : > { %v1725_v20 = vmax.f32 %v1038_v10, %v1676_v16 }
 0x13c   : > { %v2195_v19 = vpack.c.bf16 %v1724_v15, %v1723_v12  ;;  %v1078_v21 = vpop.f32.mrb[20].mxu0  ;;  %v1726_v22 = vmax.f32 %v1040_v13, %v1677_v18 }
 0x13d   : > { %v1079_v23 = vadd.f32 %v1078_v21, %v2740_v39  ;;  %v1080_v24 = vpop.f32.mrb[21].mxu0 }
 0x13e   : > { %1961 = vst [vmem:[%s2749_s29 + $0x40] sm:$0xff] %v2195_v19  ;;  %v1081_v25 = vadd.f32 %v1080_v24, %v2740_v39  ;;  %v1082_v26 = vpop.f32.mrb[22].mxu0  ;;  %v2196_v27 = vpack.c.bf16 %v1726_v22, %v1725_v20  ;;  %v1119_v30 = vpop.f32.mrb[20].mxu1 }
 0x13f   : > { %v1678_v28 = vmul.f32 0.2, %v1079_v23  ;;  %v1083_v29 = vpop.f32.mrb[23].mxu0  ;;  %v1120_v32 = vadd.f32 %v1119_v30, %v2740_v39  ;;  %v1121_v33 = vpop.f32.mrb[21].mxu1 }
 0x140   : > { %v1679_v31 = vmul.f32 0.2, %v1081_v25  ;;  %1962 = vst [vmem:[%s2749_s29 + $0x48] sm:$0xff] %v2196_v27  ;;  %v1122_v35 = vadd.f32 %v1121_v33, %v2740_v39  ;;  %v1123_v36 = vpop.f32.mrb[22].mxu1 }
 0x141   : > { %v1727_v34 = vmax.f32 %v1079_v23, %v1678_v28  ;;  %v1680_v38 = vmul.f32 0.2, %v1120_v32  ;;  %v1124_v40 = vpop.f32.mrb[23].mxu1 }
 0x142   : > { %v1728_v37 = vmax.f32 %v1081_v25, %v1679_v31  ;;  %v1681_v41 = vmul.f32 0.2, %v1122_v35 }
 0x143   : > { %v1729_v43 = vmax.f32 %v1120_v32, %v1680_v38 }
 0x144   : > { %v2197_v42 = vpack.c.bf16 %v1728_v37, %v1727_v34  ;;  %v1160_v44 = vpop.f32.mrb[24].mxu0  ;;  %v1730_v45 = vmax.f32 %v1122_v35, %v1681_v41 }
 0x145   : > { %v1161_v46 = vadd.f32 %v1160_v44, %v2740_v39  ;;  %v1162_v47 = vpop.f32.mrb[25].mxu0 }
 0x146   : > { %1963 = vst [vmem:[%s2749_s29 + $0x50] sm:$0xff] %v2197_v42  ;;  %v1163_v48 = vadd.f32 %v1162_v47, %v2740_v39  ;;  %v1164_v49 = vpop.f32.mrb[26].mxu0  ;;  %v2198_v50 = vpack.c.bf16 %v1730_v45, %v1729_v43  ;;  %v1201_v53 = vpop.f32.mrb[24].mxu1 }
 0x147   : > { %v1682_v51 = vmul.f32 0.2, %v1161_v46  ;;  %v1165_v52 = vpop.f32.mrb[27].mxu0  ;;  %v1202_v55 = vadd.f32 %v1201_v53, %v2740_v39  ;;  %v1203_v56 = vpop.f32.mrb[25].mxu1 }
 0x148   : > { %v1683_v54 = vmul.f32 0.2, %v1163_v48  ;;  %1964 = vst [vmem:[%s2749_s29 + $0x58] sm:$0xff] %v2198_v50  ;;  %v1204_v58 = vadd.f32 %v1203_v56, %v2740_v39  ;;  %v1205_v59 = vpop.f32.mrb[26].mxu1 }
 0x149   : > { %v1731_v57 = vmax.f32 %v1161_v46, %v1682_v51  ;;  %v1684_v61 = vmul.f32 0.2, %v1202_v55  ;;  %v1206_v62 = vpop.f32.mrb[27].mxu1 }
 0x14a   : > { %v1732_v60 = vmax.f32 %v1163_v48, %v1683_v54  ;;  %v1685_v63 = vmul.f32 0.2, %v1204_v58 }
 0x14b   : > { %v1733_v1 = vmax.f32 %v1202_v55, %v1684_v61 }
 0x14c   : > { %v2199_v0 = vpack.c.bf16 %v1732_v60, %v1731_v57  ;;  %v1242_v2 = vpop.f32.mrb[28].mxu0  ;;  %v1734_v3 = vmax.f32 %v1204_v58, %v1685_v63 }
 0x14d   : > { %v1243_v4 = vadd.f32 %v1242_v2, %v2740_v39  ;;  %v1244_v5 = vpop.f32.mrb[29].mxu0 }
 0x14e   : > { %1965 = vst [vmem:[%s2749_s29 + $0x60] sm:$0xff] %v2199_v0  ;;  %v1245_v6 = vadd.f32 %v1244_v5, %v2740_v39  ;;  %v1246_v7 = vpop.f32.mrb[30].mxu0  ;;  %v2200_v8 = vpack.c.bf16 %v1734_v3, %v1733_v1  ;;  %v1283_v11 = vpop.f32.mrb[28].mxu1 }
 0x14f   : > { %v1686_v9 = vmul.f32 0.2, %v1243_v4  ;;  %v1247_v10 = vpop.f32.mrb[31].mxu0  ;;  %v1284_v13 = vadd.f32 %v1283_v11, %v2740_v39  ;;  %v1285_v14 = vpop.f32.mrb[29].mxu1 }
 0x150   : > { %v1687_v12 = vmul.f32 0.2, %v1245_v6  ;;  %1966 = vst [vmem:[%s2749_s29 + $0x68] sm:$0xff] %v2200_v8  ;;  %v1286_v16 = vadd.f32 %v1285_v14, %v2740_v39  ;;  %v1287_v17 = vpop.f32.mrb[30].mxu1 }
 0x151   : > { %v1735_v15 = vmax.f32 %v1243_v4, %v1686_v9  ;;  %v1688_v19 = vmul.f32 0.2, %v1284_v13  ;;  %v1288_v20 = vpop.f32.mrb[31].mxu1 }
 0x152   : > { %v1736_v18 = vmax.f32 %v1245_v6, %v1687_v12  ;;  %v1689_v21 = vmul.f32 0.2, %v1286_v16 }
 0x153   : > { %v1737_v23 = vmax.f32 %v1284_v13, %v1688_v19 }
 0x154   : > { %v2201_v22 = vpack.c.bf16 %v1736_v18, %v1735_v15  ;;  %v1324_v24 = vpop.f32.mrb[32].mxu0  ;;  %v1738_v25 = vmax.f32 %v1286_v16, %v1689_v21 }
 0x155   : > { %v1325_v26 = vadd.f32 %v1324_v24, %v2740_v39  ;;  %v1326_v27 = vpop.f32.mrb[33].mxu0 }
 0x156   : > { %1967 = vst [vmem:[%s2749_s29 + $0x70] sm:$0xff] %v2201_v22  ;;  %v1327_v28 = vadd.f32 %v1326_v27, %v2740_v39  ;;  %v1328_v29 = vpop.f32.mrb[34].mxu0  ;;  %v2202_v30 = vpack.c.bf16 %v1738_v25, %v1737_v23  ;;  %v1365_v33 = vpop.f32.mrb[32].mxu1 }
 0x157   : > { %v1690_v31 = vmul.f32 0.2, %v1325_v26  ;;  %v1329_v32 = vpop.f32.mrb[35].mxu0  ;;  %v1366_v35 = vadd.f32 %v1365_v33, %v2740_v39  ;;  %v1367_v36 = vpop.f32.mrb[33].mxu1 }
 0x158   : > { %v1691_v34 = vmul.f32 0.2, %v1327_v28  ;;  %1968 = vst [vmem:[%s2749_s29 + $0x78] sm:$0xff] %v2202_v30  ;;  %v1368_v38 = vadd.f32 %v1367_v36, %v2740_v39  ;;  %v1369_v40 = vpop.f32.mrb[34].mxu1 }
 0x159   : > { %v1739_v37 = vmax.f32 %v1325_v26, %v1690_v31  ;;  %v1692_v42 = vmul.f32 0.2, %v1366_v35  ;;  %v1370_v43 = vpop.f32.mrb[35].mxu1 }
 0x15a   : > { %v1740_v41 = vmax.f32 %v1327_v28, %v1691_v34  ;;  %v1693_v44 = vmul.f32 0.2, %v1368_v38 }
 0x15b   : > { %v1741_v46 = vmax.f32 %v1366_v35, %v1692_v42 }
 0x15c   : > { %v2203_v45 = vpack.c.bf16 %v1740_v41, %v1739_v37  ;;  %v1406_v47 = vpop.f32.mrb[36].mxu0  ;;  %v1742_v48 = vmax.f32 %v1368_v38, %v1693_v44 }
 0x15d   : > { %v1407_v49 = vadd.f32 %v1406_v47, %v2740_v39  ;;  %v1408_v50 = vpop.f32.mrb[37].mxu0 }
 0x15e   : > { %1969 = vst [vmem:[%s2749_s29 + $0x80] sm:$0xff] %v2203_v45  ;;  %v1409_v51 = vadd.f32 %v1408_v50, %v2740_v39  ;;  %v1410_v52 = vpop.f32.mrb[38].mxu0  ;;  %v2204_v53 = vpack.c.bf16 %v1742_v48, %v1741_v46  ;;  %v1447_v56 = vpop.f32.mrb[36].mxu1 }
 0x15f   : > { %v1694_v54 = vmul.f32 0.2, %v1407_v49  ;;  %v1411_v55 = vpop.f32.mrb[39].mxu0  ;;  %v1448_v58 = vadd.f32 %v1447_v56, %v2740_v39  ;;  %v1449_v59 = vpop.f32.mrb[37].mxu1 }
 0x160   : > { %v1695_v57 = vmul.f32 0.2, %v1409_v51  ;;  %1970 = vst [vmem:[%s2749_s29 + $0x88] sm:$0xff] %v2204_v53  ;;  %v1450_v61 = vadd.f32 %v1449_v59, %v2740_v39  ;;  %v1451_v62 = vpop.f32.mrb[38].mxu1 }
 0x161   : > { %v1743_v60 = vmax.f32 %v1407_v49, %v1694_v54  ;;  %v1696_v0 = vmul.f32 0.2, %v1448_v58  ;;  %v1452_v1 = vpop.f32.mrb[39].mxu1 }
 0x162   : > { %v1744_v63 = vmax.f32 %v1409_v51, %v1695_v57  ;;  %v1697_v2 = vmul.f32 0.2, %v1450_v61 }
 0x163   : > { %v1745_v4 = vmax.f32 %v1448_v58, %v1696_v0 }
 0x164   : > { %v2205_v3 = vpack.c.bf16 %v1744_v63, %v1743_v60  ;;  %v1488_v5 = vpop.f32.mrb[40].mxu0  ;;  %v1746_v6 = vmax.f32 %v1450_v61, %v1697_v2 }
 0x165   : > { %v1489_v7 = vadd.f32 %v1488_v5, %v2740_v39  ;;  %v1490_v8 = vpop.f32.mrb[41].mxu0 }
 0x166   : > { %1971 = vst [vmem:[%s2749_s29 + $0x90] sm:$0xff] %v2205_v3  ;;  %v1491_v9 = vadd.f32 %v1490_v8, %v2740_v39  ;;  %v1492_v10 = vpop.f32.mrb[42].mxu0  ;;  %v2206_v11 = vpack.c.bf16 %v1746_v6, %v1745_v4  ;;  %v1529_v14 = vpop.f32.mrb[40].mxu1 }
 0x167   : > { %v1698_v12 = vmul.f32 0.2, %v1489_v7  ;;  %v1493_v13 = vpop.f32.mrb[43].mxu0  ;;  %v1530_v16 = vadd.f32 %v1529_v14, %v2740_v39  ;;  %v1531_v17 = vpop.f32.mrb[41].mxu1 }
 0x168   : > { %v1699_v15 = vmul.f32 0.2, %v1491_v9  ;;  %1972 = vst [vmem:[%s2749_s29 + $0x98] sm:$0xff] %v2206_v11  ;;  %v1532_v19 = vadd.f32 %v1531_v17, %v2740_v39  ;;  %v1533_v20 = vpop.f32.mrb[42].mxu1 }
 0x169   : > { %v1747_v18 = vmax.f32 %v1489_v7, %v1698_v12  ;;  %v1700_v22 = vmul.f32 0.2, %v1530_v16  ;;  %v1534_v23 = vpop.f32.mrb[43].mxu1 }
 0x16a   : > { %v1748_v21 = vmax.f32 %v1491_v9, %v1699_v15  ;;  %v1701_v24 = vmul.f32 0.2, %v1532_v19 }
 0x16b   : > { %v1749_v26 = vmax.f32 %v1530_v16, %v1700_v22 }
 0x16c   : > { %v2207_v25 = vpack.c.bf16 %v1748_v21, %v1747_v18  ;;  %v1570_v27 = vpop.f32.mrb[44].mxu0  ;;  %v1750_v28 = vmax.f32 %v1532_v19, %v1701_v24 }
 0x16d   : > { %v1571_v29 = vadd.f32 %v1570_v27, %v2740_v39  ;;  %v1572_v30 = vpop.f32.mrb[45].mxu0 }
 0x16e   : > { %1973 = vst [vmem:[%s2749_s29 + $0xa0] sm:$0xff] %v2207_v25  ;;  %v1573_v31 = vadd.f32 %v1572_v30, %v2740_v39  ;;  %v1574_v32 = vpop.f32.mrb[46].mxu0  ;;  %v2208_v33 = vpack.c.bf16 %v1750_v28, %v1749_v26  ;;  %v1611_v36 = vpop.f32.mrb[44].mxu1 }
 0x16f   : > { %v1702_v34 = vmul.f32 0.2, %v1571_v29  ;;  %v1575_v35 = vpop.f32.mrb[47].mxu0  ;;  %v1612_v38 = vadd.f32 %v1611_v36, %v2740_v39  ;;  %v1613_v40 = vpop.f32.mrb[45].mxu1 }
 0x170   : > { %v1703_v37 = vmul.f32 0.2, %v1573_v31  ;;  %1974 = vst [vmem:[%s2749_s29 + $0xa8] sm:$0xff] %v2208_v33  ;;  %v1614_v42 = vadd.f32 %v1613_v40, %v2740_v39  ;;  %v1615_v43 = vpop.f32.mrb[46].mxu1 }
 0x171   : > { %v1751_v41 = vmax.f32 %v1571_v29, %v1702_v34  ;;  %v1704_v45 = vmul.f32 0.2, %v1612_v38  ;;  %v1616_v46 = vpop.f32.mrb[47].mxu1 }
 0x172   : > { %v1752_v44 = vmax.f32 %v1573_v31, %v1703_v37  ;;  %v1705_v47 = vmul.f32 0.2, %v1614_v42 }
 0x173   : > { %v1753_v49 = vmax.f32 %v1612_v38, %v1704_v45 }
 0x174   : > { %v2209_v48 = vpack.c.bf16 %v1752_v44, %v1751_v41  ;;  %v1652_v50 = vpop.f32.mrb[48].mxu0  ;;  %v1754_v51 = vmax.f32 %v1614_v42, %v1705_v47 }
 0x175   : > { %v1653_v52 = vadd.f32 %v1652_v50, %v2740_v39  ;;  %v2218_v53 = vpop.f32.mrb[49].mxu0 }
 0x176   : > { %1975 = vst [vmem:[%s2749_s29 + $0xb0] sm:$0xff] %v2209_v48  ;;  %v1655_v54 = vpop.f32.mrb[50].mxu0  ;;  %v2210_v55 = vpack.c.bf16 %v1754_v51, %v1753_v49 }
 0x177   : > { %v1706_v56 = vmul.f32 0.2, %v1653_v52  ;;  %v2219_v57 = vpop.f32.mrb[51].mxu0 }
 0x178   : > { %1976 = vst [vmem:[%s2749_s29 + $0xb8] sm:$0xff] %v2210_v55 }
 0x179   : > { %v1755_v58 = vmax.f32 %v1653_v52, %v1706_v56 }
 0x17b   : > { %v2211_v59 = vpack.c.bf16 %v1755_v58, %v1755_v58 }
 0x17d   : > { %1977 = vst [vmem:[%s2749_s29 + $0xc0] sm:$0xf] %v2211_v59 }
 0x17e PF: > { %s13_s18 = sadd.s32 1, %s2411_s18   ;;  %s2846_s12 = smov %s2391_s13 }
 0x17f   : > { %p10_p12 = scmp.ge.s32.totalorder %s13_s18, 6   ;;  %s2847_s13 = smov %s2487_s25 }
 0x180   : > { %s2848_s14 = smov %s2403_s16  ;;  %s2849_s15 = smov %s2407_s17 }
 0x181   : > { %s2850_s16 = smov %s2853_s19  ;;  %s2851_s17 = smov %s2857_s20 }
 0x182   :  { %12 = sbr.rel (!%p10_p12) target bundleno = 4 (0x4), region = 99 }

// kernel: class_contra_net_forward.5
= control target key start
LH: loop header
LB: loop body
LE: loop exit
PB: predicated region body
PF: predicated region fallthrough
CT: control target
= control target key end

     0   :  { %s3036_s12 = smov 0   ;;  %s3038_s13 = smov 0   ;;  %s3395_s0 = inlined_call_operand.vmem [shape: bf16[2,128,3136], index: 0, kind: input, shape index: {}]   ;;  %s3396_s1 = inlined_call_operand.vmem [shape: bf16[16,128], index: 1, kind: input, shape index: {}]   ;;  %s3397_s2 = inlined_call_operand.vmem [shape: f32[16,1], index: 2, kind: input, shape index: {}]   ;;  %s3398_s3 = inlined_call_operand.vmem [shape: bf16[2,16,3136], index: 3, kind: output, shape index: {}]  }
   0x1   :  { %s3040_s14 = smov 0  }
   0x2 LB: > { %s25_s15 = sadd.s32 1, %s3007_s13  ;;  %p2374_p0 = scmp.ge.s32.totalorder %s3011_s14, 1  ;;  %s3011_s14 = sphi %s3040_s14, %s13_s14   ;;  %s3007_s13 = sphi %s3038_s13, %s3400_s13   ;;  %s3003_s12 = sphi %s3036_s12, %s3399_s12  }
   0x3   : > { %p27_p1 = scmp.ge.s32.totalorder %s25_s15, 2  ;;  %p158_p2 = scmp.lt.s32.totalorder %s3011_s14, 3 }
   0x5   : > { %s3402_s15 = smov (%p27_p1, %s25_s15), 0  ;;  %p159_p3 = pnand %p2374_p0, %p158_p2 }
   0x6   : > { %p191_p4 = scmp.lt.s32.totalorder (!%p159_p3), %s3003_s12, 1  ;;  %v3013_v0 = vmov (!%p159_p3), 0   ;;  %v421_v1 = vld [vmem:[%s3397_s2] sm:$0xff] (!%p159_p3)  ;;  %v422_v2 = vld [vmem:[%s3397_s2 + $0x8] sm:$0xff] (!%p159_p3)  ;;  %vm3015_vm0 = vmmov (!%p159_p3), 0   ;;  %vm2268_vm1 = vcmask (!%p159_p3), 519168  }
   0x7   : > { %162 = sbr.rel (%p159_p3) target bundleno = 466 (0x1d2), region = 32  ;;  %1479 = vmatprep.mubr.bf16.mxu0 (!%p159_p3), %v3013_v0  ;;  %1522 = vmatprep.mubr.bf16.mxu1 (!%p159_p3), %v3013_v0  ;;  %v3103_v32 = vld [vmem:[%s3396_s1] sm:$0xff] (!%p159_p3)  }
   0x8   : > { %2690 = vset.pattern.permute.xlu0 (!%p159_p3), %v3013_v0 }
   0x9   : > { %425 = vperm.xlu0 (!%p159_p3), %2690, %v421_v1  }
   0xd   : > { %430 = vperm.xlu0 (!%p159_p3), %2690, %v422_v2  }
   0xe   : > { %s3404_s12 = smov (!%p191_p4, %s3003_s12), 1 }
   0xf   : > { %s2661_s18 = smul.u32 1600, %s3404_s12 }
  0x10   : > { %s2662_s28 = smul.u32 200, %s3404_s12 }
  0x11   : > { %s3069_s23 = scalar_lea.vmem %s3395_s0, %s2661_s18 }
  0x12   : > { %v2691_v3 = vld [vmem:[%s3069_s23 + $0x4] ss:$100 sps:$4 sm:$0xff]   ;;  %v2694_v5 = vld [vmem:[%s3069_s23 + $0xcc] ss:$100 sps:$4 sm:$0xff]   ;;  %v2697_v7 = vld [vmem:[%s3069_s23 + $0x194] ss:$100 sps:$4 sm:$0xff]   ;;  %s3312_s4 = scalar_lea.vmem %s3398_s3, %s2662_s28 }
  0x13   : > { %v2693_v4 = vld [vmem:[%s3069_s23] ss:$100 sps:$4 sm:$0xff]   ;;  %1447 = vmatprep.subr.bf16.mxu0 %v2691_v3  ;;  %v2696_v6 = vld [vmem:[%s3069_s23 + $0xc8] ss:$100 sps:$4 sm:$0xff]   ;;  %v2699_v8 = vld [vmem:[%s3069_s23 + $0x190] ss:$100 sps:$4 sm:$0xff]  }
  0x14   : > { %1448 = vmatpush1.bf16.msra.mxu0 %v2693_v4  ;;  %v2700_v9 = vld [vmem:[%s3069_s23 + $0x25c] ss:$100 sps:$4 sm:$0xff]   ;;  %v2712_v10 = vld [vmem:[%s3069_s23 + $0xc] ss:$100 sps:$4 sm:$0xff]   ;;  %v2703_v13 = vld [vmem:[%s3069_s23 + $0x324] ss:$100 sps:$4 sm:$0xff]  }
  0x15   : > { %1449 = vmatprep.subr.bf16.mxu0 %v2694_v5  ;;  %v2714_v11 = vld [vmem:[%s3069_s23 + $0x8] ss:$100 sps:$4 sm:$0xff]   ;;  %v2702_v12 = vld [vmem:[%s3069_s23 + $0x258] ss:$100 sps:$4 sm:$0xff]   ;;  %1490 = vmatprep.subr.bf16.mxu1 %v2712_v10  ;;  %v2720_v15 = vld [vmem:[%s3069_s23 + $0xd0] ss:$100 sps:$4 sm:$0xff]  }
  0x16   : > { %v2718_v14 = vld [vmem:[%s3069_s23 + $0xd4] ss:$100 sps:$4 sm:$0xff]   ;;  %1491 = vmatpush1.bf16.msra.mxu1 %v2714_v11  ;;  %v2705_v16 = vld [vmem:[%s3069_s23 + $0x320] ss:$100 sps:$4 sm:$0xff]   ;;  %v2706_v18 = vld [vmem:[%s3069_s23 + $0x3ec] ss:$100 sps:$4 sm:$0xff]  }
  0x17   : > { %1492 = vmatprep.subr.bf16.mxu1 %v2718_v14  ;;  %v2725_v17 = vld [vmem:[%s3069_s23 + $0x19c] ss:$100 sps:$4 sm:$0xff]   ;;  %v2731_v20 = vld [vmem:[%s3069_s23 + $0x264] ss:$100 sps:$4 sm:$0xff]   ;;  %v2709_v22 = vld [vmem:[%s3069_s23 + $0x4b4] ss:$100 sps:$4 sm:$0xff]  }
  0x18   : > { %1450 = vmatpush1.bf16.msra.mxu0 %v2696_v6  ;;  %v2727_v19 = vld [vmem:[%s3069_s23 + $0x198] ss:$100 sps:$4 sm:$0xff]   ;;  %v2708_v21 = vld [vmem:[%s3069_s23 + $0x3e8] ss:$100 sps:$4 sm:$0xff]   ;;  %v2733_v23 = vld [vmem:[%s3069_s23 + $0x260] ss:$100 sps:$4 sm:$0xff]  }
  0x19   : > { %1451 = vmatprep.subr.bf16.mxu0 %v2697_v7  ;;  %v2737_v24 = vld [vmem:[%s3069_s23 + $0x32c] ss:$100 sps:$4 sm:$0xff]   ;;  %v2715_v26 = vld [vmem:[%s3069_s23 + $0x57c] ss:$100 sps:$4 sm:$0xff]   ;;  %v2743_v28 = vld [vmem:[%s3069_s23 + $0x3f4] ss:$100 sps:$4 sm:$0xff]  }
  0x1a   : > { %1493 = vmatpush1.bf16.msra.mxu1 %v2720_v15  ;;  %v2711_v25 = vld [vmem:[%s3069_s23 + $0x4b0] ss:$100 sps:$4 sm:$0xff]   ;;  %v2739_v27 = vld [vmem:[%s3069_s23 + $0x328] ss:$100 sps:$4 sm:$0xff]   ;;  %v2717_v29 = vld [vmem:[%s3069_s23 + $0x578] ss:$100 sps:$4 sm:$0xff]  }
  0x1b   : > { %1494 = vmatprep.subr.bf16.mxu1 %v2725_v17  ;;  %v2724_v30 = vld [vmem:[%s3069_s23 + $0x14] ss:$100 sps:$4 sm:$0xff]   ;;  %v2749_v33 = vld [vmem:[%s3069_s23 + $0x4bc] ss:$100 sps:$4 sm:$0xff]   ;;  %v2755_v37 = vld [vmem:[%s3069_s23 + $0x584] ss:$100 sps:$4 sm:$0xff]  }
  0x1c   : > { %1452 = vmatpush1.bf16.msra.mxu0 %v2699_v8  ;;  %v2745_v31 = vld [vmem:[%s3069_s23 + $0x3f0] ss:$100 sps:$4 sm:$0xff]   ;;  %v2730_v35 = vld [vmem:[%s3069_s23 + $0xdc] ss:$100 sps:$4 sm:$0xff]   ;;  %v2736_v39 = vld [vmem:[%s3069_s23 + $0x1a4] ss:$100 sps:$4 sm:$0xff]  }
  0x1d   : > { %1453 = vmatprep.subr.bf16.mxu0 %v2700_v9  ;;  %v2722_v34 = vld [vmem:[%s3069_s23 + $0x10] ss:$100 sps:$4 sm:$0xff]   ;;  %v2751_v36 = vld [vmem:[%s3069_s23 + $0x4b8] ss:$100 sps:$4 sm:$0xff]   ;;  %v2757_v40 = vld [vmem:[%s3069_s23 + $0x580] ss:$100 sps:$4 sm:$0xff]  }
  0x1e   : > { %1495 = vmatpush1.bf16.msra.mxu1 %v2727_v19  ;;  %v2728_v38 = vld [vmem:[%s3069_s23 + $0xd8] ss:$100 sps:$4 sm:$0xff]   ;;  %v2734_v42 = vld [vmem:[%s3069_s23 + $0x1a0] ss:$100 sps:$4 sm:$0xff]   ;;  %v2742_v43 = vld [vmem:[%s3069_s23 + $0x26c] ss:$100 sps:$4 sm:$0xff]  }
  0x1f   : > { %1496 = vmatprep.subr.bf16.mxu1 %v2731_v20  ;;  %v2763_v41 = vld [vmem:[%s3069_s23 + $0x1c] ss:$100 sps:$4 sm:$0xff]   ;;  %v2769_v45 = vld [vmem:[%s3069_s23 + $0xe4] ss:$100 sps:$4 sm:$0xff]   ;;  %v2748_v47 = vld [vmem:[%s3069_s23 + $0x334] ss:$100 sps:$4 sm:$0xff]  }
  0x20   : > { %1454 = vmatpush1.bf16.msra.mxu0 %v2702_v12  ;;  %v2761_v44 = vld [vmem:[%s3069_s23 + $0x18] ss:$100 sps:$4 sm:$0xff]   ;;  %v2740_v46 = vld [vmem:[%s3069_s23 + $0x268] ss:$100 sps:$4 sm:$0xff]   ;;  %v2767_v48 = vld [vmem:[%s3069_s23 + $0xe0] ss:$100 sps:$4 sm:$0xff]  }
  0x21   : > { %1455 = vmatprep.subr.bf16.mxu0 %v2703_v13  ;;  %v2775_v49 = vld [vmem:[%s3069_s23 + $0x1ac] ss:$100 sps:$4 sm:$0xff]   ;;  %v2754_v51 = vld [vmem:[%s3069_s23 + $0x3fc] ss:$100 sps:$4 sm:$0xff]   ;;  %v2781_v53 = vld [vmem:[%s3069_s23 + $0x274] ss:$100 sps:$4 sm:$0xff]  }
  0x22   : > { %1497 = vmatpush1.bf16.msra.mxu1 %v2733_v23  ;;  %v2746_v50 = vld [vmem:[%s3069_s23 + $0x330] ss:$100 sps:$4 sm:$0xff]   ;;  %v2773_v52 = vld [vmem:[%s3069_s23 + $0x1a8] ss:$100 sps:$4 sm:$0xff]   ;;  %v2752_v54 = vld [vmem:[%s3069_s23 + $0x3f8] ss:$100 sps:$4 sm:$0xff]  }
  0x23   : > { %1498 = vmatprep.subr.bf16.mxu1 %v2737_v24  ;;  %v2760_v55 = vld [vmem:[%s3069_s23 + $0x4c4] ss:$100 sps:$4 sm:$0xff]   ;;  %v2779_v56 = vld [vmem:[%s3069_s23 + $0x270] ss:$100 sps:$4 sm:$0xff]   ;;  %v2787_v57 = vld [vmem:[%s3069_s23 + $0x33c] ss:$100 sps:$4 sm:$0xff]  }
  0x24   : > { %1456 = vmatpush1.bf16.msra.mxu0 %v2705_v16  ;;  %v2758_v58 = vld [vmem:[%s3069_s23 + $0x4c0] ss:$100 sps:$4 sm:$0xff]   ;;  %v2766_v59 = vld [vmem:[%s3069_s23 + $0x58c] ss:$100 sps:$4 sm:$0xff]   ;;  %v2785_v60 = vld [vmem:[%s3069_s23 + $0x338] ss:$100 sps:$4 sm:$0xff]  }
  0x25   : > { %1457 = vmatprep.subr.bf16.mxu0 %v2706_v18  ;;  %v2793_v61 = vld [vmem:[%s3069_s23 + $0x404] ss:$100 sps:$4 sm:$0xff]   ;;  %v2799_v2 = vld [vmem:[%s3069_s23 + $0x4cc] ss:$100 sps:$4 sm:$0xff]   ;;  %v2805_v6 = vld [vmem:[%s3069_s23 + $0x594] ss:$100 sps:$4 sm:$0xff]  }
  0x26   : > { %1499 = vmatpush1.bf16.msra.mxu1 %v2739_v27  ;;  %v2764_v62 = vld [vmem:[%s3069_s23 + $0x588] ss:$100 sps:$4 sm:$0xff]   ;;  %v2791_v1 = vld [vmem:[%s3069_s23 + $0x400] ss:$100 sps:$4 sm:$0xff]   ;;  %v2784_v8 = vld [vmem:[%s3069_s23 + $0x1b4] ss:$100 sps:$4 sm:$0xff]  }
  0x27   : > { %1500 = vmatprep.subr.bf16.mxu1 %v2743_v28  ;;  %v2772_v63 = vld [vmem:[%s3069_s23 + $0x24] ss:$100 sps:$4 sm:$0xff]   ;;  %v2778_v4 = vld [vmem:[%s3069_s23 + $0xec] ss:$100 sps:$4 sm:$0xff]   ;;  %v2790_v12 = vld [vmem:[%s3069_s23 + $0x27c] ss:$100 sps:$4 sm:$0xff]  }
  0x28   : > { %1458 = vmatpush1.bf16.msra.mxu0 %v2708_v21  ;;  %v2770_v3 = vld [vmem:[%s3069_s23 + $0x20] ss:$100 sps:$4 sm:$0xff]   ;;  %v2797_v5 = vld [vmem:[%s3069_s23 + $0x4c8] ss:$100 sps:$4 sm:$0xff]   ;;  %v2803_v9 = vld [vmem:[%s3069_s23 + $0x590] ss:$100 sps:$4 sm:$0xff]  }
  0x29   : > { %1459 = vmatprep.subr.bf16.mxu0 %v2709_v22  ;;  %v2776_v7 = vld [vmem:[%s3069_s23 + $0xe8] ss:$100 sps:$4 sm:$0xff]   ;;  %v2782_v11 = vld [vmem:[%s3069_s23 + $0x1b0] ss:$100 sps:$4 sm:$0xff]   ;;  %v2788_v15 = vld [vmem:[%s3069_s23 + $0x278] ss:$100 sps:$4 sm:$0xff]  }
  0x2a   : > { %1501 = vmatpush1.bf16.msra.mxu1 %v2745_v31  ;;  %v2811_v10 = vld [vmem:[%s3069_s23 + $0x2c] ss:$100 sps:$4 sm:$0xff]   ;;  %v2817_v14 = vld [vmem:[%s3069_s23 + $0xf4] ss:$100 sps:$4 sm:$0xff]   ;;  %v2796_v16 = vld [vmem:[%s3069_s23 + $0x344] ss:$100 sps:$4 sm:$0xff]  }
  0x2b   : > { %1502 = vmatprep.subr.bf16.mxu1 %v2749_v33  ;;  %v2809_v13 = vld [vmem:[%s3069_s23 + $0x28] ss:$100 sps:$4 sm:$0xff]   ;;  %v2815_v17 = vld [vmem:[%s3069_s23 + $0xf0] ss:$100 sps:$4 sm:$0xff]   ;;  %v2823_v18 = vld [vmem:[%s3069_s23 + $0x1bc] ss:$100 sps:$4 sm:$0xff]  }
  0x2c   : > { %1460 = vmatpush1.bf16.msra.mxu0 %v2711_v25  ;;  %v2794_v19 = vld [vmem:[%s3069_s23 + $0x340] ss:$100 sps:$4 sm:$0xff]   ;;  %v2802_v20 = vld [vmem:[%s3069_s23 + $0x40c] ss:$100 sps:$4 sm:$0xff]   ;;  %v2821_v21 = vld [vmem:[%s3069_s23 + $0x1b8] ss:$100 sps:$4 sm:$0xff]  }
  0x2d   : > { %1461 = vmatprep.subr.bf16.mxu0 %v2715_v26  ;;  %v2829_v22 = vld [vmem:[%s3069_s23 + $0x284] ss:$100 sps:$4 sm:$0xff]   ;;  %v2808_v24 = vld [vmem:[%s3069_s23 + $0x4d4] ss:$100 sps:$4 sm:$0xff]   ;;  %v2835_v26 = vld [vmem:[%s3069_s23 + $0x34c] ss:$100 sps:$4 sm:$0xff]  }
  0x2e   : > { %1503 = vmatpush1.bf16.msra.mxu1 %v2751_v36  ;;  %v2800_v23 = vld [vmem:[%s3069_s23 + $0x408] ss:$100 sps:$4 sm:$0xff]   ;;  %v2827_v25 = vld [vmem:[%s3069_s23 + $0x280] ss:$100 sps:$4 sm:$0xff]   ;;  %v2806_v27 = vld [vmem:[%s3069_s23 + $0x4d0] ss:$100 sps:$4 sm:$0xff]  }
  0x2f   : > { %1504 = vmatprep.subr.bf16.mxu1 %v2755_v37  ;;  %v2814_v28 = vld [vmem:[%s3069_s23 + $0x59c] ss:$100 sps:$4 sm:$0xff]   ;;  %v2820_v33 = vld [vmem:[%s3069_s23 + $0x34] ss:$100 sps:$4 sm:$0xff]  }
  0x30   : > { %1462 = vmatpush1.bf16.msra.mxu0 %v2717_v29  ;;  %v2833_v29 = vld [vmem:[%s3069_s23 + $0x348] ss:$100 sps:$4 sm:$0xff]   ;;  %v2812_v31 = vld [vmem:[%s3069_s23 + $0x598] ss:$100 sps:$4 sm:$0xff]   ;;  %v2818_v36 = vld [vmem:[%s3069_s23 + $0x30] ss:$100 sps:$4 sm:$0xff]  }
  0x31   : > { %1533 = vmatprep.subr.bf16.mxu0 %v2724_v30  ;;  %v2841_v30 = vld [vmem:[%s3069_s23 + $0x414] ss:$100 sps:$4 sm:$0xff]   ;;  %v2826_v37 = vld [vmem:[%s3069_s23 + $0xfc] ss:$100 sps:$4 sm:$0xff]  }
  0x32   : > { %1505 = vmatpush1.bf16.msra.mxu1 %v2757_v40  ;;  %v2824_v40 = vld [vmem:[%s3069_s23 + $0xf8] ss:$100 sps:$4 sm:$0xff]  }
  0x33   : > { %1480 = vmatmul.mubr.bf16.vlgmr.msra.gmra.mrb[0].mxu0 %v3103_v32  ;;  %1576 = vmatprep.subr.bf16.mxu1 %v2763_v41  ;;  %v2832_v41 = vld [vmem:[%s3069_s23 + $0x1c4] ss:$100 sps:$4 sm:$0xff]  }
  0x34   : > { %1534 = vmatpush1.bf16.msra.mxu0 %v2722_v34  ;;  %1565 = vmatprep.mubr.bf16.mxu0 %v3013_v0  ;;  %v2839_v34 = vld [vmem:[%s3069_s23 + $0x410] ss:$100 sps:$4 sm:$0xff]  }
  0x35   : > { %1535 = vmatprep.subr.bf16.mxu0 %v2730_v35  ;;  %1523 = vmatmul.mubr.bf16.vlgmr.msra.gmra.mrb[0].mxu1 %v3103_v32  ;;  %v2847_v35 = vld [vmem:[%s3069_s23 + $0x4dc] ss:$100 sps:$4 sm:$0xff]  }
  0x36   : > { %1577 = vmatpush1.bf16.msra.mxu1 %v2761_v44  ;;  %1608 = vmatprep.mubr.bf16.mxu1 %v3013_v0  ;;  %v2830_v44 = vld [vmem:[%s3069_s23 + $0x1c0] ss:$100 sps:$4 sm:$0xff]  }
  0x37   : > { %1578 = vmatprep.subr.bf16.mxu1 %v2769_v45  ;;  %v2838_v45 = vld [vmem:[%s3069_s23 + $0x28c] ss:$100 sps:$4 sm:$0xff]  }
  0x38   : > { %1536 = vmatpush1.bf16.msra.mxu0 %v2728_v38  ;;  %v2845_v38 = vld [vmem:[%s3069_s23 + $0x4d8] ss:$100 sps:$4 sm:$0xff]  }
  0x39   : > { %1537 = vmatprep.subr.bf16.mxu0 %v2736_v39  ;;  %v2853_v39 = vld [vmem:[%s3069_s23 + $0x5a4] ss:$100 sps:$4 sm:$0xff]  }
  0x3a   : > { %1579 = vmatpush1.bf16.msra.mxu1 %v2767_v48  ;;  %v2836_v48 = vld [vmem:[%s3069_s23 + $0x288] ss:$100 sps:$4 sm:$0xff]  }
  0x3b   : > { %1580 = vmatprep.subr.bf16.mxu1 %v2775_v49  ;;  %v2844_v49 = vld [vmem:[%s3069_s23 + $0x354] ss:$100 sps:$4 sm:$0xff]  }
  0x3c   : > { %1538 = vmatpush1.bf16.msra.mxu0 %v2734_v42  ;;  %v2851_v42 = vld [vmem:[%s3069_s23 + $0x5a0] ss:$100 sps:$4 sm:$0xff]  }
  0x3d   : > { %1539 = vmatprep.subr.bf16.mxu0 %v2742_v43  ;;  %v2859_v43 = vld [vmem:[%s3069_s23 + $0x3c] ss:$100 sps:$4 sm:$0xff]  }
  0x3e   : > { %1581 = vmatpush1.bf16.msra.mxu1 %v2773_v52  ;;  %v2842_v52 = vld [vmem:[%s3069_s23 + $0x350] ss:$100 sps:$4 sm:$0xff]  }
  0x3f   : > { %1582 = vmatprep.subr.bf16.mxu1 %v2781_v53  ;;  %v2850_v53 = vld [vmem:[%s3069_s23 + $0x41c] ss:$100 sps:$4 sm:$0xff]  }
  0x40   : > { %1540 = vmatpush1.bf16.msra.mxu0 %v2740_v46  ;;  %v2857_v46 = vld [vmem:[%s3069_s23 + $0x38] ss:$100 sps:$4 sm:$0xff]  }
  0x41   : > { %1541 = vmatprep.subr.bf16.mxu0 %v2748_v47  ;;  %v2865_v47 = vld [vmem:[%s3069_s23 + $0x104] ss:$100 sps:$4 sm:$0xff]  }
  0x42   : > { %1583 = vmatpush1.bf16.msra.mxu1 %v2779_v56  ;;  %v2848_v56 = vld [vmem:[%s3069_s23 + $0x418] ss:$100 sps:$4 sm:$0xff]  }
  0x43   : > { %1584 = vmatprep.subr.bf16.mxu1 %v2787_v57  ;;  %v2856_v57 = vld [vmem:[%s3069_s23 + $0x4e4] ss:$100 sps:$4 sm:$0xff]  }
  0x44   : > { %1542 = vmatpush1.bf16.msra.mxu0 %v2746_v50  ;;  %v2863_v50 = vld [vmem:[%s3069_s23 + $0x100] ss:$100 sps:$4 sm:$0xff]  }
  0x45   : > { %1543 = vmatprep.subr.bf16.mxu0 %v2754_v51  ;;  %v2871_v51 = vld [vmem:[%s3069_s23 + $0x1cc] ss:$100 sps:$4 sm:$0xff]  }
  0x46   : > { %1585 = vmatpush1.bf16.msra.mxu1 %v2785_v60  ;;  %v2854_v60 = vld [vmem:[%s3069_s23 + $0x4e0] ss:$100 sps:$4 sm:$0xff]  }
  0x47   : > { %1586 = vmatprep.subr.bf16.mxu1 %v2793_v61  ;;  %v2862_v61 = vld [vmem:[%s3069_s23 + $0x5ac] ss:$100 sps:$4 sm:$0xff]  }
  0x48   : > { %1544 = vmatpush1.bf16.msra.mxu0 %v2752_v54  ;;  %v2869_v54 = vld [vmem:[%s3069_s23 + $0x1c8] ss:$100 sps:$4 sm:$0xff]  }
  0x49   : > { %1545 = vmatprep.subr.bf16.mxu0 %v2760_v55  ;;  %v2877_v55 = vld [vmem:[%s3069_s23 + $0x294] ss:$100 sps:$4 sm:$0xff]  }
  0x4a   : > { %1587 = vmatpush1.bf16.msra.mxu1 %v2791_v1  ;;  %v2860_v1 = vld [vmem:[%s3069_s23 + $0x5a8] ss:$100 sps:$4 sm:$0xff]  }
  0x4b   : > { %1588 = vmatprep.subr.bf16.mxu1 %v2799_v2  ;;  %v2868_v2 = vld [vmem:[%s3069_s23 + $0x44] ss:$100 sps:$4 sm:$0xff]  }
  0x4c   : > { %1546 = vmatpush1.bf16.msra.mxu0 %v2758_v58  ;;  %v2875_v58 = vld [vmem:[%s3069_s23 + $0x290] ss:$100 sps:$4 sm:$0xff]  }
  0x4d   : > { %1547 = vmatprep.subr.bf16.mxu0 %v2766_v59  ;;  %v2883_v59 = vld [vmem:[%s3069_s23 + $0x35c] ss:$100 sps:$4 sm:$0xff]  }
  0x4e   : > { %1589 = vmatpush1.bf16.msra.mxu1 %v2797_v5  ;;  %v2866_v5 = vld [vmem:[%s3069_s23 + $0x40] ss:$100 sps:$4 sm:$0xff]  }
  0x4f   : > { %1590 = vmatprep.subr.bf16.mxu1 %v2805_v6  ;;  %v2874_v6 = vld [vmem:[%s3069_s23 + $0x10c] ss:$100 sps:$4 sm:$0xff]  }
  0x50   : > { %1548 = vmatpush1.bf16.msra.mxu0 %v2764_v62  ;;  %v2881_v62 = vld [vmem:[%s3069_s23 + $0x358] ss:$100 sps:$4 sm:$0xff]  }
  0x51   : > { %1619 = vmatprep.subr.bf16.mxu0 %v2772_v63  ;;  %v2889_v63 = vld [vmem:[%s3069_s23 + $0x424] ss:$100 sps:$4 sm:$0xff]  }
  0x52   : > { %1591 = vmatpush1.bf16.msra.mxu1 %v2803_v9  ;;  %v2872_v9 = vld [vmem:[%s3069_s23 + $0x108] ss:$100 sps:$4 sm:$0xff]  }
  0x53   : > { %1566 = vmatmul.mubr.bf16.vlgmr.msra.gmra.mrb[4].mxu0 %v3103_v32  ;;  %1662 = vmatprep.subr.bf16.mxu1 %v2811_v10  ;;  %v2880_v10 = vld [vmem:[%s3069_s23 + $0x1d4] ss:$100 sps:$4 sm:$0xff]  }
  0x54   : > { %1620 = vmatpush1.bf16.msra.mxu0 %v2770_v3  ;;  %1651 = vmatprep.mubr.bf16.mxu0 %v3013_v0  ;;  %v2887_v3 = vld [vmem:[%s3069_s23 + $0x420] ss:$100 sps:$4 sm:$0xff]  }
  0x55   : > { %1621 = vmatprep.subr.bf16.mxu0 %v2778_v4  ;;  %1609 = vmatmul.mubr.bf16.vlgmr.msra.gmra.mrb[4].mxu1 %v3103_v32  ;;  %v2895_v4 = vld [vmem:[%s3069_s23 + $0x4ec] ss:$100 sps:$4 sm:$0xff]  }
  0x56   : > { %1663 = vmatpush1.bf16.msra.mxu1 %v2809_v13  ;;  %1694 = vmatprep.mubr.bf16.mxu1 %v3013_v0  ;;  %v2878_v13 = vld [vmem:[%s3069_s23 + $0x1d0] ss:$100 sps:$4 sm:$0xff]  }
  0x57   : > { %1664 = vmatprep.subr.bf16.mxu1 %v2817_v14  ;;  %v2886_v14 = vld [vmem:[%s3069_s23 + $0x29c] ss:$100 sps:$4 sm:$0xff]  }
  0x58   : > { %1622 = vmatpush1.bf16.msra.mxu0 %v2776_v7  ;;  %v2893_v7 = vld [vmem:[%s3069_s23 + $0x4e8] ss:$100 sps:$4 sm:$0xff]  }
  0x59   : > { %1623 = vmatprep.subr.bf16.mxu0 %v2784_v8  ;;  %v2901_v8 = vld [vmem:[%s3069_s23 + $0x5b4] ss:$100 sps:$4 sm:$0xff]  }
  0x5a   : > { %1665 = vmatpush1.bf16.msra.mxu1 %v2815_v17  ;;  %v2884_v17 = vld [vmem:[%s3069_s23 + $0x298] ss:$100 sps:$4 sm:$0xff]  }
  0x5b   : > { %1666 = vmatprep.subr.bf16.mxu1 %v2823_v18  ;;  %v2892_v18 = vld [vmem:[%s3069_s23 + $0x364] ss:$100 sps:$4 sm:$0xff]  }
  0x5c   : > { %1624 = vmatpush1.bf16.msra.mxu0 %v2782_v11  ;;  %v2899_v11 = vld [vmem:[%s3069_s23 + $0x5b0] ss:$100 sps:$4 sm:$0xff]  }
  0x5d   : > { %1625 = vmatprep.subr.bf16.mxu0 %v2790_v12  ;;  %v2907_v12 = vld [vmem:[%s3069_s23 + $0x4c] ss:$100 sps:$4 sm:$0xff]  }
  0x5e   : > { %1667 = vmatpush1.bf16.msra.mxu1 %v2821_v21  ;;  %v2890_v21 = vld [vmem:[%s3069_s23 + $0x360] ss:$100 sps:$4 sm:$0xff]  }
  0x5f   : > { %1668 = vmatprep.subr.bf16.mxu1 %v2829_v22  ;;  %v2898_v22 = vld [vmem:[%s3069_s23 + $0x42c] ss:$100 sps:$4 sm:$0xff]  }
  0x60   : > { %1626 = vmatpush1.bf16.msra.mxu0 %v2788_v15  ;;  %v2905_v15 = vld [vmem:[%s3069_s23 + $0x48] ss:$100 sps:$4 sm:$0xff]  }
  0x61   : > { %1627 = vmatprep.subr.bf16.mxu0 %v2796_v16  ;;  %v2913_v16 = vld [vmem:[%s3069_s23 + $0x114] ss:$100 sps:$4 sm:$0xff]  }
  0x62   : > { %1669 = vmatpush1.bf16.msra.mxu1 %v2827_v25  ;;  %v2896_v25 = vld [vmem:[%s3069_s23 + $0x428] ss:$100 sps:$4 sm:$0xff]  }
  0x63   : > { %1670 = vmatprep.subr.bf16.mxu1 %v2835_v26  ;;  %v2904_v26 = vld [vmem:[%s3069_s23 + $0x4f4] ss:$100 sps:$4 sm:$0xff]  }
  0x64   : > { %1628 = vmatpush1.bf16.msra.mxu0 %v2794_v19  ;;  %v2911_v19 = vld [vmem:[%s3069_s23 + $0x110] ss:$100 sps:$4 sm:$0xff]  }
  0x65   : > { %1629 = vmatprep.subr.bf16.mxu0 %v2802_v20  ;;  %v2919_v20 = vld [vmem:[%s3069_s23 + $0x1dc] ss:$100 sps:$4 sm:$0xff]  }
  0x66   : > { %1671 = vmatpush1.bf16.msra.mxu1 %v2833_v29  ;;  %v2902_v29 = vld [vmem:[%s3069_s23 + $0x4f0] ss:$100 sps:$4 sm:$0xff]  }
  0x67   : > { %1672 = vmatprep.subr.bf16.mxu1 %v2841_v30  ;;  %v2910_v30 = vld [vmem:[%s3069_s23 + $0x5bc] ss:$100 sps:$4 sm:$0xff]  }
  0x68   : > { %1630 = vmatpush1.bf16.msra.mxu0 %v2800_v23  ;;  %v2917_v23 = vld [vmem:[%s3069_s23 + $0x1d8] ss:$100 sps:$4 sm:$0xff]  }
  0x69   : > { %1631 = vmatprep.subr.bf16.mxu0 %v2808_v24  ;;  %v2925_v24 = vld [vmem:[%s3069_s23 + $0x2a4] ss:$100 sps:$4 sm:$0xff]  }
  0x6a   : > { %1673 = vmatpush1.bf16.msra.mxu1 %v2839_v34  ;;  %v2908_v34 = vld [vmem:[%s3069_s23 + $0x5b8] ss:$100 sps:$4 sm:$0xff]  }
  0x6b   : > { %1674 = vmatprep.subr.bf16.mxu1 %v2847_v35  ;;  %v2916_v35 = vld [vmem:[%s3069_s23 + $0x54] ss:$100 sps:$4 sm:$0xff]  }
  0x6c   : > { %1632 = vmatpush1.bf16.msra.mxu0 %v2806_v27  ;;  %v2923_v27 = vld [vmem:[%s3069_s23 + $0x2a0] ss:$100 sps:$4 sm:$0xff]  }
  0x6d   : > { %1633 = vmatprep.subr.bf16.mxu0 %v2814_v28  ;;  %v2931_v28 = vld [vmem:[%s3069_s23 + $0x36c] ss:$100 sps:$4 sm:$0xff]  }
  0x6e   : > { %1675 = vmatpush1.bf16.msra.mxu1 %v2845_v38  ;;  %v2914_v38 = vld [vmem:[%s3069_s23 + $0x50] ss:$100 sps:$4 sm:$0xff]  }
  0x6f   : > { %1676 = vmatprep.subr.bf16.mxu1 %v2853_v39  ;;  %v2922_v39 = vld [vmem:[%s3069_s23 + $0x11c] ss:$100 sps:$4 sm:$0xff]  }
  0x70   : > { %1634 = vmatpush1.bf16.msra.mxu0 %v2812_v31  ;;  %v2929_v31 = vld [vmem:[%s3069_s23 + $0x368] ss:$100 sps:$4 sm:$0xff]  }
  0x71   : > { %1705 = vmatprep.subr.bf16.mxu0 %v2820_v33  ;;  %v2937_v33 = vld [vmem:[%s3069_s23 + $0x434] ss:$100 sps:$4 sm:$0xff]  }
  0x72   : > { %1677 = vmatpush1.bf16.msra.mxu1 %v2851_v42  ;;  %v2920_v42 = vld [vmem:[%s3069_s23 + $0x118] ss:$100 sps:$4 sm:$0xff]  }
  0x73   : > { %1652 = vmatmul.mubr.bf16.vlgmr.msra.gmra.mrb[8].mxu0 %v3103_v32  ;;  %1748 = vmatprep.subr.bf16.mxu1 %v2859_v43  ;;  %v2928_v43 = vld [vmem:[%s3069_s23 + $0x1e4] ss:$100 sps:$4 sm:$0xff]  }
  0x74   : > { %1706 = vmatpush1.bf16.msra.mxu0 %v2818_v36  ;;  %1737 = vmatprep.mubr.bf16.mxu0 %v3013_v0  ;;  %v2935_v36 = vld [vmem:[%s3069_s23 + $0x430] ss:$100 sps:$4 sm:$0xff]  }
  0x75   : > { %1707 = vmatprep.subr.bf16.mxu0 %v2826_v37  ;;  %1695 = vmatmul.mubr.bf16.vlgmr.msra.gmra.mrb[8].mxu1 %v3103_v32  ;;  %v2943_v37 = vld [vmem:[%s3069_s23 + $0x4fc] ss:$100 sps:$4 sm:$0xff]  }
  0x76   : > { %1749 = vmatpush1.bf16.msra.mxu1 %v2857_v46  ;;  %1780 = vmatprep.mubr.bf16.mxu1 %v3013_v0  ;;  %v2926_v46 = vld [vmem:[%s3069_s23 + $0x1e0] ss:$100 sps:$4 sm:$0xff]  }
  0x77   : > { %1750 = vmatprep.subr.bf16.mxu1 %v2865_v47  ;;  %v2934_v47 = vld [vmem:[%s3069_s23 + $0x2ac] ss:$100 sps:$4 sm:$0xff]  }
  0x78   : > { %1708 = vmatpush1.bf16.msra.mxu0 %v2824_v40  ;;  %v2941_v40 = vld [vmem:[%s3069_s23 + $0x4f8] ss:$100 sps:$4 sm:$0xff]  }
  0x79   : > { %1709 = vmatprep.subr.bf16.mxu0 %v2832_v41  ;;  %v2949_v41 = vld [vmem:[%s3069_s23 + $0x5c4] ss:$100 sps:$4 sm:$0xff]  }
  0x7a   : > { %1751 = vmatpush1.bf16.msra.mxu1 %v2863_v50  ;;  %v2932_v50 = vld [vmem:[%s3069_s23 + $0x2a8] ss:$100 sps:$4 sm:$0xff]  }
  0x7b   : > { %1752 = vmatprep.subr.bf16.mxu1 %v2871_v51  ;;  %v2940_v51 = vld [vmem:[%s3069_s23 + $0x374] ss:$100 sps:$4 sm:$0xff]  }
  0x7c   : > { %1710 = vmatpush1.bf16.msra.mxu0 %v2830_v44  ;;  %v2947_v44 = vld [vmem:[%s3069_s23 + $0x5c0] ss:$100 sps:$4 sm:$0xff]  }
  0x7d   : > { %1711 = vmatprep.subr.bf16.mxu0 %v2838_v45  ;;  %v2955_v45 = vld [vmem:[%s3069_s23 + $0x5c] ss:$100 sps:$4 sm:$0xff]  }
  0x7e   : > { %1753 = vmatpush1.bf16.msra.mxu1 %v2869_v54  ;;  %v2938_v54 = vld [vmem:[%s3069_s23 + $0x370] ss:$100 sps:$4 sm:$0xff]  }
  0x7f   : > { %1754 = vmatprep.subr.bf16.mxu1 %v2877_v55  ;;  %v2946_v55 = vld [vmem:[%s3069_s23 + $0x43c] ss:$100 sps:$4 sm:$0xff]  }
  0x80   : > { %1712 = vmatpush1.bf16.msra.mxu0 %v2836_v48  ;;  %v2953_v48 = vld [vmem:[%s3069_s23 + $0x58] ss:$100 sps:$4 sm:$0xff]  }
  0x81   : > { %1713 = vmatprep.subr.bf16.mxu0 %v2844_v49  ;;  %v2961_v49 = vld [vmem:[%s3069_s23 + $0x124] ss:$100 sps:$4 sm:$0xff]  }
  0x82   : > { %1755 = vmatpush1.bf16.msra.mxu1 %v2875_v58  ;;  %v2944_v58 = vld [vmem:[%s3069_s23 + $0x438] ss:$100 sps:$4 sm:$0xff]  }
  0x83   : > { %1756 = vmatprep.subr.bf16.mxu1 %v2883_v59  ;;  %v2966_v59 = vld [vmem:[%s3069_s23 + $0x2b0] ss:$100 sps:$4 sm:$0xff]  }
  0x84   : > { %1714 = vmatpush1.bf16.msra.mxu0 %v2842_v52  ;;  %v2959_v52 = vld [vmem:[%s3069_s23 + $0x120] ss:$100 sps:$4 sm:$0xff]  }
  0x85   : > { %1715 = vmatprep.subr.bf16.mxu0 %v2850_v53  ;;  %v2964_v53 = vld [vmem:[%s3069_s23 + $0x1ec] ss:$100 sps:$4 sm:$0xff]  }
  0x86   : > { %1757 = vmatpush1.bf16.msra.mxu1 %v2881_v62  ;;  %v2958_v62 = vld [vmem:[%s3069_s23 + $0x5cc] ss:$100 sps:$4 sm:$0xff]  }
  0x87   : > { %1758 = vmatprep.subr.bf16.mxu1 %v2889_v63  ;;  %v2970_v63 = vld [vmem:[%s3069_s23 + $0x378] ss:$100 sps:$4 sm:$0xff]  }
  0x88   : > { %1716 = vmatpush1.bf16.msra.mxu0 %v2848_v56  ;;  %v2962_v56 = vld [vmem:[%s3069_s23 + $0x1e8] ss:$100 sps:$4 sm:$0xff]  }
  0x89   : > { %1717 = vmatprep.subr.bf16.mxu0 %v2856_v57  ;;  %v2968_v57 = vld [vmem:[%s3069_s23 + $0x2b4] ss:$100 sps:$4 sm:$0xff]  }
  0x8a   : > { %1759 = vmatpush1.bf16.msra.mxu1 %v2887_v3  ;;  %v2974_v3 = vld [vmem:[%s3069_s23 + $0x440] ss:$100 sps:$4 sm:$0xff]  }
  0x8b   : > { %1760 = vmatprep.subr.bf16.mxu1 %v2895_v4  ;;  %v2980_v4 = vld [vmem:[%s3069_s23 + $0x50c] ss:$100 sps:$4 sm:$0xff]  }
  0x8c   : > { %1718 = vmatpush1.bf16.msra.mxu0 %v2854_v60  ;;  %v2972_v60 = vld [vmem:[%s3069_s23 + $0x37c] ss:$100 sps:$4 sm:$0xff]  }
  0x8d   : > { %1719 = vmatprep.subr.bf16.mxu0 %v2862_v61  ;;  %v2950_v61 = vld [vmem:[%s3069_s23 + $0x500] ss:$100 sps:$4 sm:$0xff]  }
  0x8e   : > { %1761 = vmatpush1.bf16.msra.mxu1 %v2893_v7  ;;  %v2978_v7 = vld [vmem:[%s3069_s23 + $0x508] ss:$100 sps:$4 sm:$0xff]  }
  0x8f   : > { %1762 = vmatprep.subr.bf16.mxu1 %v2901_v8  ;;  %v2984_v8 = vld [vmem:[%s3069_s23 + $0x5d4] ss:$100 sps:$4 sm:$0xff]  }
  0x90   : > { %1720 = vmatpush1.bf16.msra.mxu0 %v2860_v1  ;;  %v2976_v1 = vld [vmem:[%s3069_s23 + $0x444] ss:$100 sps:$4 sm:$0xff]  }
  0x91   : > { %1791 = vmatprep.subr.bf16.mxu0 %v2868_v2  ;;  %v2956_v2 = vld [vmem:[%s3069_s23 + $0x5c8] ss:$100 sps:$4 sm:$0xff]  }
  0x92   : > { %1763 = vmatpush1.bf16.msra.mxu1 %v2899_v11  ;;  %v2973_v11 = vld [vmem:[%s3069_s23 + $0x1f0] ss:$100 sps:$4 sm:$0xff]  }
  0x93   : > { %1738 = vmatmul.mubr.bf16.vlgmr.msra.gmra.mrb[12].mxu0 %v3103_v32  ;;  %1834 = vmatprep.subr.bf16.mxu1 %v2907_v12  ;;  %v2988_v12 = vld [vmem:[%s3396_s1] sm:$0xff]  }
  0x94   : > { %1792 = vmatpush1.bf16.msra.mxu0 %v2866_v5  ;;  %1823 = vmatprep.mubr.bf16.mxu0 %v3013_v0  ;;  %v2965_v5 = vld [vmem:[%s3069_s23 + $0x60] ss:$100 sps:$4 sm:$0xff]  }
  0x95   : > { %1793 = vmatprep.subr.bf16.mxu0 %v2874_v6  ;;  %1781 = vmatmul.mubr.bf16.vlgmr.msra.gmra.mrb[12].mxu1 %v3103_v32  ;;  %v3014_v6 = vmov 0.0  }
  0x96   : > { %1835 = vmatpush1.bf16.msra.mxu1 %v2905_v15  ;;  %1866 = vmatprep.mubr.bf16.mxu1 %v3013_v0  ;;  %v2986_v15 = vld [vmem:[%s3069_s23 + $0x510] ss:$100 sps:$4 sm:$0xff]  }
  0x97   : > { %1836 = vmatprep.subr.bf16.mxu1 %v2913_v16  ;;  %v2987_v16 = vld [vmem:[%s3069_s23 + $0x5d8] ss:$100 sps:$4 sm:$0xff]  }
  0x98   : > { %1794 = vmatpush1.bf16.msra.mxu0 %v2872_v9  ;;  %v2969_v9 = vld [vmem:[%s3069_s23 + $0x128] ss:$100 sps:$4 sm:$0xff]  }
  0x99   : > { %1795 = vmatprep.subr.bf16.mxu0 %v2880_v10  ;;  %v2982_v10 = vld [vmem:[%s3069_s23 + $0x5d0] ss:$100 sps:$4 sm:$0xff]  }
  0x9a   : > { %1837 = vmatpush1.bf16.msra.mxu1 %v2911_v19 }
  0x9b   : > { %1838 = vmatprep.subr.bf16.mxu1 %v2919_v20 }
  0x9c   : > { %1796 = vmatpush1.bf16.msra.mxu0 %v2878_v13  ;;  %v2981_v13 = vld [vmem:[%s3069_s23 + $0x380] ss:$100 sps:$4 sm:$0xff]  }
  0x9d   : > { %1797 = vmatprep.subr.bf16.mxu0 %v2886_v14  ;;  %v2985_v14 = vld [vmem:[%s3069_s23 + $0x448] ss:$100 sps:$4 sm:$0xff]  }
  0x9e   : > { %1839 = vmatpush1.bf16.msra.mxu1 %v2917_v23 }
  0x9f   : > { %1840 = vmatprep.subr.bf16.mxu1 %v2925_v24 }
  0xa0   : > { %1798 = vmatpush1.bf16.msra.mxu0 %v2884_v17  ;;  %v3300_v17 = vpop.permute.xlu0 %425 }
  0xa1   : > { %1799 = vmatprep.subr.bf16.mxu0 %v2892_v18 }
  0xa2   : > { %1841 = vmatpush1.bf16.msra.mxu1 %v2923_v27 }
  0xa3   : > { %1842 = vmatprep.subr.bf16.mxu1 %v2931_v28 }
  0xa4   : > { %1800 = vmatpush1.bf16.msra.mxu0 %v2890_v21  ;;  %v3302_v19 = vpop.permute.xlu0 %430 }
  0xa5   : > { %1801 = vmatprep.subr.bf16.mxu0 %v2898_v22 }
  0xa6   : > { %1843 = vmatpush1.bf16.msra.mxu1 %v2929_v31 }
  0xa7   : > { %1844 = vmatprep.subr.bf16.mxu1 %v2937_v33 }
  0xa8   : > { %1802 = vmatpush1.bf16.msra.mxu0 %v2896_v25 }
  0xa9   : > { %1803 = vmatprep.subr.bf16.mxu0 %v2904_v26 }
  0xaa   : > { %1845 = vmatpush1.bf16.msra.mxu1 %v2935_v36 }
  0xab   : > { %1846 = vmatprep.subr.bf16.mxu1 %v2943_v37 }
  0xac   : > { %1804 = vmatpush1.bf16.msra.mxu0 %v2902_v29 }
  0xad   : > { %1805 = vmatprep.subr.bf16.mxu0 %v2910_v30 }
  0xae   : > { %1847 = vmatpush1.bf16.msra.mxu1 %v2941_v40 }
  0xaf   : > { %1848 = vmatprep.subr.bf16.mxu1 %v2949_v41 }
  0xb0   : > { %1806 = vmatpush1.bf16.msra.mxu0 %v2908_v34 }
  0xb1   : > { %1877 = vmatprep.subr.bf16.mxu0 %v2916_v35 }
  0xb2   : > { %1849 = vmatpush1.bf16.msra.mxu1 %v2947_v44 }
  0xb3   : > { %1824 = vmatmul.mubr.bf16.vlgmr.msra.gmra.mrb[16].mxu0 %v3103_v32  ;;  %1920 = vmatprep.subr.bf16.mxu1 %v2955_v45 }
  0xb4   : > { %1878 = vmatpush1.bf16.msra.mxu0 %v2914_v38  ;;  %1909 = vmatprep.mubr.bf16.mxu0 %v3013_v0 }
  0xb5   : > { %1879 = vmatprep.subr.bf16.mxu0 %v2922_v39  ;;  %1867 = vmatmul.mubr.bf16.vlgmr.msra.gmra.mrb[16].mxu1 %v3103_v32 }
  0xb6   : > { %1921 = vmatpush1.bf16.msra.mxu1 %v2953_v48  ;;  %1952 = vmatprep.mubr.bf16.mxu1 %v3013_v0  ;;  %v2952_v0 = vld [vmem:[%s3069_s23 + $0x504] ss:$100 sps:$4 sm:$0xff]  }
  0xb7   : > { %1922 = vmatprep.subr.bf16.mxu1 %v2961_v49 }
  0xb8   : > { %1880 = vmatpush1.bf16.msra.mxu0 %v2920_v42 }
  0xb9   : > { %1881 = vmatprep.subr.bf16.mxu0 %v2928_v43 }
  0xba   : > { %1923 = vmatpush1.bf16.msra.mxu1 %v2959_v52 }
  0xbb   : > { %1924 = vmatprep.subr.bf16.mxu1 %v2964_v53 }
  0xbc   : > { %1882 = vmatpush1.bf16.msra.mxu0 %v2926_v46 }
  0xbd   : > { %1883 = vmatprep.subr.bf16.mxu0 %v2934_v47 }
  0xbe   : > { %1925 = vmatpush1.bf16.msra.mxu1 %v2962_v56 }
  0xbf   : > { %1926 = vmatprep.subr.bf16.mxu1 %v2968_v57 }
  0xc0   : > { %1884 = vmatpush1.bf16.msra.mxu0 %v2932_v50 }
  0xc1   : > { %1885 = vmatprep.subr.bf16.mxu0 %v2940_v51 }
  0xc2   : > { %1927 = vmatpush1.bf16.msra.mxu1 %v2966_v59 }
  0xc3   : > { %1928 = vmatprep.subr.bf16.mxu1 %v2972_v60 }
  0xc4   : > { %1886 = vmatpush1.bf16.msra.mxu0 %v2938_v54 }
  0xc5   : > { %1887 = vmatprep.subr.bf16.mxu0 %v2946_v55 }
  0xc6   : > { %1929 = vmatpush1.bf16.msra.mxu1 %v2970_v63 }
  0xc7   : > { %1930 = vmatprep.subr.bf16.mxu1 %v2976_v1 }
  0xc8   : > { %1888 = vmatpush1.bf16.msra.mxu0 %v2944_v58 }
  0xc9   : > { %1889 = vmatprep.subr.bf16.mxu0 %v2952_v0 }
  0xca   : > { %1931 = vmatpush1.bf16.msra.mxu1 %v2974_v3 }
  0xcb   : > { %1932 = vmatprep.subr.bf16.mxu1 %v2980_v4 }
  0xcc   : > { %1890 = vmatpush1.bf16.msra.mxu0 %v2950_v61 }
  0xcd   : > { %1891 = vmatprep.subr.bf16.mxu0 %v2958_v62 }
  0xce   : > { %1933 = vmatpush1.bf16.msra.mxu1 %v2978_v7 }
  0xcf   : > { %1934 = vmatprep.subr.bf16.mxu1 %v2984_v8 }
  0xd0   : > { %1892 = vmatpush1.bf16.msra.mxu0 %v2956_v2 }
  0xd1   : > { %2641 = vmatprep.subr.bf16.mxu0 %v3014_v6 }
  0xd2   : > { %1935 = vmatpush1.bf16.msra.mxu1 %v2982_v10 }
  0xd3   : > { %1910 = vmatmul.mubr.bf16.vlgmr.msra.gmra.mrb[20].mxu0 %v3103_v32  ;;  %v2977_v32 = vld [vmem:[%s3069_s23 + $0x2b8] ss:$100 sps:$4 sm:$0xff]  }
  0xd4   : > { %2642 = vmatpush3.bf16.msra.mxu0 %v2965_v5  ;;  %2657 = vmatprep.mubr.msk.bf16.mxu0 %vm3015_vm0, %v3014_v6 }
  0xd5   : > { %2643 = vmatprep.subr.bf16.mxu0 %v3014_v6  ;;  %1953 = vmatmul.mubr.bf16.vlgmr.msra.gmra.mrb[20].mxu1 %v2988_v12 }
  0xd8   : > { %2644 = vmatpush3.bf16.msra.mxu0 %v2969_v9 }
  0xd9   : > { %2645 = vmatprep.subr.bf16.mxu0 %v3014_v6 }
  0xdc   : > { %2646 = vmatpush3.bf16.msra.mxu0 %v2973_v11 }
  0xdd   : > { %2647 = vmatprep.subr.bf16.mxu0 %v3014_v6 }
  0xe0   : > { %2648 = vmatpush3.bf16.msra.mxu0 %v2977_v32 }
  0xe1   : > { %2649 = vmatprep.subr.bf16.mxu0 %v3014_v6 }
  0xe4   : > { %2650 = vmatpush3.bf16.msra.mxu0 %v2981_v13 }
  0xe5   : > { %2651 = vmatprep.subr.bf16.mxu0 %v3014_v6 }
  0xe8   : > { %2652 = vmatpush3.bf16.msra.mxu0 %v2985_v14 }
  0xe9   : > { %2653 = vmatprep.subr.bf16.mxu0 %v3014_v6 }
  0xec   : > { %2654 = vmatpush3.bf16.msra.mxu0 %v2986_v15 }
  0xed   : > { %2655 = vmatprep.subr.bf16.mxu0 %v3014_v6 }
  0xf0   : > { %2656 = vmatpush3.bf16.msra.mxu0 %v2987_v16 }
  0xf3   : > { %2658 = vmatmul.mubr.bf16.vlgmr.msra.gmra.mrb[24].mxu0 %v2988_v12 }
 0x106   : > { %v1481_v18 = vpop.f32.mrb[0].mxu0 }
 0x107   : > { %v1482_v20 = vadd.f32 %v1481_v18, %v3300_v17  ;;  %v1483_v21 = vpop.f32.mrb[1].mxu0 }
 0x108   : > { %v1484_v22 = vadd.f32 %v1483_v21, %v3300_v17  ;;  %v1485_v23 = vpop.f32.mrb[2].mxu0  ;;  %v1524_v38 = vpop.f32.mrb[0].mxu1 }
 0x109   : > { %v2004_v24 = vmul.f32 0.2, %v1482_v20  ;;  %v1486_v25 = vadd.f32 %v1485_v23, %v3302_v19  ;;  %v1487_v26 = vpop.f32.mrb[3].mxu0  ;;  %v1525_v39 = vadd.f32 %v1524_v38, %v3300_v17  ;;  %v1526_v40 = vpop.f32.mrb[1].mxu1 }
 0x10a   : > { %v2005_v27 = vmul.f32 0.2, %v1484_v22  ;;  %v1488_v28 = vadd.f32 %v1487_v26, %v3302_v19  ;;  %v1527_v41 = vadd.f32 %v1526_v40, %v3300_v17  ;;  %v1528_v42 = vpop.f32.mrb[2].mxu1 }
 0x10b   : > { %v2054_v29 = vmax.f32 %v1482_v20, %v2004_v24  ;;  %v2029_v30 = vmul.f32 0.2, %v1486_v25  ;;  %v2006_v43 = vmul.f32 0.2, %v1525_v39  ;;  %v1529_v44 = vadd.f32 %v1528_v42, %v3302_v19  ;;  %v1530_v45 = vpop.f32.mrb[3].mxu1 }
 0x10c   : > { %v2055_v31 = vmax.f32 %v1484_v22, %v2005_v27  ;;  %v2030_v33 = vmul.f32 0.2, %v1488_v28  ;;  %v2007_v46 = vmul.f32 0.2, %v1527_v41  ;;  %v1531_v47 = vadd.f32 %v1530_v45, %v3302_v19 }
 0x10d   : > { %v2079_v34 = vmax.f32 %v1486_v25, %v2029_v30  ;;  %v2056_v48 = vmax.f32 %v1525_v39, %v2006_v43  ;;  %v2031_v49 = vmul.f32 0.2, %v1529_v44 }
 0x10e   : > { %v2606_v35 = vpack.c.bf16 %v2055_v31, %v2054_v29  ;;  %v2080_v36 = vmax.f32 %v1488_v28, %v2030_v33  ;;  %v2057_v50 = vmax.f32 %v1527_v41, %v2007_v46  ;;  %v2032_v51 = vmul.f32 0.2, %v1531_v47 }
 0x10f   : > { %v2081_v52 = vmax.f32 %v1529_v44, %v2031_v49 }
 0x110   : > { %2256 = vst [vmem:[%s3312_s4] sm:$0xff] %v2606_v35  ;;  %v2619_v37 = vpack.c.bf16 %v2080_v36, %v2079_v34  ;;  %v2607_v53 = vpack.c.bf16 %v2057_v50, %v2056_v48  ;;  %v2082_v54 = vmax.f32 %v1531_v47, %v2032_v51 }
 0x112   : > { %2270 = vst [vmem:[%s3312_s4 + $0x64] sm:$0xff] %v2619_v37  ;;  %2257 = vst [vmem:[%s3312_s4 + $0x8] sm:$0xff] %v2607_v53  ;;  %v2620_v55 = vpack.c.bf16 %v2082_v54, %v2081_v52 }
 0x114   : > { %2271 = vst [vmem:[%s3312_s4 + $0x6c] sm:$0xff] %v2620_v55 }
 0x126   : > { %v1567_v56 = vpop.f32.mrb[4].mxu0 }
 0x127   : > { %v1568_v57 = vadd.f32 %v1567_v56, %v3300_v17  ;;  %v1569_v58 = vpop.f32.mrb[5].mxu0 }
 0x128   : > { %v1570_v0 = vadd.f32 %v1569_v58, %v3300_v17  ;;  %v1571_v59 = vpop.f32.mrb[6].mxu0  ;;  %v1610_v10 = vpop.f32.mrb[4].mxu1 }
 0x129   : > { %v2008_v60 = vmul.f32 0.2, %v1568_v57  ;;  %v1572_v61 = vadd.f32 %v1571_v59, %v3302_v19  ;;  %v1573_v62 = vpop.f32.mrb[7].mxu0  ;;  %v1611_v11 = vadd.f32 %v1610_v10, %v3300_v17  ;;  %v1612_v32 = vpop.f32.mrb[5].mxu1 }
 0x12a   : > { %v2009_v63 = vmul.f32 0.2, %v1570_v0  ;;  %v1574_v1 = vadd.f32 %v1573_v62, %v3302_v19  ;;  %v1613_v12 = vadd.f32 %v1612_v32, %v3300_v17  ;;  %v1614_v13 = vpop.f32.mrb[6].mxu1 }
 0x12b   : > { %v2058_v2 = vmax.f32 %v1568_v57, %v2008_v60  ;;  %v2033_v3 = vmul.f32 0.2, %v1572_v61  ;;  %v2010_v14 = vmul.f32 0.2, %v1611_v11  ;;  %v1615_v15 = vadd.f32 %v1614_v13, %v3302_v19  ;;  %v1616_v16 = vpop.f32.mrb[7].mxu1 }
 0x12c   : > { %v2059_v4 = vmax.f32 %v1570_v0, %v2009_v63  ;;  %v2034_v5 = vmul.f32 0.2, %v1574_v1  ;;  %v2011_v18 = vmul.f32 0.2, %v1613_v12  ;;  %v1617_v20 = vadd.f32 %v1616_v16, %v3302_v19 }
 0x12d   : > { %v2083_v6 = vmax.f32 %v1572_v61, %v2033_v3  ;;  %v2060_v21 = vmax.f32 %v1611_v11, %v2010_v14  ;;  %v2035_v22 = vmul.f32 0.2, %v1615_v15 }
 0x12e   : > { %v2608_v7 = vpack.c.bf16 %v2059_v4, %v2058_v2  ;;  %v2084_v8 = vmax.f32 %v1574_v1, %v2034_v5  ;;  %v2061_v23 = vmax.f32 %v1613_v12, %v2011_v18  ;;  %v2036_v24 = vmul.f32 0.2, %v1617_v20 }
 0x12f   : > { %v2085_v25 = vmax.f32 %v1615_v15, %v2035_v22 }
 0x130   : > { %2258 = vst [vmem:[%s3312_s4 + $0x10] sm:$0xff] %v2608_v7  ;;  %v2621_v9 = vpack.c.bf16 %v2084_v8, %v2083_v6  ;;  %v2609_v26 = vpack.c.bf16 %v2061_v23, %v2060_v21  ;;  %v2086_v27 = vmax.f32 %v1617_v20, %v2036_v24 }
 0x132   : > { %2272 = vst [vmem:[%s3312_s4 + $0x74] sm:$0xff] %v2621_v9  ;;  %2259 = vst [vmem:[%s3312_s4 + $0x18] sm:$0xff] %v2609_v26  ;;  %v2622_v28 = vpack.c.bf16 %v2086_v27, %v2085_v25 }
 0x134   : > { %2273 = vst [vmem:[%s3312_s4 + $0x7c] sm:$0xff] %v2622_v28 }
 0x146   : > { %v1653_v29 = vpop.f32.mrb[8].mxu0 }
 0x147   : > { %v1654_v30 = vadd.f32 %v1653_v29, %v3300_v17  ;;  %v1655_v31 = vpop.f32.mrb[9].mxu0 }
 0x148   : > { %v1656_v33 = vadd.f32 %v1655_v31, %v3300_v17  ;;  %v1657_v34 = vpop.f32.mrb[10].mxu0  ;;  %v1696_v48 = vpop.f32.mrb[8].mxu1 }
 0x149   : > { %v2012_v35 = vmul.f32 0.2, %v1654_v30  ;;  %v1658_v36 = vadd.f32 %v1657_v34, %v3302_v19  ;;  %v1659_v37 = vpop.f32.mrb[11].mxu0  ;;  %v1697_v49 = vadd.f32 %v1696_v48, %v3300_v17  ;;  %v1698_v50 = vpop.f32.mrb[9].mxu1 }
 0x14a   : > { %v2013_v38 = vmul.f32 0.2, %v1656_v33  ;;  %v1660_v39 = vadd.f32 %v1659_v37, %v3302_v19  ;;  %v1699_v51 = vadd.f32 %v1698_v50, %v3300_v17  ;;  %v1700_v52 = vpop.f32.mrb[10].mxu1 }
 0x14b   : > { %v2062_v40 = vmax.f32 %v1654_v30, %v2012_v35  ;;  %v2037_v41 = vmul.f32 0.2, %v1658_v36  ;;  %v2014_v53 = vmul.f32 0.2, %v1697_v49  ;;  %v1701_v54 = vadd.f32 %v1700_v52, %v3302_v19  ;;  %v1702_v55 = vpop.f32.mrb[11].mxu1 }
 0x14c   : > { %v2063_v42 = vmax.f32 %v1656_v33, %v2013_v38  ;;  %v2038_v43 = vmul.f32 0.2, %v1660_v39  ;;  %v2015_v56 = vmul.f32 0.2, %v1699_v51  ;;  %v1703_v57 = vadd.f32 %v1702_v55, %v3302_v19 }
 0x14d   : > { %v2087_v44 = vmax.f32 %v1658_v36, %v2037_v41  ;;  %v2064_v58 = vmax.f32 %v1697_v49, %v2014_v53  ;;  %v2039_v0 = vmul.f32 0.2, %v1701_v54 }
 0x14e   : > { %v2610_v45 = vpack.c.bf16 %v2063_v42, %v2062_v40  ;;  %v2088_v46 = vmax.f32 %v1660_v39, %v2038_v43  ;;  %v2065_v59 = vmax.f32 %v1699_v51, %v2015_v56  ;;  %v2040_v60 = vmul.f32 0.2, %v1703_v57 }
 0x14f   : > { %v2089_v61 = vmax.f32 %v1701_v54, %v2039_v0 }
 0x150   : > { %2260 = vst [vmem:[%s3312_s4 + $0x20] sm:$0xff] %v2610_v45  ;;  %v2623_v47 = vpack.c.bf16 %v2088_v46, %v2087_v44  ;;  %v2611_v62 = vpack.c.bf16 %v2065_v59, %v2064_v58  ;;  %v2090_v63 = vmax.f32 %v1703_v57, %v2040_v60 }
 0x152   : > { %2274 = vst [vmem:[%s3312_s4 + $0x84] sm:$0xff] %v2623_v47  ;;  %2261 = vst [vmem:[%s3312_s4 + $0x28] sm:$0xff] %v2611_v62  ;;  %v2624_v1 = vpack.c.bf16 %v2090_v63, %v2089_v61 }
 0x154   : > { %2275 = vst [vmem:[%s3312_s4 + $0x8c] sm:$0xff] %v2624_v1 }
 0x166   : > { %v1739_v2 = vpop.f32.mrb[12].mxu0 }
 0x167   : > { %v1740_v3 = vadd.f32 %v1739_v2, %v3300_v17  ;;  %v1741_v4 = vpop.f32.mrb[13].mxu0 }
 0x168   : > { %v1742_v5 = vadd.f32 %v1741_v4, %v3300_v17  ;;  %v1743_v6 = vpop.f32.mrb[14].mxu0  ;;  %v1782_v21 = vpop.f32.mrb[12].mxu1 }
 0x169   : > { %v2016_v7 = vmul.f32 0.2, %v1740_v3  ;;  %v1744_v8 = vadd.f32 %v1743_v6, %v3302_v19  ;;  %v1745_v9 = vpop.f32.mrb[15].mxu0  ;;  %v1783_v22 = vadd.f32 %v1782_v21, %v3300_v17  ;;  %v1784_v23 = vpop.f32.mrb[13].mxu1 }
 0x16a   : > { %v2017_v10 = vmul.f32 0.2, %v1742_v5  ;;  %v1746_v11 = vadd.f32 %v1745_v9, %v3302_v19  ;;  %v1785_v24 = vadd.f32 %v1784_v23, %v3300_v17  ;;  %v1786_v25 = vpop.f32.mrb[14].mxu1 }
 0x16b   : > { %v2066_v32 = vmax.f32 %v1740_v3, %v2016_v7  ;;  %v2041_v12 = vmul.f32 0.2, %v1744_v8  ;;  %v2018_v26 = vmul.f32 0.2, %v1783_v22  ;;  %v1787_v27 = vadd.f32 %v1786_v25, %v3302_v19  ;;  %v1788_v28 = vpop.f32.mrb[15].mxu1 }
 0x16c   : > { %v2067_v13 = vmax.f32 %v1742_v5, %v2017_v10  ;;  %v2042_v14 = vmul.f32 0.2, %v1746_v11  ;;  %v2019_v29 = vmul.f32 0.2, %v1785_v24  ;;  %v1789_v30 = vadd.f32 %v1788_v28, %v3302_v19 }
 0x16d   : > { %v2091_v15 = vmax.f32 %v1744_v8, %v2041_v12  ;;  %v2068_v31 = vmax.f32 %v1783_v22, %v2018_v26  ;;  %v2043_v33 = vmul.f32 0.2, %v1787_v27 }
 0x16e   : > { %v2612_v16 = vpack.c.bf16 %v2067_v13, %v2066_v32  ;;  %v2092_v18 = vmax.f32 %v1746_v11, %v2042_v14  ;;  %v2069_v34 = vmax.f32 %v1785_v24, %v2019_v29  ;;  %v2044_v35 = vmul.f32 0.2, %v1789_v30 }
 0x16f   : > { %v2093_v36 = vmax.f32 %v1787_v27, %v2043_v33 }
 0x170   : > { %2262 = vst [vmem:[%s3312_s4 + $0x30] sm:$0xff] %v2612_v16  ;;  %v2625_v20 = vpack.c.bf16 %v2092_v18, %v2091_v15  ;;  %v2613_v37 = vpack.c.bf16 %v2069_v34, %v2068_v31  ;;  %v2094_v38 = vmax.f32 %v1789_v30, %v2044_v35 }
 0x172   : > { %2276 = vst [vmem:[%s3312_s4 + $0x94] sm:$0xff] %v2625_v20  ;;  %2263 = vst [vmem:[%s3312_s4 + $0x38] sm:$0xff] %v2613_v37  ;;  %v2626_v39 = vpack.c.bf16 %v2094_v38, %v2093_v36 }
 0x174   : > { %2277 = vst [vmem:[%s3312_s4 + $0x9c] sm:$0xff] %v2626_v39 }
 0x186   : > { %v1825_v40 = vpop.f32.mrb[16].mxu0 }
 0x187   : > { %v1826_v41 = vadd.f32 %v1825_v40, %v3300_v17  ;;  %v1827_v42 = vpop.f32.mrb[17].mxu0 }
 0x188   : > { %v1828_v43 = vadd.f32 %v1827_v42, %v3300_v17  ;;  %v1829_v44 = vpop.f32.mrb[18].mxu0  ;;  %v1868_v58 = vpop.f32.mrb[16].mxu1 }
 0x189   : > { %v2020_v45 = vmul.f32 0.2, %v1826_v41  ;;  %v1830_v46 = vadd.f32 %v1829_v44, %v3302_v19  ;;  %v1831_v47 = vpop.f32.mrb[19].mxu0  ;;  %v1869_v0 = vadd.f32 %v1868_v58, %v3300_v17  ;;  %v1870_v59 = vpop.f32.mrb[17].mxu1 }
 0x18a   : > { %v2021_v48 = vmul.f32 0.2, %v1828_v43  ;;  %v1832_v49 = vadd.f32 %v1831_v47, %v3302_v19  ;;  %v1871_v60 = vadd.f32 %v1870_v59, %v3300_v17  ;;  %v1872_v61 = vpop.f32.mrb[18].mxu1 }
 0x18b   : > { %v2070_v50 = vmax.f32 %v1826_v41, %v2020_v45  ;;  %v2045_v51 = vmul.f32 0.2, %v1830_v46  ;;  %v2022_v62 = vmul.f32 0.2, %v1869_v0  ;;  %v1873_v63 = vadd.f32 %v1872_v61, %v3302_v19  ;;  %v1874_v1 = vpop.f32.mrb[19].mxu1 }
 0x18c   : > { %v2071_v52 = vmax.f32 %v1828_v43, %v2021_v48  ;;  %v2046_v53 = vmul.f32 0.2, %v1832_v49  ;;  %v2023_v2 = vmul.f32 0.2, %v1871_v60  ;;  %v1875_v3 = vadd.f32 %v1874_v1, %v3302_v19 }
 0x18d   : > { %v2095_v54 = vmax.f32 %v1830_v46, %v2045_v51  ;;  %v2072_v4 = vmax.f32 %v1869_v0, %v2022_v62  ;;  %v2047_v5 = vmul.f32 0.2, %v1873_v63 }
 0x18e   : > { %v2614_v55 = vpack.c.bf16 %v2071_v52, %v2070_v50  ;;  %v2096_v56 = vmax.f32 %v1832_v49, %v2046_v53  ;;  %v2073_v6 = vmax.f32 %v1871_v60, %v2023_v2  ;;  %v2048_v7 = vmul.f32 0.2, %v1875_v3 }
 0x18f   : > { %v2097_v8 = vmax.f32 %v1873_v63, %v2047_v5 }
 0x190   : > { %2264 = vst [vmem:[%s3312_s4 + $0x40] sm:$0xff] %v2614_v55  ;;  %v2627_v57 = vpack.c.bf16 %v2096_v56, %v2095_v54  ;;  %v2615_v9 = vpack.c.bf16 %v2073_v6, %v2072_v4  ;;  %v2098_v10 = vmax.f32 %v1875_v3, %v2048_v7 }
 0x192   : > { %2278 = vst [vmem:[%s3312_s4 + $0xa4] sm:$0xff] %v2627_v57  ;;  %2265 = vst [vmem:[%s3312_s4 + $0x48] sm:$0xff] %v2615_v9  ;;  %v2628_v11 = vpack.c.bf16 %v2098_v10, %v2097_v8 }
 0x194   : > { %2279 = vst [vmem:[%s3312_s4 + $0xac] sm:$0xff] %v2628_v11 }
 0x1a6   : > { %v1911_v32 = vpop.f32.mrb[20].mxu0 }
 0x1a7   : > { %v1912_v12 = vadd.f32 %v1911_v32, %v3300_v17  ;;  %v1913_v13 = vpop.f32.mrb[21].mxu0 }
 0x1a8   : > { %v1914_v14 = vadd.f32 %v1913_v13, %v3300_v17  ;;  %v1915_v15 = vpop.f32.mrb[22].mxu0  ;;  %v1954_v31 = vpop.f32.mrb[20].mxu1 }
 0x1a9   : > { %v2024_v16 = vmul.f32 0.2, %v1912_v12  ;;  %v1916_v18 = vadd.f32 %v1915_v15, %v3302_v19  ;;  %v1917_v20 = vpop.f32.mrb[23].mxu0  ;;  %v1955_v33 = vadd.f32 %v1954_v31, %v3300_v17  ;;  %v1956_v34 = vpop.f32.mrb[21].mxu1 }
 0x1aa   : > { %v2025_v21 = vmul.f32 0.2, %v1914_v14  ;;  %v1918_v22 = vadd.f32 %v1917_v20, %v3302_v19  ;;  %v1957_v35 = vadd.f32 %v1956_v34, %v3300_v17  ;;  %v1958_v36 = vpop.f32.mrb[22].mxu1 }
 0x1ab   : > { %v2074_v23 = vmax.f32 %v1912_v12, %v2024_v16  ;;  %v2049_v24 = vmul.f32 0.2, %v1916_v18  ;;  %v2026_v37 = vmul.f32 0.2, %v1955_v33  ;;  %v1959_v38 = vadd.f32 %v1958_v36, %v3302_v19  ;;  %v1960_v39 = vpop.f32.mrb[23].mxu1 }
 0x1ac   : > { %v2075_v25 = vmax.f32 %v1914_v14, %v2025_v21  ;;  %v2050_v26 = vmul.f32 0.2, %v1918_v22  ;;  %v2027_v40 = vmul.f32 0.2, %v1957_v35  ;;  %v1961_v41 = vadd.f32 %v1960_v39, %v3302_v19 }
 0x1ad   : > { %v2099_v27 = vmax.f32 %v1916_v18, %v2049_v24  ;;  %v2076_v42 = vmax.f32 %v1955_v33, %v2026_v37  ;;  %v2051_v43 = vmul.f32 0.2, %v1959_v38 }
 0x1ae   : > { %v2616_v28 = vpack.c.bf16 %v2075_v25, %v2074_v23  ;;  %v2100_v29 = vmax.f32 %v1918_v22, %v2050_v26  ;;  %v2077_v44 = vmax.f32 %v1957_v35, %v2027_v40  ;;  %v2052_v45 = vmul.f32 0.2, %v1961_v41 }
 0x1af   : > { %v2101_v46 = vmax.f32 %v1959_v38, %v2051_v43 }
 0x1b0   : > { %2266 = vst [vmem:[%s3312_s4 + $0x50] sm:$0xff] %v2616_v28  ;;  %v2629_v30 = vpack.c.bf16 %v2100_v29, %v2099_v27  ;;  %v2617_v47 = vpack.c.bf16 %v2077_v44, %v2076_v42  ;;  %v2102_v48 = vmax.f32 %v1961_v41, %v2052_v45 }
 0x1b2   : > { %2280 = vst [vmem:[%s3312_s4 + $0xb4] sm:$0xff] %v2629_v30  ;;  %2267 = vst [vmem:[%s3312_s4 + $0x58] sm:$0xff] %v2617_v47  ;;  %v2630_v49 = vpack.c.bf16 %v2102_v48, %v2101_v46 }
 0x1b4   : > { %2281 = vst [vmem:[%s3312_s4 + $0xbc] sm:$0xff] %v2630_v49 }
 0x1c6   : > { %v1997_v50 = vpop.f32.mrb[24].mxu0 }
 0x1c7   : > { %v1998_v51 = vadd.f32 %v1997_v50, %v3300_v17  ;;  %v2659_v52 = vpop.f32.mrb[25].mxu0 }
 0x1c8   : > { %v2000_v53 = vpop.f32.mrb[26].mxu0 }
 0x1c9   : > { %v2028_v54 = vmul.f32 0.2, %v1998_v51  ;;  %v2001_v55 = vadd.f32 %v2000_v53, %v3302_v19  ;;  %v2660_v56 = vpop.f32.mrb[27].mxu0 }
 0x1cb   : > { %v2078_v57 = vmax.f32 %v1998_v51, %v2028_v54  ;;  %v2053_v58 = vmul.f32 0.2, %v2001_v55 }
 0x1cd   : > { %v2618_v0 = vpack.c.bf16 %v2078_v57, %v2078_v57  ;;  %v2103_v59 = vmax.f32 %v2001_v55, %v2053_v58 }
 0x1cf   : > { %2269 = vst.msk [vmem:[%s3312_s4 + $0x60] sm:$0xf] %vm2268_vm1, %v2618_v0  ;;  %v2631_v60 = vpack.c.bf16 %v2103_v59, %v2103_v59 }
 0x1d1   : > { %2282 = vst.msk [vmem:[%s3312_s4 + $0xc4] sm:$0xf] %vm2268_vm1, %v2631_v60 }
 0x1d2 PF: > { %s13_s14 = sadd.s32 1, %s3011_s14   ;;  %s3399_s12 = smov %s3007_s13 }
 0x1d3   : > { %p10_p5 = scmp.ge.s32.totalorder %s13_s14, 4   ;;  %s3400_s13 = smov %s3402_s15 }
 0x1d5   :  { %12 = sbr.rel (!%p10_p5) target bundleno = 2 (0x2), region = 62 }

// kernel: class_contra_net_forward.6
= control target key start
LH: loop header
LB: loop body
LE: loop exit
PB: predicated region body
PF: predicated region fallthrough
CT: control target
= control target key end

     0   :  { %s852_s12 = smov 0   ;;  %s854_s13 = smov 0   ;;  %s949_s0 = inlined_call_operand.vmem [shape: bf16[2,256,196], index: 0, kind: input, shape index: {}]   ;;  %s950_s1 = inlined_call_operand.vmem [shape: bf16[32,256], index: 1, kind: input, shape index: {}]   ;;  %s951_s2 = inlined_call_operand.vmem [shape: f32[32,1], index: 2, kind: input, shape index: {}]   ;;  %s952_s3 = inlined_call_operand.vmem [shape: bf16[2,32,196], index: 3, kind: output, shape index: {}]  }
   0x1   :  { %s856_s14 = smov 0  }
   0x2 LB: > { %s25_s15 = sadd.s32 1, %s825_s13  ;;  %p641_p0 = scmp.ge.s32.totalorder %s829_s14, 1  ;;  %s829_s14 = sphi %s856_s14, %s13_s14   ;;  %s825_s13 = sphi %s854_s13, %s954_s13   ;;  %s821_s12 = sphi %s852_s12, %s953_s12  }
   0x3   : > { %p27_p1 = scmp.ge.s32.totalorder %s25_s15, 2  ;;  %p158_p2 = scmp.lt.s32.totalorder %s829_s14, 3 }
   0x5   : > { %s956_s15 = smov (%p27_p1, %s25_s15), 0  ;;  %p159_p3 = pnand %p641_p0, %p158_p2 }
   0x6   : > { %p191_p4 = scmp.lt.s32.totalorder (!%p159_p3), %s821_s12, 1  ;;  %v803_v0 = vld [vmem:[%s950_s1 + $0x4] ss:$8 sps:$4 sm:$0xff] (!%p159_p3)   ;;  %v831_v1 = vmov (!%p159_p3), 0   ;;  %v806_v2 = vld [vmem:[%s950_s1 + $0x14] ss:$8 sps:$4 sm:$0xff] (!%p159_p3)  }
   0x7   : > { %162 = sbr.rel (%p159_p3) target bundleno = 306 (0x132), region = 32  ;;  %752 = vset.pattern.permute.xlu1 (!%p159_p3), %v831_v1  ;;  %751 = vset.pattern.permute.xlu0 (!%p159_p3), %v831_v1  ;;  %v248_v3 = vld [vmem:[%s951_s2 + $0x10] sm:$0xff] (!%p159_p3)  ;;  %v246_v4 = vld [vmem:[%s951_s2] sm:$0xff] (!%p159_p3)  ;;  %v249_v5 = vld [vmem:[%s951_s2 + $0x18] sm:$0xff] (!%p159_p3)  ;;  %vm543_vm0 = vcmask (!%p159_p3), 1043456   ;;  %vm544_vm1 = vcmask (!%p159_p3), 556036  }
   0x8   : > { %482 = vmatprep.mubr.bf16.mxu0 (!%p159_p3), %v803_v0  ;;  %262 = vperm.xlu1 (!%p159_p3), %752, %v248_v3   ;;  %v247_v9 = vld [vmem:[%s951_s2 + $0x8] sm:$0xff] (!%p159_p3)  ;;  %v804_v40 = vld [vmem:[%s950_s1 + $0x10] ss:$8 sps:$4 sm:$0xff] (!%p159_p3)   ;;  %vm545_vm2 = vmor (!%p159_p3), %vm544_vm1, %vm543_vm0 }
   0x9   : > { %492 = vmatprep.mubr.bf16.mxu1 (!%p159_p3), %v806_v2  ;;  %252 = vperm.xlu0 (!%p159_p3), %751, %v246_v4   ;;  %v801_v39 = vld [vmem:[%s950_s1] ss:$8 sps:$4 sm:$0xff] (!%p159_p3)  }
   0xc   : > { %267 = vperm.xlu1 (!%p159_p3), %752, %v249_v5  }
   0xd   : > { %257 = vperm.xlu0 (!%p159_p3), %751, %v247_v9  }
   0xe   : > { %s958_s12 = smov (!%p191_p4, %s821_s12), 1 }
   0xf   : > { %s688_s24 = sshll.u32 %s958_s12, 8  ;;  %s689_s9 = sshll.u32 %s958_s12, 5 }
  0x10   : > { %s891_s29 = scalar_lea.vmem %s949_s0, %s688_s24  ;;  %s208_s16 = scalar_lea.vmem %s952_s3, %s689_s9 }
  0x11   : > { %v753_v6 = vld [vmem:[%s891_s29 + $0x4] ss:$8 sps:$4 sm:$0xff]   ;;  %v755_v7 = vld [vmem:[%s891_s29] ss:$8 sps:$4 sm:$0xff]   ;;  %v756_v8 = vld [vmem:[%s891_s29 + $0x14] ss:$8 sps:$4 sm:$0xff]  }
  0x12   : > { %450 = vmatprep.subr.bf16.mxu0 %v753_v6  ;;  %694 = vmatprep.subr.bf16.mxu1 %v753_v6  ;;  %v758_v10 = vld [vmem:[%s891_s29 + $0x10] ss:$8 sps:$4 sm:$0xff]   ;;  %v759_v11 = vld [vmem:[%s891_s29 + $0x24] ss:$8 sps:$4 sm:$0xff]   ;;  %v761_v12 = vld [vmem:[%s891_s29 + $0x20] ss:$8 sps:$4 sm:$0xff]  }
  0x13   : > { %451 = vmatpush1.bf16.msra.mxu0 %v755_v7  ;;  %710 = vmatpush1.bf16.msra.mxu1 %v755_v7  ;;  %v762_v13 = vld [vmem:[%s891_s29 + $0x34] ss:$8 sps:$4 sm:$0xff]   ;;  %v764_v14 = vld [vmem:[%s891_s29 + $0x30] ss:$8 sps:$4 sm:$0xff]   ;;  %v765_v15 = vld [vmem:[%s891_s29 + $0x44] ss:$8 sps:$4 sm:$0xff]  }
  0x14   : > { %452 = vmatprep.subr.bf16.mxu0 %v756_v8  ;;  %695 = vmatprep.subr.bf16.mxu1 %v756_v8  ;;  %v767_v16 = vld [vmem:[%s891_s29 + $0x40] ss:$8 sps:$4 sm:$0xff]   ;;  %v768_v17 = vld [vmem:[%s891_s29 + $0x54] ss:$8 sps:$4 sm:$0xff]   ;;  %v770_v18 = vld [vmem:[%s891_s29 + $0x50] ss:$8 sps:$4 sm:$0xff]  }
  0x15   : > { %v771_v19 = vld [vmem:[%s891_s29 + $0x64] ss:$8 sps:$4 sm:$0xff]   ;;  %v773_v20 = vld [vmem:[%s891_s29 + $0x60] ss:$8 sps:$4 sm:$0xff]   ;;  %v774_v21 = vld [vmem:[%s891_s29 + $0x74] ss:$8 sps:$4 sm:$0xff]  }
  0x16   : > { %v776_v22 = vld [vmem:[%s891_s29 + $0x70] ss:$8 sps:$4 sm:$0xff]   ;;  %v777_v23 = vld [vmem:[%s891_s29 + $0x84] ss:$8 sps:$4 sm:$0xff]   ;;  %v779_v24 = vld [vmem:[%s891_s29 + $0x80] ss:$8 sps:$4 sm:$0xff]  }
  0x17   : > { %453 = vmatpush1.bf16.msra.mxu0 %v758_v10  ;;  %711 = vmatpush1.bf16.msra.mxu1 %v758_v10  ;;  %v780_v25 = vld [vmem:[%s891_s29 + $0x94] ss:$8 sps:$4 sm:$0xff]   ;;  %v782_v26 = vld [vmem:[%s891_s29 + $0x90] ss:$8 sps:$4 sm:$0xff]   ;;  %v783_v27 = vld [vmem:[%s891_s29 + $0xa4] ss:$8 sps:$4 sm:$0xff]  }
  0x18   : > { %454 = vmatprep.subr.bf16.mxu0 %v759_v11  ;;  %696 = vmatprep.subr.bf16.mxu1 %v759_v11  ;;  %v785_v28 = vld [vmem:[%s891_s29 + $0xa0] ss:$8 sps:$4 sm:$0xff]   ;;  %v786_v29 = vld [vmem:[%s891_s29 + $0xb4] ss:$8 sps:$4 sm:$0xff]   ;;  %v788_v30 = vld [vmem:[%s891_s29 + $0xb0] ss:$8 sps:$4 sm:$0xff]  }
  0x19   : > { %v789_v31 = vld [vmem:[%s891_s29 + $0xc4] ss:$8 sps:$4 sm:$0xff]   ;;  %v791_v32 = vld [vmem:[%s891_s29 + $0xc0] ss:$8 sps:$4 sm:$0xff]   ;;  %v792_v33 = vld [vmem:[%s891_s29 + $0xd4] ss:$8 sps:$4 sm:$0xff]  }
  0x1a   : > { %v794_v34 = vld [vmem:[%s891_s29 + $0xd0] ss:$8 sps:$4 sm:$0xff]   ;;  %v795_v35 = vld [vmem:[%s891_s29 + $0xe4] ss:$8 sps:$4 sm:$0xff]   ;;  %v797_v36 = vld [vmem:[%s891_s29 + $0xe0] ss:$8 sps:$4 sm:$0xff]  }
  0x1b   : > { %455 = vmatpush1.bf16.msra.mxu0 %v761_v12  ;;  %712 = vmatpush1.bf16.msra.mxu1 %v761_v12  ;;  %v798_v37 = vld [vmem:[%s891_s29 + $0xf4] ss:$8 sps:$4 sm:$0xff]   ;;  %v800_v38 = vld [vmem:[%s891_s29 + $0xf0] ss:$8 sps:$4 sm:$0xff]  }
  0x1c   : > { %456 = vmatprep.subr.bf16.mxu0 %v762_v13  ;;  %697 = vmatprep.subr.bf16.mxu1 %v762_v13 }
  0x1f   : > { %457 = vmatpush1.bf16.msra.mxu0 %v764_v14  ;;  %713 = vmatpush1.bf16.msra.mxu1 %v764_v14 }
  0x20   : > { %458 = vmatprep.subr.bf16.mxu0 %v765_v15  ;;  %698 = vmatprep.subr.bf16.mxu1 %v765_v15 }
  0x23   : > { %459 = vmatpush1.bf16.msra.mxu0 %v767_v16  ;;  %714 = vmatpush1.bf16.msra.mxu1 %v767_v16 }
  0x24   : > { %460 = vmatprep.subr.bf16.mxu0 %v768_v17  ;;  %699 = vmatprep.subr.bf16.mxu1 %v768_v17 }
  0x27   : > { %461 = vmatpush1.bf16.msra.mxu0 %v770_v18  ;;  %715 = vmatpush1.bf16.msra.mxu1 %v770_v18 }
  0x28   : > { %462 = vmatprep.subr.bf16.mxu0 %v771_v19  ;;  %700 = vmatprep.subr.bf16.mxu1 %v771_v19 }
  0x2b   : > { %463 = vmatpush1.bf16.msra.mxu0 %v773_v20  ;;  %716 = vmatpush1.bf16.msra.mxu1 %v773_v20 }
  0x2c   : > { %464 = vmatprep.subr.bf16.mxu0 %v774_v21  ;;  %701 = vmatprep.subr.bf16.mxu1 %v774_v21 }
  0x2f   : > { %465 = vmatpush1.bf16.msra.mxu0 %v776_v22  ;;  %717 = vmatpush1.bf16.msra.mxu1 %v776_v22 }
  0x30   : > { %466 = vmatprep.subr.bf16.mxu0 %v777_v23  ;;  %702 = vmatprep.subr.bf16.mxu1 %v777_v23 }
  0x33   : > { %467 = vmatpush1.bf16.msra.mxu0 %v779_v24  ;;  %718 = vmatpush1.bf16.msra.mxu1 %v779_v24 }
  0x34   : > { %468 = vmatprep.subr.bf16.mxu0 %v780_v25  ;;  %703 = vmatprep.subr.bf16.mxu1 %v780_v25 }
  0x37   : > { %469 = vmatpush1.bf16.msra.mxu0 %v782_v26  ;;  %719 = vmatpush1.bf16.msra.mxu1 %v782_v26 }
  0x38   : > { %470 = vmatprep.subr.bf16.mxu0 %v783_v27  ;;  %704 = vmatprep.subr.bf16.mxu1 %v783_v27 }
  0x3b   : > { %471 = vmatpush1.bf16.msra.mxu0 %v785_v28  ;;  %720 = vmatpush1.bf16.msra.mxu1 %v785_v28 }
  0x3c   : > { %472 = vmatprep.subr.bf16.mxu0 %v786_v29  ;;  %705 = vmatprep.subr.bf16.mxu1 %v786_v29 }
  0x3f   : > { %473 = vmatpush1.bf16.msra.mxu0 %v788_v30  ;;  %721 = vmatpush1.bf16.msra.mxu1 %v788_v30 }
  0x40   : > { %474 = vmatprep.subr.bf16.mxu0 %v789_v31  ;;  %706 = vmatprep.subr.bf16.mxu1 %v789_v31 }
  0x43   : > { %475 = vmatpush1.bf16.msra.mxu0 %v791_v32  ;;  %722 = vmatpush1.bf16.msra.mxu1 %v791_v32 }
  0x44   : > { %476 = vmatprep.subr.bf16.mxu0 %v792_v33  ;;  %707 = vmatprep.subr.bf16.mxu1 %v792_v33 }
  0x47   : > { %477 = vmatpush1.bf16.msra.mxu0 %v794_v34  ;;  %723 = vmatpush1.bf16.msra.mxu1 %v794_v34 }
  0x48   : > { %478 = vmatprep.subr.bf16.mxu0 %v795_v35  ;;  %708 = vmatprep.subr.bf16.mxu1 %v795_v35 }
  0x4b   : > { %479 = vmatpush1.bf16.msra.mxu0 %v797_v36  ;;  %724 = vmatpush1.bf16.msra.mxu1 %v797_v36 }
  0x4c   : > { %480 = vmatprep.subr.bf16.mxu0 %v798_v37  ;;  %709 = vmatprep.subr.bf16.mxu1 %v798_v37 }
  0x4f   : > { %481 = vmatpush1.bf16.msra.mxu0 %v800_v38  ;;  %725 = vmatpush1.bf16.msra.mxu1 %v800_v38 }
  0x52   : > { %483 = vmatmul.mubr.bf16.vlgmr.msra.gmra.mrb[0].mxu0 %v801_v39  ;;  %493 = vmatmul.mubr.bf16.vlgmr.msra.gmra.mrb[0].mxu1 %v804_v40 }
  0x87   : > { %v263_v41 = vpop.permute.xlu1 %262 }
  0x88   : > { %v253_v42 = vpop.permute.xlu0 %252 }
  0x8b   : > { %v268_v43 = vpop.permute.xlu1 %267 }
  0x8c   : > { %v258_v44 = vpop.permute.xlu0 %257 }
 0x125   : > { %v484_v45 = vpop.f32.mrb[0].mxu0  ;;  %v494_v46 = vpop.f32.mrb[0].mxu1 }
 0x126   : > { %v485_v47 = vadd.f32 %v484_v45, %v253_v42  ;;  %v495_v48 = vadd.f32 %v494_v46, %v263_v41  ;;  %v486_v49 = vpop.f32.mrb[1].mxu0  ;;  %v496_v50 = vpop.f32.mrb[1].mxu1 }
 0x127   : > { %v487_v51 = vadd.f32 %v486_v49, %v253_v42  ;;  %v497_v52 = vadd.f32 %v496_v50, %v263_v41  ;;  %v488_v53 = vpop.f32.mrb[2].mxu0  ;;  %v498_v54 = vpop.f32.mrb[2].mxu1 }
 0x128   : > { %v503_v55 = vmul.f32 0.2, %v485_v47  ;;  %v507_v56 = vmul.f32 0.2, %v495_v48  ;;  %v489_v57 = vadd.f32 %v488_v53, %v258_v44  ;;  %v499_v58 = vadd.f32 %v498_v54, %v268_v43  ;;  %v490_v59 = vpop.f32.mrb[3].mxu0  ;;  %v500_v60 = vpop.f32.mrb[3].mxu1 }
 0x129   : > { %v504_v61 = vmul.f32 0.2, %v487_v51  ;;  %v508_v62 = vmul.f32 0.2, %v497_v52  ;;  %v491_v63 = vadd.f32 %v490_v59, %v258_v44  ;;  %v501_v0 = vadd.f32 %v500_v60, %v268_v43 }
 0x12a   : > { %v511_v1 = vmax.f32 %v485_v47, %v503_v55  ;;  %v515_v2 = vmax.f32 %v495_v48, %v507_v56  ;;  %v505_v3 = vmul.f32 0.2, %v489_v57  ;;  %v509_v4 = vmul.f32 0.2, %v499_v58 }
 0x12b   : > { %v512_v5 = vmax.f32 %v487_v51, %v504_v61  ;;  %v516_v6 = vmax.f32 %v497_v52, %v508_v62  ;;  %v506_v7 = vmul.f32 0.2, %v491_v63  ;;  %v510_v8 = vmul.f32 0.2, %v501_v0 }
 0x12c   : > { %v513_v9 = vmax.f32 %v489_v57, %v505_v3  ;;  %v517_v10 = vmax.f32 %v499_v58, %v509_v4 }
 0x12d   : > { %v690_v11 = vpack.c.bf16 %v512_v5, %v511_v1  ;;  %v692_v12 = vpack.c.bf16 %v516_v6, %v515_v2  ;;  %v514_v13 = vmax.f32 %v491_v63, %v506_v7  ;;  %v518_v14 = vmax.f32 %v501_v0, %v510_v8 }
 0x12f   : > { %546 = vst.msk [vmem:[%s208_s16] sm:$0xff] %vm545_vm2, %v690_v11  ;;  %548 = vst.msk [vmem:[%s208_s16 + $0x10] sm:$0xff] %vm545_vm2, %v692_v12  ;;  %v691_v15 = vpack.c.bf16 %v514_v13, %v513_v9  ;;  %v693_v16 = vpack.c.bf16 %v518_v14, %v517_v10 }
 0x131   : > { %547 = vst.msk [vmem:[%s208_s16 + $0x8] sm:$0xff] %vm545_vm2, %v691_v15  ;;  %549 = vst.msk [vmem:[%s208_s16 + $0x18] sm:$0xff] %vm545_vm2, %v693_v16 }
 0x132 PF: > { %s13_s14 = sadd.s32 1, %s829_s14   ;;  %s953_s12 = smov %s825_s13 }
 0x133   : > { %p10_p5 = scmp.ge.s32.totalorder %s13_s14, 4   ;;  %s954_s13 = smov %s956_s15 }
 0x135   :  { %12 = sbr.rel (!%p10_p5) target bundleno = 2 (0x2), region = 62 }

// kernel: class_contra_net_forward.7
= control target key start
LH: loop header
LB: loop body
LE: loop exit
PB: predicated region body
PF: predicated region fallthrough
CT: control target
= control target key end

     0   :  { %12 = vsyncpa [#allocation3], 0  ;;  %s2262_s0 = inlined_call_operand.vmem [shape: bf16[2,49,512], index: 0, kind: input, shape index: {}]   ;;  %s2263_s1 = inlined_call_operand.vmem [shape: bf16[512,64], index: 1, kind: input, shape index: {}]   ;;  %s2264_s2 = inlined_call_operand.vmem [shape: f32[1,64], index: 2, kind: input, shape index: {}]   ;;  %s2265_s3 = inlined_call_operand.vmem [shape: bf16[64,512], index: 3, kind: input, shape index: {}]   ;;  %s2266_s4 = inlined_call_operand.vmem [shape: f32[1,512], index: 4, kind: input, shape index: {}]   ;;  %s2267_s5 = inlined_call_operand.vmem [shape: bf16[512,10], index: 5, kind: input, shape index: {}]   ;;  %s2268_s6 = inlined_call_operand.vmem [shape: f32[1,10], index: 6, kind: input, shape index: {}]   ;;  %s2269_s7 = inlined_call_operand.hbm [shape: f32[2,1,10], index: 7, kind: output, shape index: {}]  }
   0x1   :  { %14 = vsyncpa [#allocation3 + $0x1], 0  ;;  %s1896_s24 = smov 0   ;;  %s1898_s25 = smov 0  }
   0x2   :  { %s1900_s26 = smov 0   ;;  %s1902_s27 = smov 0  }
   0x3 LB: > { %s1917_s28 = sadd.s32 4294967295, %s1852_s27   ;;  %s1408_s29 = sadd.s32 4294967294, %s1852_s27   ;;  %s1852_s27 = sphi %s1902_s27, %s2275_s27   ;;  %s1848_s26 = sphi %s1900_s26, %s2274_s26   ;;  %s1844_s25 = sphi %s1898_s25, %s2273_s25   ;;  %s1840_s24 = sphi %s1896_s24, %s2272_s24  }
   0x4   : > { %s1921_s30 = sadd.s32 1, %s1852_s27   ;;  %s179_s8 = sadd.s32 1, %s1848_s26 }
   0x5   : > { %s176_s9 = ssub.s32 %s1852_s27, %s1921_s30  ;;  %p189_p0 = scmp.ne.s32.totalorder %s1848_s26, %s1844_s25 }
   0x6   : > { %p177_p1 = scmp.eq.s32.totalorder %s176_s9, 0  ;;  %p190_p2 = scmp.eq.s32.totalorder %s1917_s28, 1 }
   0x7   : > { %p195_p3 = scmp.ne.s32.totalorder %s1844_s25, %s1840_s24  ;;  %p196_p4 = scmp.eq.s32.totalorder %s1408_s29, 1 }
   0x8   : > { %s1932_s10 = scalar_select %p177_p1, %s1848_s26, %s179_s8  }
   0x9   : > { %p1934_p5 = por %p190_p2, %p189_p0  ;;  %p1938_p6 = por %p196_p4, %p195_p3 }
   0xa   : > { %p1411_p7 = scmp.ge.s32.totalorder %s1852_s27, 1  ;;  %p240_p8 = scmp.lt.s32.totalorder %s1852_s27, 3 }
   0xc   : > { %p241_p9 = pnand %p1411_p7, %p240_p8 }
   0xd   : > { %v1680_v0 = vld [vmem:[%s2263_s1 + $0x40] sm:$0xff] (!%p241_p9)   ;;  %v1684_v4 = vld [vmem:[%s2263_s1 + $0x48] sm:$0xff] (!%p241_p9)   ;;  %v1688_v8 = vld [vmem:[%s2263_s1 + $0x50] sm:$0xff] (!%p241_p9)   ;;  %p271_p10 = scmp.lt.s32.totalorder (!%p241_p9), %s1917_s28, 1  ;;  %vm770_vm0 = vcmask (!%p241_p9), 523264   ;;  %vm782_vm1 = vcmask (!%p241_p9), 516096  }
   0xe   : > { %244 = sbr.rel (%p241_p9) target bundleno = 764 (0x2fc), region = 48  ;;  %v1681_v1 = vld [vmem:[%s2263_s1 + $0xc0] sm:$0xff] (!%p241_p9)   ;;  %1515 = vmatprep.subr.bf16.mxu0 (!%p241_p9), %v1680_v0  ;;  %v1685_v5 = vld [vmem:[%s2263_s1 + $0xc8] sm:$0xff] (!%p241_p9)   ;;  %v1689_v9 = vld [vmem:[%s2263_s1 + $0xd0] sm:$0xff] (!%p241_p9)   ;;  %s269_s14 = sand.u32 (!%p241_p9), 1, %s1844_s25   ;;  %vm1338_vm2 = vcmask (!%p241_p9), 73728  }
   0xf   : > { %v1682_v2 = vld [vmem:[%s2263_s1] sm:$0xff] (!%p241_p9)   ;;  %1555 = vmatprep.subr.bf16.mxu1 (!%p241_p9), %v1681_v1  ;;  %v1686_v6 = vld [vmem:[%s2263_s1 + $0x8] sm:$0xff] (!%p241_p9)   ;;  %v1690_v10 = vld [vmem:[%s2263_s1 + $0x10] sm:$0xff] (!%p241_p9)   ;;  %s1512_s18 = sshll.u32 (!%p241_p9), %s1917_s28, 4  ;;  %s270_s19 = scalar_lea.vmem (!%p241_p9), [#allocation2], %s269_s14 }
  0x10   : > { %v1683_v3 = vld [vmem:[%s2263_s1 + $0x80] sm:$0xff] (!%p241_p9)   ;;  %1516 = vmatpush3.bf16.msra.mxu0 (!%p241_p9), %v1682_v2  ;;  %v1687_v7 = vld [vmem:[%s2263_s1 + $0x88] sm:$0xff] (!%p241_p9)   ;;  %v1691_v11 = vld [vmem:[%s2263_s1 + $0x90] sm:$0xff] (!%p241_p9)   ;;  %v1854_v2 = vmov (!%p241_p9), 0   ;;  %s2220_s22 = scalar_lea.hbm (!%p241_p9), %s2269_s7, %s1512_s18  ;;  %s1341_s23 = scalar_lea.sflag (!%p241_p9), [#allocation3], %s269_s14 }
  0x11   : > { %1556 = vmatpush3.bf16.msra.mxu1 (!%p241_p9), %v1683_v3  ;;  %1517 = vmatprep.subr.bf16.mxu0 (!%p241_p9), %v1684_v4  ;;  %v1692_v12 = vld [vmem:[%s2263_s1 + $0x58] sm:$0xff] (!%p241_p9)   ;;  %v1696_v16 = vld [vmem:[%s2263_s1 + $0x60] sm:$0xff] (!%p241_p9)   ;;  %v1700_v20 = vld [vmem:[%s2263_s1 + $0x68] sm:$0xff] (!%p241_p9)  }
  0x12   : > { %1557 = vmatprep.subr.bf16.mxu1 (!%p241_p9), %v1685_v5  ;;  %v1693_v13 = vld [vmem:[%s2263_s1 + $0xd8] sm:$0xff] (!%p241_p9)   ;;  %v1697_v17 = vld [vmem:[%s2263_s1 + $0xe0] sm:$0xff] (!%p241_p9)   ;;  %v1701_v21 = vld [vmem:[%s2263_s1 + $0xe8] sm:$0xff] (!%p241_p9)  }
  0x13   : > { %v1694_v14 = vld [vmem:[%s2263_s1 + $0x18] sm:$0xff] (!%p241_p9)   ;;  %v1698_v18 = vld [vmem:[%s2263_s1 + $0x20] sm:$0xff] (!%p241_p9)   ;;  %v1702_v22 = vld [vmem:[%s2263_s1 + $0x28] sm:$0xff] (!%p241_p9)  }
  0x14   : > { %1518 = vmatpush3.bf16.msra.mxu0 (!%p241_p9), %v1686_v6  ;;  %v1695_v15 = vld [vmem:[%s2263_s1 + $0x98] sm:$0xff] (!%p241_p9)   ;;  %v1699_v19 = vld [vmem:[%s2263_s1 + $0xa0] sm:$0xff] (!%p241_p9)   ;;  %v1703_v23 = vld [vmem:[%s2263_s1 + $0xa8] sm:$0xff] (!%p241_p9)  }
  0x15   : > { %1558 = vmatpush3.bf16.msra.mxu1 %v1687_v7  ;;  %1519 = vmatprep.subr.bf16.mxu0 %v1688_v8  ;;  %s272_s15 = scalar_select %p271_p10, %s1917_s28, 1  ;;  %v1704_v24 = vld [vmem:[%s2263_s1 + $0x70] sm:$0xff]   ;;  %v1708_v28 = vld [vmem:[%s2263_s1 + $0x78] sm:$0xff]   ;;  %v1758_v3 = vld [vmem:[%s2267_s5 + $0x40] sm:$0xff]  }
  0x16   : > { %1559 = vmatprep.subr.bf16.mxu1 %v1689_v9  ;;  %v1705_v25 = vld [vmem:[%s2263_s1 + $0xf0] sm:$0xff]   ;;  %v1709_v29 = vld [vmem:[%s2263_s1 + $0xf8] sm:$0xff]   ;;  %v1759_v4 = vld [vmem:[%s2267_s5 + $0xc0] sm:$0xff]   ;;  %s1855_s28 = smov [#allocation2]  }
  0x17   : > { %s1639_s29 = smul.u32 112, %s272_s15  ;;  %v1706_v26 = vld [vmem:[%s2263_s1 + $0x30] sm:$0xff]   ;;  %v1710_v30 = vld [vmem:[%s2263_s1 + $0x38] sm:$0xff]   ;;  %v2102_v7 = vld [vmem:[%s2264_s2] ss:$0 sm:$0xff]  ;;  %s1353_s15 = sshll.u32 %s270_s19, 4  ;;  %s2222_s15 = int_to_ptr.vmem [resolvable:$true] %s1353_s15 }
  0x18   : > { %1520 = vmatpush3.bf16.msra.mxu0 %v1690_v10  ;;  %v1707_v27 = vld [vmem:[%s2263_s1 + $0xb0] sm:$0xff]   ;;  %v1711_v31 = vld [vmem:[%s2263_s1 + $0xb8] sm:$0xff]   ;;  %s1790_s8 = scalar_lea.vmem %s2222_s15, 16  ;;  %s1794_s9 = sshll.u32 %s1855_s28, 4  ;;  %s1795_s9 = int_to_ptr.vmem [resolvable:$false] %s1794_s9 }
  0x19   : > { %1560 = vmatpush3.bf16.msra.mxu1 %v1691_v11  ;;  %1521 = vmatprep.subr.bf16.mxu0 %v1692_v12  ;;  %s275_s21 = scalar_lea.vmem %s2262_s0, %s1639_s29  ;;  %v1734_v50 = vld [vmem:[%s2265_s3] ss:$16 sps:$4 sm:$0xff]   ;;  %v1736_v51 = vld [vmem:[%s2265_s3 + $0x4] ss:$16 sps:$4 sm:$0xff]   ;;  %v1737_v52 = vld [vmem:[%s2265_s3 + $0x8] ss:$16 sps:$4 sm:$0xff]   ;;  %p1791_p11 = scmp.ne.s32.totalorder %s2222_s15, %s1790_s8 }
  0x1a   : > { %1561 = vmatprep.subr.bf16.mxu1 %v1693_v13  ;;  %v1712_v32 = vld [vmem:[%s275_s21] ss:$16 sps:$4 sm:$0xff]   ;;  %v1714_v33 = vld [vmem:[%s275_s21 + $0x4] ss:$16 sps:$4 sm:$0xff]   ;;  %v1715_v34 = vld [vmem:[%s275_s21 + $0x8] ss:$16 sps:$4 sm:$0xff]   ;;  %p1797_p0 = scmp.lt.s32.totalorder %s2222_s15, %s1795_s9 }
  0x1b   : > { %v1717_v35 = vld [vmem:[%s275_s21 + $0xc] ss:$16 sps:$4 sm:$0xff]   ;;  %660 = vmatprep.mubr.bf16.mxu0 %v1714_v33  ;;  %v1718_v36 = vld [vmem:[%s275_s21 + $0x24] ss:$16 sps:$4 sm:$0xff]   ;;  %v1722_v38 = vld [vmem:[%s275_s21 + $0x20] ss:$16 sps:$4 sm:$0xff]   ;;  %p1792_p12 = pnand %p1791_p11, %p1934_p5 }
  0x1c   : > { %1522 = vmatpush3.bf16.msra.mxu0 %v1694_v14  ;;  %724 = vmatprep.mubr.bf16.mxu1 %v1717_v35  ;;  %v1720_v37 = vld [vmem:[%s275_s21 + $0x2c] ss:$16 sps:$4 sm:$0xff]   ;;  %v1723_v39 = vld [vmem:[%s275_s21 + $0x28] ss:$16 sps:$4 sm:$0xff]   ;;  %v1724_v40 = vld [vmem:[%s275_s21 + $0x44] ss:$16 sps:$4 sm:$0xff]  }
  0x1d   : > { %1562 = vmatpush3.bf16.msra.mxu1 %v1695_v15  ;;  %1523 = vmatprep.subr.bf16.mxu0 %v1696_v16  ;;  %v1726_v41 = vld [vmem:[%s275_s21 + $0x4c] ss:$16 sps:$4 sm:$0xff]   ;;  %v289_v42 = vld [vmem:[%s275_s21 + $0x60] sm:$0x11]  ;;  %v1729_v45 = vld [vmem:[%s275_s21 + $0x48] ss:$16 sps:$4 sm:$0xff]   ;;  %p1793_p13 = pneg %p1792_p12 }
  0x1e   : > { %1563 = vmatprep.subr.bf16.mxu1 %v1697_v17  ;;  %v290_v43 = vld [vmem:[%s275_s21 + $0x68] sm:$0x11]  ;;  %v1728_v44 = vld [vmem:[%s275_s21 + $0x40] ss:$16 sps:$4 sm:$0xff]   ;;  %v1427_v46 = vcombine.high %v289_v42, %v289_v42  ;;  %v1426_v48 = vcombine.low %v289_v42, %v289_v42  ;;  %v1742_v54 = vld [vmem:[%s2265_s3 + $0x24] ss:$16 sps:$4 sm:$0xff]  }
  0x1f   : > { %v1429_v47 = vcombine.high %v290_v43, %v290_v43  ;;  %v1428_v49 = vcombine.low %v290_v43, %v290_v43  ;;  %v1739_v53 = vld [vmem:[%s2265_s3 + $0xc] ss:$16 sps:$4 sm:$0xff]   ;;  %v1740_v56 = vld [vmem:[%s2265_s3 + $0x20] ss:$16 sps:$4 sm:$0xff]   ;;  %v1743_v57 = vld [vmem:[%s2265_s3 + $0x28] ss:$16 sps:$4 sm:$0xff]  }
  0x20   : > { %1524 = vmatpush3.bf16.msra.mxu0 %v1698_v18  ;;  %v1745_v55 = vld [vmem:[%s2265_s3 + $0x2c] ss:$16 sps:$4 sm:$0xff]   ;;  %v1748_v58 = vld [vmem:[%s2265_s3 + $0x44] ss:$16 sps:$4 sm:$0xff]   ;;  %v1746_v60 = vld [vmem:[%s2265_s3 + $0x40] ss:$16 sps:$4 sm:$0xff]  }
  0x21   : > { %1564 = vmatpush3.bf16.msra.mxu1 %v1699_v19  ;;  %1525 = vmatprep.subr.bf16.mxu0 %v1700_v20  ;;  %v1751_v59 = vld [vmem:[%s2265_s3 + $0x4c] ss:$16 sps:$4 sm:$0xff]   ;;  %v1749_v61 = vld [vmem:[%s2265_s3 + $0x48] ss:$16 sps:$4 sm:$0xff]   ;;  %v1754_v62 = vld [vmem:[%s2265_s3 + $0x64] ss:$16 sps:$4 sm:$0xff]  }
  0x22   : > { %1565 = vmatprep.subr.bf16.mxu1 %v1701_v21  ;;  %v1757_v63 = vld [vmem:[%s2265_s3 + $0x6c] ss:$16 sps:$4 sm:$0xff]   ;;  %v1752_v0 = vld [vmem:[%s2265_s3 + $0x60] ss:$16 sps:$4 sm:$0xff]   ;;  %v1755_v1 = vld [vmem:[%s2265_s3 + $0x68] ss:$16 sps:$4 sm:$0xff]  }
  0x23   : > { %s1796_s29 = scalar_lea.vmem %s1795_s9, 32 }
  0x24   : > { %1526 = vmatpush3.bf16.msra.mxu0 %v1702_v22  ;;  %p1798_p1 = scmp.lt.s32.totalorder %s1796_s29, %s1790_s8 }
  0x25   : > { %1566 = vmatpush3.bf16.msra.mxu1 %v1703_v23  ;;  %1527 = vmatprep.subr.bf16.mxu0 %v1704_v24 }
  0x26   : > { %1567 = vmatprep.subr.bf16.mxu1 %v1705_v25  ;;  %p1799_p2 = por %p1798_p1, %p1797_p0 }
  0x28   : > { %1528 = vmatpush3.bf16.msra.mxu0 %v1706_v26  ;;  %p1800_p3 = pnand %p1799_p2, %p1793_p13 }
  0x29   : > { %1568 = vmatpush3.bf16.msra.mxu1 %v1707_v27  ;;  %1529 = vmatprep.subr.bf16.mxu0 %v1708_v28 }
  0x2a   : > { %1569 = vmatprep.subr.bf16.mxu1 %v1709_v29 }
  0x2c   : > { %1530 = vmatpush3.bf16.msra.mxu0 %v1710_v30 }
  0x2d   : > { %1570 = vmatpush3.bf16.msra.mxu1 %v1711_v31  ;;  %915 = vmatprep.subr.bf16.mxu0 %v1736_v51 }
  0x2e   : > { %956 = vmatprep.subr.bf16.mxu1 %v1739_v53 }
  0x2f   : > { %661 = vmatmul.mubr.bf16.vlgmr.msra.gmra.mrb[0].mxu0 %v1712_v32 }
  0x30   : > { %725 = vmatmul.mubr.bf16.vlgmr.msra.gmra.mrb[0].mxu1 %v1715_v34  ;;  %668 = vmatprep.mubr.bf16.mxu0 %v1718_v36 }
  0x31   : > { %732 = vmatprep.mubr.bf16.mxu1 %v1720_v37  ;;  %916 = vmatpush1.bf16.msra.mxu0 %v1734_v50 }
  0x32   : > { %957 = vmatpush1.bf16.msra.mxu1 %v1737_v52  ;;  %917 = vmatprep.subr.bf16.mxu0 %v1742_v54 }
  0x33   : > { %958 = vmatprep.subr.bf16.mxu1 %v1745_v55 }
  0x35   : > { %918 = vmatpush1.bf16.msra.mxu0 %v1740_v56 }
  0x36   : > { %959 = vmatpush1.bf16.msra.mxu1 %v1743_v57  ;;  %919 = vmatprep.subr.bf16.mxu0 %v1748_v58 }
  0x37   : > { %669 = vmatmul.mubr.bf16.gmra.mrb[4].mxu0 %v1722_v38  ;;  %960 = vmatprep.subr.bf16.mxu1 %v1751_v59 }
  0x38   : > { %733 = vmatmul.mubr.bf16.gmra.mrb[4].mxu1 %v1723_v39  ;;  %676 = vmatprep.mubr.bf16.mxu0 %v1724_v40 }
  0x39   : > { %740 = vmatprep.mubr.bf16.mxu1 %v1726_v41  ;;  %920 = vmatpush1.bf16.msra.mxu0 %v1746_v60 }
  0x3a   : > { %961 = vmatpush1.bf16.msra.mxu1 %v1749_v61  ;;  %921 = vmatprep.subr.bf16.mxu0 %v1754_v62 }
  0x3b   : > { %962 = vmatprep.subr.bf16.mxu1 %v1757_v63 }
  0x3d   : > { %922 = vmatpush1.bf16.msra.mxu0 %v1752_v0 }
  0x3e   : > { %963 = vmatpush1.bf16.msra.mxu1 %v1755_v1  ;;  %1595 = vmatprep.subr.bf16.mxu0 %v1758_v3 }
  0x3f   : > { %677 = vmatmul.mubr.bf16.gmra.mrb[8].mxu0 %v1728_v44  ;;  %1617 = vmatprep.subr.bf16.mxu1 %v1759_v4 }
  0x40   : > { %741 = vmatmul.mubr.bf16.gmra.mrb[8].mxu1 %v1729_v45  ;;  %684 = vmatprep.mubr.bf16.mxu0 %v1427_v46 }
  0x41   : > { %748 = vmatprep.mubr.bf16.mxu1 %v1429_v47 }
  0x47   : > { %685 = vmatmul.mubr.bf16.gmra.mrb[12].mxu0 %v1426_v48 }
  0x48   : > { %749 = vmatmul.mubr.bf16.gmra.mrb[12].mxu1 %v1428_v49  ;;  %947 = vmatprep.mubr.bf16.mxu0 %v1854_v2 }
  0x49   : > { %988 = vmatprep.mubr.bf16.mxu1 %v1854_v2 }
 0x102   : > { %v1531_v5 = vpop.f32.mrb[0].mxu0 }
 0x103   : > { %v1571_v6 = vpop.f32.mrb[0].mxu1  ;;  %v1532_v8 = vpop.f32.mrb[1].mxu0 }
 0x104   : > { %v1533_v9 = vadd.f32 %v1532_v8, %v1531_v5  ;;  %v1572_v10 = vpop.f32.mrb[1].mxu1  ;;  %v1534_v11 = vpop.f32.mrb[2].mxu0 }
 0x105   : > { %v1573_v12 = vadd.f32 %v1572_v10, %v1571_v6  ;;  %v1574_v13 = vpop.f32.mrb[2].mxu1  ;;  %v1535_v14 = vpop.f32.mrb[3].mxu0 }
 0x106   : > { %v663_v15 = vadd.f32 %v1533_v9, %v2102_v7  ;;  %v1536_v16 = vadd.f32 %v1535_v14, %v1534_v11  ;;  %v1575_v17 = vpop.f32.mrb[3].mxu1 }
 0x107   : > { %v1576_v18 = vadd.f32 %v1575_v17, %v1574_v13 }
 0x108   : > { %v727_v19 = vadd.f32 %v1573_v12, %v663_v15  ;;  %v666_v20 = vadd.f32 %v1536_v16, %v2102_v7 }
 0x10a   : > { %v756_v21 = vmul.f32 0.2, %v727_v19  ;;  %v730_v22 = vadd.f32 %v1576_v18, %v666_v20  ;;  %v1537_v23 = vpop.f32.mrb[4].mxu0 }
 0x10b   : > { %v1577_v24 = vpop.f32.mrb[4].mxu1  ;;  %v1538_v25 = vpop.f32.mrb[5].mxu0 }
 0x10c   : > { %v763_v26 = vmax.f32 %v727_v19, %v756_v21  ;;  %v757_v27 = vmul.f32 0.2, %v730_v22  ;;  %v1539_v28 = vadd.f32 %v1538_v25, %v1537_v23  ;;  %v1578_v29 = vpop.f32.mrb[5].mxu1  ;;  %v1540_v30 = vpop.f32.mrb[6].mxu0 }
 0x10d   : > { %v1579_v31 = vadd.f32 %v1578_v29, %v1577_v24  ;;  %v1580_v32 = vpop.f32.mrb[6].mxu1  ;;  %v1541_v33 = vpop.f32.mrb[7].mxu0 }
 0x10e   : > { %v764_v34 = vmax.f32 %v730_v22, %v757_v27  ;;  %v671_v35 = vadd.f32 %v1539_v28, %v2102_v7  ;;  %v1542_v36 = vadd.f32 %v1541_v33, %v1540_v30  ;;  %v1581_v37 = vpop.f32.mrb[7].mxu1  ;;  %v771_v39 = vsel %vm770_vm0, %v763_v26, 0.0 }
 0x10f   : > { %v1582_v38 = vadd.f32 %v1581_v37, %v1580_v32  ;;  %v1761_v37 = vld [vmem:[%s2267_s5 + $0x80] sm:$0xff]  }
 0x110   : > { %v772_v40 = vsel %vm770_vm0, %v764_v34, 0.0  ;;  %v735_v41 = vadd.f32 %v1579_v31, %v671_v35  ;;  %v674_v42 = vadd.f32 %v1542_v36, %v2102_v7 }
 0x111   : > { %v773_v43 = vadd.f32 %v772_v40, %v771_v39  ;;  %v1762_v39 = vld [vmem:[%s2267_s5 + $0x48] sm:$0xff]  }
 0x112   : > { %v758_v44 = vmul.f32 0.2, %v735_v41  ;;  %v738_v45 = vadd.f32 %v1582_v38, %v674_v42  ;;  %v1543_v46 = vpop.f32.mrb[8].mxu0  ;;  %v1763_v40 = vld [vmem:[%s2267_s5 + $0xc8] sm:$0xff]  }
 0x113   : > { %v1583_v47 = vpop.f32.mrb[8].mxu1  ;;  %v1544_v48 = vpop.f32.mrb[9].mxu0  ;;  %v1765_v42 = vld [vmem:[%s2267_s5 + $0x88] sm:$0xff]  }
 0x114   : > { %v765_v49 = vmax.f32 %v735_v41, %v758_v44  ;;  %v759_v50 = vmul.f32 0.2, %v738_v45  ;;  %v1545_v51 = vadd.f32 %v1544_v48, %v1543_v46  ;;  %v1584_v52 = vpop.f32.mrb[9].mxu1  ;;  %v1546_v53 = vpop.f32.mrb[10].mxu0  ;;  %v1764_v41 = vld [vmem:[%s2267_s5 + $0x8] sm:$0xff]   ;;  %v1767_v44 = vld [vmem:[%s2267_s5 + $0xd0] sm:$0xff]  }
 0x115   : > { %v1585_v54 = vadd.f32 %v1584_v52, %v1583_v47  ;;  %v1586_v55 = vpop.f32.mrb[10].mxu1  ;;  %v1547_v56 = vpop.f32.mrb[11].mxu0  ;;  %v1769_v46 = vld [vmem:[%s2267_s5 + $0x90] sm:$0xff]   ;;  %v1770_v47 = vld [vmem:[%s2267_s5 + $0x58] sm:$0xff]   ;;  %v1775_v52 = vld [vmem:[%s2267_s5 + $0xe0] sm:$0xff]  }
 0x116   : > { %v774_v57 = vsel %vm770_vm0, %v765_v49, 0.0  ;;  %v766_v58 = vmax.f32 %v738_v45, %v759_v50  ;;  %v679_v59 = vadd.f32 %v1545_v51, %v2102_v7  ;;  %v1548_v60 = vadd.f32 %v1547_v56, %v1546_v53  ;;  %v1587_v61 = vpop.f32.mrb[11].mxu1  ;;  %v1768_v45 = vld [vmem:[%s2267_s5 + $0x10] sm:$0xff]   ;;  %v1771_v48 = vld [vmem:[%s2267_s5 + $0xd8] sm:$0xff]   ;;  %v1774_v51 = vld [vmem:[%s2267_s5 + $0x60] sm:$0xff]  }
 0x117   : > { %v775_v62 = vadd.f32 %v774_v57, %v773_v43  ;;  %v1588_v63 = vadd.f32 %v1587_v61, %v1586_v55  ;;  %v1766_v43 = vld [vmem:[%s2267_s5 + $0x50] sm:$0xff]   ;;  %v1772_v49 = vld [vmem:[%s2267_s5 + $0x18] sm:$0xff]   ;;  %v1776_v53 = vld [vmem:[%s2267_s5 + $0x20] sm:$0xff]  }
 0x118   : > { %v776_v0 = vsel %vm770_vm0, %v766_v58, 0.0  ;;  %v743_v1 = vadd.f32 %v1585_v54, %v679_v59  ;;  %v682_v2 = vadd.f32 %v1548_v60, %v2102_v7  ;;  %v1773_v50 = vld [vmem:[%s2267_s5 + $0x98] sm:$0xff]   ;;  %v1777_v54 = vld [vmem:[%s2267_s5 + $0xa0] sm:$0xff]   ;;  %v1778_v55 = vld [vmem:[%s2267_s5 + $0x68] sm:$0xff]  }
 0x119   : > { %v777_v3 = vadd.f32 %v776_v0, %v775_v62  ;;  %v1779_v56 = vld [vmem:[%s2267_s5 + $0xe8] sm:$0xff]   ;;  %v1782_v59 = vld [vmem:[%s2267_s5 + $0x70] sm:$0xff]   ;;  %v1787_v0 = vld [vmem:[%s2267_s5 + $0xf8] sm:$0xff]  }
 0x11a   : > { %v760_v4 = vmul.f32 0.2, %v743_v1  ;;  %v746_v5 = vadd.f32 %v1588_v63, %v682_v2  ;;  %v1549_v6 = vpop.f32.mrb[12].mxu0  ;;  %v1780_v57 = vld [vmem:[%s2267_s5 + $0x28] sm:$0xff]   ;;  %v1783_v60 = vld [vmem:[%s2267_s5 + $0xf0] sm:$0xff]   ;;  %v1786_v63 = vld [vmem:[%s2267_s5 + $0x78] sm:$0xff]  }
 0x11b   : > { %v1589_v8 = vpop.f32.mrb[12].mxu1  ;;  %v1550_v9 = vpop.f32.mrb[13].mxu0  ;;  %v1781_v58 = vld [vmem:[%s2267_s5 + $0xa8] sm:$0xff]   ;;  %v1784_v61 = vld [vmem:[%s2267_s5 + $0x30] sm:$0xff]   ;;  %v1789_v2 = vld [vmem:[%s2267_s5 + $0xb8] sm:$0xff]  }
 0x11c   : > { %v767_v10 = vmax.f32 %v743_v1, %v760_v4  ;;  %v761_v11 = vmul.f32 0.2, %v746_v5  ;;  %v1551_v12 = vadd.f32 %v1550_v9, %v1549_v6  ;;  %v1590_v13 = vpop.f32.mrb[13].mxu1  ;;  %v1552_v14 = vpop.f32.mrb[14].mxu0  ;;  %v1785_v62 = vld [vmem:[%s2267_s5 + $0xb0] sm:$0xff]   ;;  %v1788_v1 = vld [vmem:[%s2267_s5 + $0x38] sm:$0xff]  }
 0x11d   : > { %v1591_v15 = vadd.f32 %v1590_v13, %v1589_v8  ;;  %v1592_v16 = vpop.f32.mrb[14].mxu1  ;;  %v1553_v17 = vpop.f32.mrb[15].mxu0  ;;  %v810_v8 = vld [vmem:[%s2266_s4] sm:$0xf] }
 0x11e   : > { %v778_v18 = vsel %vm770_vm0, %v767_v10, 0.0  ;;  %v768_v19 = vmax.f32 %v746_v5, %v761_v11  ;;  %v687_v20 = vadd.f32 %v1551_v12, %v2102_v7  ;;  %v1593_v21 = vpop.f32.mrb[15].mxu1  ;;  %v1760_v7 = vld [vmem:[%s2267_s5] sm:$0xff]  }
 0x11f   : > { %v779_v22 = vadd.f32 %v778_v18, %v777_v3  ;;  %v892_v3 = vlaneseq }
 0x120   : > { %v780_v23 = vsel %vm770_vm0, %v768_v19, 0.0  ;;  %v751_v24 = vadd.f32 %v1591_v15, %v687_v20 }
 0x121   : > { %v781_v25 = vadd.f32 %v780_v23, %v779_v22  ;;  %v893_v4 = vshrl.u32 %v892_v3, 7 }
 0x122   : > { %v762_v26 = vmul.f32 0.2, %v751_v24 }
 0x123   : > { %v894_v5 = vsub.s32 0, %v893_v4  ;;  %v902_v6 = vsub.s32 2, %v893_v4  ;;  %v898_v9 = vsub.s32 1, %v893_v4  ;;  %v906_v10 = vsub.s32 3, %v893_v4 }
 0x124   : > { %v769_v27 = vmax.f32 %v751_v24, %v762_v26 }
 0x125   : > { %v895_v11 = vrot.slane %v810_v8, %v894_v5  ;;  %v903_v12 = vrot.slane %v810_v8, %v902_v6  ;;  %v899_v13 = vrot.slane %v810_v8, %v898_v9  ;;  %v907_v14 = vrot.slane %v810_v8, %v906_v10 }
 0x126   : > { %v783_v28 = vsel %vm782_vm1, %v769_v27, 0.0 }
 0x127   : > { %v784_v29 = vadd.f32 %v783_v28, %v781_v25 }
 0x129   : > { %v785_v30 = vrot.slane %v784_v29, 4 }
 0x12b   : > { %v786_v31 = vadd.f32 %v785_v30, %v784_v29 }
 0x12d   : > { %v787_v32 = vrot.slane %v786_v31, 2 }
 0x12f   : > { %v788_v33 = vadd.f32 %v787_v32, %v786_v31 }
 0x131   : > { %v789_v34 = vrot.slane %v788_v33, 1 }
 0x133   : > { %v790_v35 = vadd.f32 %v789_v34, %v788_v33  ;;  %v1065_v33 = vld [vmem:[%s2268_s6] sm:$0x1] }
 0x135   : > { %v792_v36 = vmul.f32 0.020408163, %v790_v35 }
 0x137   : > { %v793_v38 = vpack.c.bf16 %v792_v36, %v792_v36 }
 0x139   : > { %1478 = vmatmul.mubr.msk.bf16.vlgmr.msra.gmra.mrb[16].mxu0 %vm770_vm0, %v793_v38  ;;  %1479 = vmatmul.mubr.msk.bf16.vlgmr.msra.gmra.mrb[16].mxu1 %vm770_vm0, %v793_v38 }
 0x13a   : > { %1596 = vmatpush3.bf16.msra.mxu0 %v1760_v7  ;;  %1618 = vmatpush3.bf16.msra.mxu1 %v1761_v37 }
 0x13b   : > { %1597 = vmatprep.subr.bf16.mxu0 %v1762_v39  ;;  %1619 = vmatprep.subr.bf16.mxu1 %v1763_v40 }
 0x13e   : > { %1598 = vmatpush3.bf16.msra.mxu0 %v1764_v41  ;;  %1620 = vmatpush3.bf16.msra.mxu1 %v1765_v42 }
 0x13f   : > { %1599 = vmatprep.subr.bf16.mxu0 %v1766_v43  ;;  %1621 = vmatprep.subr.bf16.mxu1 %v1767_v44 }
 0x142   : > { %1600 = vmatpush3.bf16.msra.mxu0 %v1768_v45  ;;  %1622 = vmatpush3.bf16.msra.mxu1 %v1769_v46 }
 0x143   : > { %1601 = vmatprep.subr.bf16.mxu0 %v1770_v47  ;;  %1623 = vmatprep.subr.bf16.mxu1 %v1771_v48 }
 0x146   : > { %1602 = vmatpush3.bf16.msra.mxu0 %v1772_v49  ;;  %1624 = vmatpush3.bf16.msra.mxu1 %v1773_v50 }
 0x147   : > { %1603 = vmatprep.subr.bf16.mxu0 %v1774_v51  ;;  %1625 = vmatprep.subr.bf16.mxu1 %v1775_v52 }
 0x14a   : > { %1604 = vmatpush3.bf16.msra.mxu0 %v1776_v53  ;;  %1626 = vmatpush3.bf16.msra.mxu1 %v1777_v54 }
 0x14b   : > { %1605 = vmatprep.subr.bf16.mxu0 %v1778_v55  ;;  %1627 = vmatprep.subr.bf16.mxu1 %v1779_v56 }
 0x14e   : > { %1606 = vmatpush3.bf16.msra.mxu0 %v1780_v57  ;;  %1628 = vmatpush3.bf16.msra.mxu1 %v1781_v58 }
 0x14f   : > { %1607 = vmatprep.subr.bf16.mxu0 %v1782_v59  ;;  %1629 = vmatprep.subr.bf16.mxu1 %v1783_v60 }
 0x152   : > { %1608 = vmatpush3.bf16.msra.mxu0 %v1784_v61  ;;  %1630 = vmatpush3.bf16.msra.mxu1 %v1785_v62 }
 0x153   : > { %1609 = vmatprep.subr.bf16.mxu0 %v1786_v63  ;;  %1631 = vmatprep.subr.bf16.mxu1 %v1787_v0 }
 0x156   : > { %1610 = vmatpush3.bf16.msra.mxu0 %v1788_v1  ;;  %1632 = vmatpush3.bf16.msra.mxu1 %v1789_v2 }
 0x20c   : > { %v949_v15 = vpop.f32.mrb[16].mxu0  ;;  %v990_v16 = vpop.f32.mrb[16].mxu1 }
 0x20d   : > { %v950_v17 = vadd.f32 %v949_v15, %v895_v11  ;;  %v991_v18 = vadd.f32 %v990_v16, %v903_v12  ;;  %v951_v19 = vpop.f32.mrb[17].mxu0  ;;  %v992_v20 = vpop.f32.mrb[17].mxu1 }
 0x20e   : > { %v952_v21 = vadd.f32 %v951_v19, %v899_v13  ;;  %v993_v22 = vadd.f32 %v992_v20, %v907_v14  ;;  %v953_v23 = vpop.f32.mrb[18].mxu0  ;;  %v994_v24 = vpop.f32.mrb[18].mxu1 }
 0x20f   : > { %v954_v25 = vpop.f32.mrb[19].mxu0  ;;  %v995_v26 = vpop.f32.mrb[19].mxu1  ;;  %v997_v29 = vpack.c.bf16 %v950_v17, %v950_v17  ;;  %v999_v30 = vpack.c.bf16 %v991_v18, %v991_v18 }
 0x210   : > { %v998_v27 = vpack.c.bf16 %v952_v21, %v952_v21  ;;  %v1000_v28 = vpack.c.bf16 %v993_v22, %v993_v22 }
 0x212   : > { %1290 = vmatprep.mubr.bf16.mxu0 %v998_v27  ;;  %1330 = vmatprep.mubr.bf16.mxu1 %v1000_v28 }
 0x213   : > { %1291 = vmatmul.mubr.bf16.vlgmr.msra.gmra.mrb[20].mxu0 %v997_v29  ;;  %1331 = vmatmul.mubr.bf16.vlgmr.msra.gmra.mrb[20].mxu1 %v999_v30 }
 0x2e6   : > { %v1611_v31 = vpop.f32.mrb[20].mxu0  ;;  %v1633_v32 = vpop.f32.mrb[20].mxu1 }
 0x2e7   : > { %v1612_v34 = vpop.f32.mrb[21].mxu0  ;;  %v1634_v35 = vpop.f32.mrb[21].mxu1 }
 0x2e8   : > { %v1613_v36 = vadd.f32 %v1612_v34, %v1611_v31  ;;  %v1635_v7 = vadd.f32 %v1634_v35, %v1633_v32  ;;  %v1614_v37 = vpop.f32.mrb[22].mxu0  ;;  %v1636_v38 = vpop.f32.mrb[22].mxu1 }
 0x2e9   : > { %v1615_v39 = vpop.f32.mrb[23].mxu0  ;;  %v1637_v40 = vpop.f32.mrb[23].mxu1 }
 0x2ea   : > { %v1293_v41 = vadd.f32 %v1613_v36, %v1065_v33 }
 0x2ec   : > { %v1333_v42 = vadd.f32 %v1635_v7, %v1293_v41 }
 0x2ee   : > { %1339 = vst.msk [vmem:[%s270_s19] sm:$0x1] %vm1338_vm2, %v1333_v42 }
 0x2ef   : > { %1803 = shalt.err (!%p1800_p3)
}
 0x2f0   : > { %s1804_s13 = scalar_lea.hbm %s2220_s22, 16  ;;  %s1808_s17 = scalar_lea.hbm %s2269_s7, 32 }
 0x2f1   : > { %p1805_p4 = scmp.ne.s32.totalorder %s2220_s22, %s1804_s13  ;;  %p1809_p9 = scmp.lt.u32.totalorder %s2220_s22, %s2269_s7 }
 0x2f2   : > { %p1810_p10 = scmp.lt.u32.totalorder %s1808_s17, %s1804_s13  ;;  %p1812_p12 = scmp.lt.u32.totalorder %s1804_s13, %s2220_s22 }
 0x2f3   : > { %p1806_p7 = pnand %p1805_p4, %p1934_p5 }
 0x2f4   : > { %p1811_p11 = por %p1810_p10, %p1809_p9 }
 0x2f5   : > { %p1807_p8 = pneg %p1806_p7 }
 0x2f6   : > { %p1813_p13 = por %p1812_p12, %p1811_p11 }
 0x2f8   : > { %p1814_p0 = pnand %p1813_p13, %p1807_p8 }
 0x2fa   : > { %1817 = shalt.err (!%p1814_p0)
}
 0x2fb   : > { %1640 = dma.vmem_to_hbm [thread:$0]  (%p1934_p5), %s2222_s15, 16, %s2220_s22, %s1341_s23  }
 0x2fc PF: > { %p1646_p1 = scmp.ge.s32.totalorder %s1852_s27, 2  ;;  %s1365_s20 = sand.u32 1, %s1840_s24  }
 0x2fd   : > { %s1366_s21 = scalar_lea.sflag [#allocation3], %s1365_s20 }
 0x2fe   : > { %p1643_p2 = pnand %p1646_p1, %p1938_p6 }
 0x300   : > { %1835 = dma.done.wait (!%p1643_p2), %s1366_s21, 16  }
 0x301   : > { %1837 = vsyncadd (!%p1643_p2), %s1366_s21, 4294967280  ;;  %p17_p3 = scmp.ge.s32.totalorder %s1921_s30, 4   ;;  %s2272_s24 = smov %s1844_s25 }
 0x302   : > { %s2273_s25 = smov %s1848_s26  ;;  %s2274_s26 = smov %s1932_s10 }
 0x303   : > { %s2275_s27 = smov %s1921_s30  ;;  %19 = sbr.rel (!%p17_p3) target bundleno = 3 (0x3), region = 83 }
 0x30a   :  { %1370 = vsyncpa [#allocation3], 1 }
 0x30b   :  { %1372 = vsyncpa [#allocation3 + $0x1], 1 }

</bundles_post_ra>
